<compile_context>
chip_gen: v7x
topology: tpu7x:2x2x1
jax: 0.10.0
libtpu: 0.0.40
codegen_flags: <defaults>
</compile_context>

<pallas_src>
import math

import jax
import jax.numpy as jnp
from jax.experimental import pallas as pl
from jax.experimental.pallas import tpu as pltpu

_SQRT1_2 = 0.7071067811865476


def _gelu(v):
    # Exact (erf-based) GELU, matching torch.nn.GELU() default numerics.
    return 0.5 * v * (1.0 + jax.lax.erf(v * _SQRT1_2))


def _round_up(x, m):
    return (x + m - 1) // m * m


# ----------------------------------------------------------------------------- packing
def pack_params(params, dim_in, num_layers, hidden_dim, cond_emb_dim):
    """Pack the per-layer arrays into 3 slabs consumed by the kernel.

      w256 : bf16 (R, hidden)  -- every hidden-wide matmul weight (padded where needed)
      wsml : bf16 (r, half)    -- the small cond/time MLP weights
      brow : f32  (~16,hidden) -- all biases + the two K==1 first-layer weight rows
    Row offsets are static Python ints returned in `layout`.
    """
    half = cond_emb_dim // 2
    quarter = half // 2
    n_blocks = num_layers - 1
    D = hidden_dim
    P = _round_up(dim_in, 128)          # padded input lane width
    P_out = _round_up(dim_in, 128)      # padded output lane width
    assert dim_in <= D and P_out <= D

    (cw1, cb1, cw2, cb2, cw3, cb3,
     tw1, tb1, tw2, tb2, tw3, tb3) = params[:12]
    inw, inb = params[12], params[13]
    blocks = [tuple(params[14 + 6 * b: 20 + 6 * b]) for b in range(n_blocks)]
    ow, ob = params[14 + 6 * n_blocks], params[15 + 6 * n_blocks]

    # -- big (hidden-wide) weight slab, bf16 --
    inw_pad = jnp.zeros((P, D), jnp.float32).at[:dim_in, :].set(inw)
    ow_pad = jnp.zeros((D, D), jnp.float32).at[:, :dim_in].set(ow)
    w_entries = [inw_pad]
    row = P
    blk_offs = []
    for (ew, eb, d1w, d1b, d2w, d2b) in blocks:
        blk_offs.append((row, row + cond_emb_dim, row + cond_emb_dim + D))
        w_entries += [ew, d1w, d2w]
        row += cond_emb_dim + 2 * D
    out_off = row
    w_entries.append(ow_pad)
    w256 = jnp.concatenate(w_entries, axis=0).astype(jnp.bfloat16)

    # -- small cond/time MLP weight slab, bf16 --
    wsml = jnp.concatenate([cw2, cw3, tw2, tw3], axis=0).astype(jnp.bfloat16)
    sm_offs = dict(cw2=0, cw3=quarter, tw2=quarter + half, tw3=2 * quarter + half)

    # -- bias / row-vector slab, f32 (kept f32 for exact bias adds) --
    def padrow(v):
        return jnp.zeros((1, D), jnp.float32).at[:, :v.shape[-1]].set(v.reshape(1, -1))

    rows = [cw1, cb1, cb2, cb3, tw1, tb1, tb2, tb3, inb]
    for (ew, eb, d1w, d1b, d2w, d2b) in blocks:
        rows += [eb, d1b, d2b]
    ob_row = len(rows)
    rows.append(ob)
    brow = jnp.concatenate([padrow(v) for v in rows], axis=0)
    pad = _round_up(brow.shape[0], 8) - brow.shape[0]
    if pad:
        brow = jnp.concatenate([brow, jnp.zeros((pad, D), jnp.float32)], axis=0)

    layout = dict(quarter=quarter, half=half, hidden=D, P=P, P_out=P_out,
                  in_off=0, out_off=out_off, blk_offs=tuple(blk_offs),
                  sm_offs=sm_offs, ob_row=ob_row)
    return (w256, wsml, brow), layout


# ----------------------------------------------------------------------------- kernel
def _make_kernel(layout):
    Q, H, D, P = layout['quarter'], layout['half'], layout['hidden'], layout['P']
    P_out = layout['P_out']
    in_off, out_off = layout['in_off'], layout['out_off']
    blk_offs, sm, ob_row = layout['blk_offs'], layout['sm_offs'], layout['ob_row']
    bf16, f32 = jnp.bfloat16, jnp.float32

    def kernel(x_ref, cond_ref, time_ref, w256_ref, wsml_ref, brow_ref, o_ref):
        def mm(a, w):
            # bf16 x bf16 MXU matmul with f32 accumulation.
            return jnp.dot(a.astype(bf16), w, preferred_element_type=f32)

        brow = brow_ref[...]                                  # tiny (<=16, D) f32
        cw1 = brow[0:1, :Q]; cb1 = brow[1:2, :Q]
        cb2 = brow[2:3, :H]; cb3 = brow[3:4, :H]
        tw1 = brow[4:5, :Q]; tb1 = brow[5:6, :Q]
        tb2 = brow[6:7, :H]; tb3 = brow[7:8, :H]
        inb = brow[8:9, :]
        obias = brow[ob_row:ob_row + 1, :P_out]

        # cond_mlp / time_mlp. First layers have K == 1: keep them off the MXU
        # (VPU broadcast multiply-add instead of a 1/128-utilized matmul).
        c = _gelu(cond_ref[...] * cw1 + cb1)                                   # (TB, Q)
        c = _gelu(mm(c, wsml_ref[sm['cw2']:sm['cw2'] + Q, :]) + cb2)           # (TB, H)
        c = mm(c, wsml_ref[sm['cw3']:sm['cw3'] + H, :]) + cb3

        t = _gelu(time_ref[...] * tw1 + tb1)
        t = _gelu(mm(t, wsml_ref[sm['tw2']:sm['tw2'] + Q, :]) + tb2)
        t = mm(t, wsml_ref[sm['tw3']:sm['tw3'] + H, :]) + tb3

        # GELU of the conditioning embedding is loop-invariant: hoist it. The
        # lane-axis concat([c, t]) is eliminated by splitting each embeder weight
        # into its top/bottom `half` rows (pure MXU work, no shuffle/copy).
        gc = _gelu(c).astype(bf16)                                             # (TB, H)
        gt = _gelu(t).astype(bf16)

        # in_lay (input zero-padded to P lanes; extra weight rows are zero).
        h = mm(x_ref[...], w256_ref[in_off:in_off + P, :]) + inb               # (TB, D)

        # ResDense blocks.
        for bi, (e_off, d1_off, d2_off) in enumerate(blk_offs):
            eb = brow[9 + 3 * bi:10 + 3 * bi, :]
            d1b = brow[10 + 3 * bi:11 + 3 * bi, :]
            d2b = brow[11 + 3 * bi:12 + 3 * bi, :]
            z = _gelu(mm(h, w256_ref[d1_off:d1_off + D, :]) + d1b)             # dense1
            embed = (mm(gc, w256_ref[e_off:e_off + H, :])                      # embeder
                     + mm(gt, w256_ref[e_off + H:e_off + 2 * H, :]) + eb)
            z = z + embed
            z = _gelu(mm(z, w256_ref[d2_off:d2_off + D, :]) + d2b)             # dense2
            h = z + h                                                          # residual

        # out_lay: only the first P_out (=128) lanes of the padded output weight
        # are used -> lane-dense (TB, 128) store, half the HBM writes of a
        # hidden-wide store. The wrapper slices back to dim_in columns.
        o_ref[...] = mm(h, w256_ref[out_off:out_off + D, :P_out]) + obias

    return kernel


# ----------------------------------------------------------------------------- wrapper
def resnet_forward(x, cond, time, params, *, dim_in=45, num_layers=3,
                   hidden_dim=256, cond_emb_dim=128):
    B = x.shape[0]
    # Parameter packing happens once, outside the jitted compute path.
    slabs, layout = pack_params(list(params), dim_in, num_layers, hidden_dim,
                                cond_emb_dim)
    w256, wsml, brow = slabs
    P, D, P_out = layout['P'], layout['hidden'], layout['P_out']

    # Batch tile: present >=128 rows to the MXU per block; the grid axis is marked
    # "parallel" so multi-TensorCore chips split the batch blocks.
    if B % 512 == 0 and B >= 1024:
        TB = 512
    elif B % 256 == 0 and B >= 512:
        TB = 256
    elif B % 128 == 0:
        TB = 128
    else:
        TB = B          # single block (block == full dim is always legal)
    grid = (B // TB,)

    kernel = _make_kernel(layout)
    call = pl.pallas_call(
        kernel,
        out_shape=jax.ShapeDtypeStruct((B, P_out), jnp.float32),
        grid=grid,
        in_specs=[
            pl.BlockSpec((TB, P), lambda i: (i, 0)),          # x (batch-blocked)
            pl.BlockSpec((TB, 1), lambda i: (i, 0)),          # cond
            pl.BlockSpec((TB, 1), lambda i: (i, 0)),          # time
            # Parameter slabs: constant index_map -> fetched once, VMEM-resident
            # across all batch blocks.
            pl.BlockSpec(w256.shape, lambda i: (0, 0)),
            pl.BlockSpec(wsml.shape, lambda i: (0, 0)),
            pl.BlockSpec(brow.shape, lambda i: (0, 0)),
        ],
        out_specs=pl.BlockSpec((TB, P_out), lambda i: (i, 0)),
        compiler_params=pltpu.CompilerParams(
            dimension_semantics=("parallel",),
        ),
    )

    @jax.jit
    def fwd(x, cond, time, w256, wsml, brow):
        cond2 = jnp.reshape(cond, (B, -1)).astype(jnp.float32)
        assert cond2.shape[1] == 1, "kernel assumes cond_size == 1 (model default)"
        time2 = jnp.reshape(time, (B, 1)).astype(jnp.float32)   # nn.Unflatten(-1, (-1, 1))
        x_pad = jnp.zeros((B, P), jnp.float32).at[:, :dim_in].set(x.astype(jnp.float32))
        out = call(x_pad, cond2, time2, w256, wsml, brow)
        return out[:, :dim_in]

    return fwd(x, cond, time, w256, wsml, brow)


# --------------------------------------------------------------------------- params/ref
def _init_linear(key, fan_in, fan_out):
    # Mimics torch.nn.Linear default init: U(-1/sqrt(fan_in), 1/sqrt(fan_in)).
    kw, kb = jax.random.split(key)
    bound = 1.0 / math.sqrt(fan_in)
    w = jax.random.uniform(kw, (fan_in, fan_out), jnp.float32, -bound, bound)
    b = jax.random.uniform(kb, (1, fan_out), jnp.float32, -bound, bound)
    return w, b


def make_params(key, dim_in=45, num_layers=3, hidden_dim=256, cond_emb_dim=128,
                cond_size=1):
    half = cond_emb_dim // 2
    quarter = half // 2
    layer_dims = []
    layer_dims += [(cond_size, quarter), (quarter, half), (half, half)]   # cond_mlp
    layer_dims += [(1, quarter), (quarter, half), (half, half)]           # time_mlp
    layer_dims += [(dim_in, hidden_dim)]                                  # in_lay
    for _ in range(num_layers - 1):                                       # ResDense
        layer_dims += [(cond_emb_dim, hidden_dim),   # embeder Linear
                       (hidden_dim, hidden_dim),     # dense1
                       (hidden_dim, hidden_dim)]     # dense2
    layer_dims += [(hidden_dim, dim_in)]                                  # out_lay

    keys = jax.random.split(key, len(layer_dims))
    params = []
    for k, (fi, fo) in zip(keys, layer_dims):
        w, b = _init_linear(k, fi, fo)
        params += [w, b]
    return params


def ref_forward(x, cond, time, params, *, num_layers=3):
    """Pure-JAX reference mirroring the kernel's bf16-weight / f32-accumulate math."""
    bf16 = jnp.bfloat16
    n_blocks = num_layers - 1
    (cw1, cb1, cw2, cb2, cw3, cb3,
     tw1, tb1, tw2, tb2, tw3, tb3) = params[:12]
    inw, inb = params[12], params[13]
    blocks = [tuple(params[14 + 6 * b: 20 + 6 * b]) for b in range(n_blocks)]
    ow, ob = params[14 + 6 * n_blocks], params[15 + 6 * n_blocks]

    def mm(a, w):
        return jnp.dot(a.astype(bf16), w.astype(bf16),
                       preferred_element_type=jnp.float32)

    c = _gelu(cond * cw1 + cb1)
    c = _gelu(mm(c, cw2) + cb2)
    c = mm(c, cw3) + cb3

    t = time.reshape(-1, 1)
    t = _gelu(t * tw1 + tb1)
    t = _gelu(mm(t, tw2) + tb2)
    t = mm(t, tw3) + tb3

    cg = _gelu(jnp.concatenate([c, t], axis=-1))
    h = mm(x, inw) + inb
    for (ew, eb, d1w, d1b, d2w, d2b) in blocks:
        z = _gelu(mm(h, d1w) + d1b)
        z = z + (mm(cg, ew) + eb)
        z = _gelu(mm(z, d2w) + d2b)
        h = z + h
    return mm(h, ow) + ob


if __name__ == "__main__":
    dim_in, num_layers, hidden_dim, cond_emb_dim, cond_size = 45, 3, 256, 128, 1
    B = 256   # small, but exercises the batch grid (2 blocks of 128 rows)

    key = jax.random.PRNGKey(0)
    kx, kc, kt, kp = jax.random.split(key, 4)
    x = jax.random.normal(kx, (B, dim_in), jnp.float32)
    cond = jax.random.normal(kc, (B, cond_size), jnp.float32)
    time = jax.random.uniform(kt, (B,), jnp.float32)
    params = make_params(kp, dim_in, num_layers, hidden_dim, cond_emb_dim, cond_size)

    out = resnet_forward(x, cond, time, params, dim_in=dim_in, num_layers=num_layers,
                         hidden_dim=hidden_dim, cond_emb_dim=cond_emb_dim)
    out = jax.block_until_ready(out)

    ref = ref_forward(x, cond, time, params, num_layers=num_layers)
    assert out.shape == (B, dim_in), out.shape
    max_err = float(jnp.max(jnp.abs(out - ref)))
    assert jnp.allclose(out, ref, atol=2e-3, rtol=2e-3), max_err
    print("KERNEL_OK")
</pallas_src>

<mosaic_0001>
module attributes {stable_mosaic.version = 11 : i64} {
  func.func @kernel(%arg0: i32, %arg1: memref<128x128xf32, #tpu.memory_space<vmem>>, %arg2: memref<128x1xf32, #tpu.memory_space<vmem>>, %arg3: memref<128x1xf32, #tpu.memory_space<vmem>>, %arg4: memref<1664x256xbf16, #tpu.memory_space<vmem>>, %arg5: memref<192x64xbf16, #tpu.memory_space<vmem>>, %arg6: memref<16x256xf32, #tpu.memory_space<vmem>>, %arg7: memref<128x128xf32, #tpu.memory_space<vmem>>) attributes {dimension_semantics = [#tpu.dimension_semantics<parallel>], iteration_bounds = array<i64: 2>, scalar_prefetch = 0 : i64, scratch_operands = 0 : i64, tpu.core_type = #tpu.core_type<tc>, window_params = [{transform_indices = @transform_0, window_bounds = array<i64: 128, 128>}, {transform_indices = @transform_1, window_bounds = array<i64: 128, 1>}, {transform_indices = @transform_2, window_bounds = array<i64: 128, 1>}, {pipeline_mode = #tpu.pipeline_mode<synchronous>, transform_indices = @transform_3, window_bounds = array<i64: 1664, 256>}, {pipeline_mode = #tpu.pipeline_mode<synchronous>, transform_indices = @transform_4, window_bounds = array<i64: 192, 64>}, {pipeline_mode = #tpu.pipeline_mode<synchronous>, transform_indices = @transform_5, window_bounds = array<i64: 16, 256>}, {transform_indices = @transform_6, window_bounds = array<i64: 128, 128>}]} {
    %c0 = arith.constant 0 : index
    %c0_0 = arith.constant 0 : index
    %0 = vector.load %arg6[%c0, %c0_0] : memref<16x256xf32, #tpu.memory_space<vmem>>, vector<16x256xf32>
    %1 = vector.extract_strided_slice %0 {offsets = [0, 0], sizes = [1, 32], strides = [1, 1]} : vector<16x256xf32> to vector<1x32xf32>
    %2 = vector.extract_strided_slice %0 {offsets = [1, 0], sizes = [1, 32], strides = [1, 1]} : vector<16x256xf32> to vector<1x32xf32>
    %3 = vector.extract_strided_slice %0 {offsets = [2, 0], sizes = [1, 64], strides = [1, 1]} : vector<16x256xf32> to vector<1x64xf32>
    %4 = vector.extract_strided_slice %0 {offsets = [3, 0], sizes = [1, 64], strides = [1, 1]} : vector<16x256xf32> to vector<1x64xf32>
    %5 = vector.extract_strided_slice %0 {offsets = [4, 0], sizes = [1, 32], strides = [1, 1]} : vector<16x256xf32> to vector<1x32xf32>
    %6 = vector.extract_strided_slice %0 {offsets = [5, 0], sizes = [1, 32], strides = [1, 1]} : vector<16x256xf32> to vector<1x32xf32>
    %7 = vector.extract_strided_slice %0 {offsets = [6, 0], sizes = [1, 64], strides = [1, 1]} : vector<16x256xf32> to vector<1x64xf32>
    %8 = vector.extract_strided_slice %0 {offsets = [7, 0], sizes = [1, 64], strides = [1, 1]} : vector<16x256xf32> to vector<1x64xf32>
    %9 = vector.extract_strided_slice %0 {offsets = [8, 0], sizes = [1, 256], strides = [1, 1]} : vector<16x256xf32> to vector<1x256xf32>
    %10 = vector.extract_strided_slice %0 {offsets = [15, 0], sizes = [1, 128], strides = [1, 1]} : vector<16x256xf32> to vector<1x128xf32>
    %c0_1 = arith.constant 0 : index
    %c0_2 = arith.constant 0 : index
    %11 = vector.load %arg2[%c0_1, %c0_2] : memref<128x1xf32, #tpu.memory_space<vmem>>, vector<128x1xf32>
    %12 = vector.broadcast %11 : vector<128x1xf32> to vector<128x32xf32>
    %13 = vector.broadcast %1 : vector<1x32xf32> to vector<128x32xf32>
    %14 = arith.mulf %12, %13 : vector<128x32xf32>
    %15 = vector.broadcast %2 : vector<1x32xf32> to vector<128x32xf32>
    %16 = arith.addf %14, %15 : vector<128x32xf32>
    %cst = arith.constant 5.000000e-01 : f32
    %17 = vector.broadcast %cst : f32 to vector<128x32xf32>
    %18 = arith.mulf %17, %16 : vector<128x32xf32>
    %cst_3 = arith.constant 0.707106769 : f32
    %19 = vector.broadcast %cst_3 : f32 to vector<128x32xf32>
    %20 = arith.mulf %16, %19 : vector<128x32xf32>
    %21 = math.erf %20 : vector<128x32xf32>
    %cst_4 = arith.constant 1.000000e+00 : f32
    %22 = vector.broadcast %cst_4 : f32 to vector<128x32xf32>
    %23 = arith.addf %22, %21 : vector<128x32xf32>
    %24 = arith.mulf %18, %23 : vector<128x32xf32>
    %c0_5 = arith.constant 0 : index
    %c0_6 = arith.constant 0 : index
    %25 = vector.load %arg5[%c0_5, %c0_6] : memref<192x64xbf16, #tpu.memory_space<vmem>>, vector<32x64xbf16>
    %26 = arith.truncf %24 : vector<128x32xf32> to vector<128x32xbf16>
    %cst_7 = arith.constant dense<0.000000e+00> : vector<128x64xf32>
    %27 = tpu.matmul %26, %25, %cst_7 {dimension_numbers = #tpu.dot_dimension_numbers<[1], [0], [0], [1], [0, 0, 1, 1], [], []>} : vector<128x32xbf16>, vector<32x64xbf16>, vector<128x64xf32> -> vector<128x64xf32>
    %28 = vector.broadcast %3 : vector<1x64xf32> to vector<128x64xf32>
    %29 = arith.addf %27, %28 : vector<128x64xf32>
    %cst_8 = arith.constant 5.000000e-01 : f32
    %30 = vector.broadcast %cst_8 : f32 to vector<128x64xf32>
    %31 = arith.mulf %30, %29 : vector<128x64xf32>
    %cst_9 = arith.constant 0.707106769 : f32
    %32 = vector.broadcast %cst_9 : f32 to vector<128x64xf32>
    %33 = arith.mulf %29, %32 : vector<128x64xf32>
    %34 = math.erf %33 : vector<128x64xf32>
    %cst_10 = arith.constant 1.000000e+00 : f32
    %35 = vector.broadcast %cst_10 : f32 to vector<128x64xf32>
    %36 = arith.addf %35, %34 : vector<128x64xf32>
    %37 = arith.mulf %31, %36 : vector<128x64xf32>
    %c32 = arith.constant 32 : index
    %c0_11 = arith.constant 0 : index
    %38 = vector.load %arg5[%c32, %c0_11] : memref<192x64xbf16, #tpu.memory_space<vmem>>, vector<64x64xbf16>
    %39 = arith.truncf %37 : vector<128x64xf32> to vector<128x64xbf16>
    %cst_12 = arith.constant dense<0.000000e+00> : vector<128x64xf32>
    %40 = tpu.matmul %39, %38, %cst_12 {dimension_numbers = #tpu.dot_dimension_numbers<[1], [0], [0], [1], [0, 0, 1, 1], [], []>} : vector<128x64xbf16>, vector<64x64xbf16>, vector<128x64xf32> -> vector<128x64xf32>
    %41 = vector.broadcast %4 : vector<1x64xf32> to vector<128x64xf32>
    %42 = arith.addf %40, %41 : vector<128x64xf32>
    %c0_13 = arith.constant 0 : index
    %c0_14 = arith.constant 0 : index
    %43 = vector.load %arg3[%c0_13, %c0_14] : memref<128x1xf32, #tpu.memory_space<vmem>>, vector<128x1xf32>
    %44 = vector.broadcast %43 : vector<128x1xf32> to vector<128x32xf32>
    %45 = vector.broadcast %5 : vector<1x32xf32> to vector<128x32xf32>
    %46 = arith.mulf %44, %45 : vector<128x32xf32>
    %47 = vector.broadcast %6 : vector<1x32xf32> to vector<128x32xf32>
    %48 = arith.addf %46, %47 : vector<128x32xf32>
    %cst_15 = arith.constant 5.000000e-01 : f32
    %49 = vector.broadcast %cst_15 : f32 to vector<128x32xf32>
    %50 = arith.mulf %49, %48 : vector<128x32xf32>
    %cst_16 = arith.constant 0.707106769 : f32
    %51 = vector.broadcast %cst_16 : f32 to vector<128x32xf32>
    %52 = arith.mulf %48, %51 : vector<128x32xf32>
    %53 = math.erf %52 : vector<128x32xf32>
    %cst_17 = arith.constant 1.000000e+00 : f32
    %54 = vector.broadcast %cst_17 : f32 to vector<128x32xf32>
    %55 = arith.addf %54, %53 : vector<128x32xf32>
    %56 = arith.mulf %50, %55 : vector<128x32xf32>
    %c96 = arith.constant 96 : index
    %c0_18 = arith.constant 0 : index
    %57 = vector.load %arg5[%c96, %c0_18] : memref<192x64xbf16, #tpu.memory_space<vmem>>, vector<32x64xbf16>
    %58 = arith.truncf %56 : vector<128x32xf32> to vector<128x32xbf16>
    %cst_19 = arith.constant dense<0.000000e+00> : vector<128x64xf32>
    %59 = tpu.matmul %58, %57, %cst_19 {dimension_numbers = #tpu.dot_dimension_numbers<[1], [0], [0], [1], [0, 0, 1, 1], [], []>} : vector<128x32xbf16>, vector<32x64xbf16>, vector<128x64xf32> -> vector<128x64xf32>
    %60 = vector.broadcast %7 : vector<1x64xf32> to vector<128x64xf32>
    %61 = arith.addf %59, %60 : vector<128x64xf32>
    %cst_20 = arith.constant 5.000000e-01 : f32
    %62 = vector.broadcast %cst_20 : f32 to vector<128x64xf32>
    %63 = arith.mulf %62, %61 : vector<128x64xf32>
    %cst_21 = arith.constant 0.707106769 : f32
    %64 = vector.broadcast %cst_21 : f32 to vector<128x64xf32>
    %65 = arith.mulf %61, %64 : vector<128x64xf32>
    %66 = math.erf %65 : vector<128x64xf32>
    %cst_22 = arith.constant 1.000000e+00 : f32
    %67 = vector.broadcast %cst_22 : f32 to vector<128x64xf32>
    %68 = arith.addf %67, %66 : vector<128x64xf32>
    %69 = arith.mulf %63, %68 : vector<128x64xf32>
    %c128 = arith.constant 128 : index
    %c0_23 = arith.constant 0 : index
    %70 = vector.load %arg5[%c128, %c0_23] : memref<192x64xbf16, #tpu.memory_space<vmem>>, vector<64x64xbf16>
    %71 = arith.truncf %69 : vector<128x64xf32> to vector<128x64xbf16>
    %cst_24 = arith.constant dense<0.000000e+00> : vector<128x64xf32>
    %72 = tpu.matmul %71, %70, %cst_24 {dimension_numbers = #tpu.dot_dimension_numbers<[1], [0], [0], [1], [0, 0, 1, 1], [], []>} : vector<128x64xbf16>, vector<64x64xbf16>, vector<128x64xf32> -> vector<128x64xf32>
    %73 = vector.broadcast %8 : vector<1x64xf32> to vector<128x64xf32>
    %74 = arith.addf %72, %73 : vector<128x64xf32>
    %cst_25 = arith.constant 5.000000e-01 : f32
    %75 = vector.broadcast %cst_25 : f32 to vector<128x64xf32>
    %76 = arith.mulf %75, %42 : vector<128x64xf32>
    %cst_26 = arith.constant 0.707106769 : f32
    %77 = vector.broadcast %cst_26 : f32 to vector<128x64xf32>
    %78 = arith.mulf %42, %77 : vector<128x64xf32>
    %79 = math.erf %78 : vector<128x64xf32>
    %cst_27 = arith.constant 1.000000e+00 : f32
    %80 = vector.broadcast %cst_27 : f32 to vector<128x64xf32>
    %81 = arith.addf %80, %79 : vector<128x64xf32>
    %82 = arith.mulf %76, %81 : vector<128x64xf32>
    %83 = arith.truncf %82 : vector<128x64xf32> to vector<128x64xbf16>
    %cst_28 = arith.constant 5.000000e-01 : f32
    %84 = vector.broadcast %cst_28 : f32 to vector<128x64xf32>
    %85 = arith.mulf %84, %74 : vector<128x64xf32>
    %cst_29 = arith.constant 0.707106769 : f32
    %86 = vector.broadcast %cst_29 : f32 to vector<128x64xf32>
    %87 = arith.mulf %74, %86 : vector<128x64xf32>
    %88 = math.erf %87 : vector<128x64xf32>
    %cst_30 = arith.constant 1.000000e+00 : f32
    %89 = vector.broadcast %cst_30 : f32 to vector<128x64xf32>
    %90 = arith.addf %89, %88 : vector<128x64xf32>
    %91 = arith.mulf %85, %90 : vector<128x64xf32>
    %92 = arith.truncf %91 : vector<128x64xf32> to vector<128x64xbf16>
    %c0_31 = arith.constant 0 : index
    %c0_32 = arith.constant 0 : index
    %93 = vector.load %arg1[%c0_31, %c0_32] : memref<128x128xf32, #tpu.memory_space<vmem>>, vector<128x128xf32>
    %c0_33 = arith.constant 0 : index
    %c0_34 = arith.constant 0 : index
    %94 = vector.load %arg4[%c0_33, %c0_34] : memref<1664x256xbf16, #tpu.memory_space<vmem>>, vector<128x256xbf16>
    %95 = arith.truncf %93 : vector<128x128xf32> to vector<128x128xbf16>
    %cst_35 = arith.constant dense<0.000000e+00> : vector<128x256xf32>
    %96 = tpu.matmul %95, %94, %cst_35 {dimension_numbers = #tpu.dot_dimension_numbers<[1], [0], [0], [1], [0, 0, 1, 1], [], []>} : vector<128x128xbf16>, vector<128x256xbf16>, vector<128x256xf32> -> vector<128x256xf32>
    %97 = vector.broadcast %9 : vector<1x256xf32> to vector<128x256xf32>
    %98 = arith.addf %96, %97 : vector<128x256xf32>
    %99 = vector.extract_strided_slice %0 {offsets = [9, 0], sizes = [1, 256], strides = [1, 1]} : vector<16x256xf32> to vector<1x256xf32>
    %100 = vector.extract_strided_slice %0 {offsets = [10, 0], sizes = [1, 256], strides = [1, 1]} : vector<16x256xf32> to vector<1x256xf32>
    %101 = vector.extract_strided_slice %0 {offsets = [11, 0], sizes = [1, 256], strides = [1, 1]} : vector<16x256xf32> to vector<1x256xf32>
    %c256 = arith.constant 256 : index
    %c0_36 = arith.constant 0 : index
    %102 = vector.load %arg4[%c256, %c0_36] : memref<1664x256xbf16, #tpu.memory_space<vmem>>, vector<256x256xbf16>
    %103 = arith.truncf %98 : vector<128x256xf32> to vector<128x256xbf16>
    %cst_37 = arith.constant dense<0.000000e+00> : vector<128x256xf32>
    %104 = tpu.matmul %103, %102, %cst_37 {dimension_numbers = #tpu.dot_dimension_numbers<[1], [0], [0], [1], [0, 0, 1, 1], [], []>} : vector<128x256xbf16>, vector<256x256xbf16>, vector<128x256xf32> -> vector<128x256xf32>
    %105 = vector.broadcast %100 : vector<1x256xf32> to vector<128x256xf32>
    %106 = arith.addf %104, %105 : vector<128x256xf32>
    %cst_38 = arith.constant 5.000000e-01 : f32
    %107 = vector.broadcast %cst_38 : f32 to vector<128x256xf32>
    %108 = arith.mulf %107, %106 : vector<128x256xf32>
    %cst_39 = arith.constant 0.707106769 : f32
    %109 = vector.broadcast %cst_39 : f32 to vector<128x256xf32>
    %110 = arith.mulf %106, %109 : vector<128x256xf32>
    %111 = math.erf %110 : vector<128x256xf32>
    %cst_40 = arith.constant 1.000000e+00 : f32
    %112 = vector.broadcast %cst_40 : f32 to vector<128x256xf32>
    %113 = arith.addf %112, %111 : vector<128x256xf32>
    %114 = arith.mulf %108, %113 : vector<128x256xf32>
    %c128_41 = arith.constant 128 : index
    %c0_42 = arith.constant 0 : index
    %115 = vector.load %arg4[%c128_41, %c0_42] : memref<1664x256xbf16, #tpu.memory_space<vmem>>, vector<64x256xbf16>
    %cst_43 = arith.constant dense<0.000000e+00> : vector<128x256xf32>
    %116 = tpu.matmul %83, %115, %cst_43 {dimension_numbers = #tpu.dot_dimension_numbers<[1], [0], [0], [1], [0, 0, 1, 1], [], []>} : vector<128x64xbf16>, vector<64x256xbf16>, vector<128x256xf32> -> vector<128x256xf32>
    %c192 = arith.constant 192 : index
    %c0_44 = arith.constant 0 : index
    %117 = vector.load %arg4[%c192, %c0_44] : memref<1664x256xbf16, #tpu.memory_space<vmem>>, vector<64x256xbf16>
    %cst_45 = arith.constant dense<0.000000e+00> : vector<128x256xf32>
    %118 = tpu.matmul %92, %117, %cst_45 {dimension_numbers = #tpu.dot_dimension_numbers<[1], [0], [0], [1], [0, 0, 1, 1], [], []>} : vector<128x64xbf16>, vector<64x256xbf16>, vector<128x256xf32> -> vector<128x256xf32>
    %119 = arith.addf %116, %118 : vector<128x256xf32>
    %120 = vector.broadcast %99 : vector<1x256xf32> to vector<128x256xf32>
    %121 = arith.addf %119, %120 : vector<128x256xf32>
    %122 = arith.addf %114, %121 : vector<128x256xf32>
    %c512 = arith.constant 512 : index
    %c0_46 = arith.constant 0 : index
    %123 = vector.load %arg4[%c512, %c0_46] : memref<1664x256xbf16, #tpu.memory_space<vmem>>, vector<256x256xbf16>
    %124 = arith.truncf %122 : vector<128x256xf32> to vector<128x256xbf16>
    %cst_47 = arith.constant dense<0.000000e+00> : vector<128x256xf32>
    %125 = tpu.matmul %124, %123, %cst_47 {dimension_numbers = #tpu.dot_dimension_numbers<[1], [0], [0], [1], [0, 0, 1, 1], [], []>} : vector<128x256xbf16>, vector<256x256xbf16>, vector<128x256xf32> -> vector<128x256xf32>
    %126 = vector.broadcast %101 : vector<1x256xf32> to vector<128x256xf32>
    %127 = arith.addf %125, %126 : vector<128x256xf32>
    %cst_48 = arith.constant 5.000000e-01 : f32
    %128 = vector.broadcast %cst_48 : f32 to vector<128x256xf32>
    %129 = arith.mulf %128, %127 : vector<128x256xf32>
    %cst_49 = arith.constant 0.707106769 : f32
    %130 = vector.broadcast %cst_49 : f32 to vector<128x256xf32>
    %131 = arith.mulf %127, %130 : vector<128x256xf32>
    %132 = math.erf %131 : vector<128x256xf32>
    %cst_50 = arith.constant 1.000000e+00 : f32
    %133 = vector.broadcast %cst_50 : f32 to vector<128x256xf32>
    %134 = arith.addf %133, %132 : vector<128x256xf32>
    %135 = arith.mulf %129, %134 : vector<128x256xf32>
    %136 = arith.addf %135, %98 : vector<128x256xf32>
    %137 = vector.extract_strided_slice %0 {offsets = [12, 0], sizes = [1, 256], strides = [1, 1]} : vector<16x256xf32> to vector<1x256xf32>
    %138 = vector.extract_strided_slice %0 {offsets = [13, 0], sizes = [1, 256], strides = [1, 1]} : vector<16x256xf32> to vector<1x256xf32>
    %139 = vector.extract_strided_slice %0 {offsets = [14, 0], sizes = [1, 256], strides = [1, 1]} : vector<16x256xf32> to vector<1x256xf32>
    %c896 = arith.constant 896 : index
    %c0_51 = arith.constant 0 : index
    %140 = vector.load %arg4[%c896, %c0_51] : memref<1664x256xbf16, #tpu.memory_space<vmem>>, vector<256x256xbf16>
    %141 = arith.truncf %136 : vector<128x256xf32> to vector<128x256xbf16>
    %cst_52 = arith.constant dense<0.000000e+00> : vector<128x256xf32>
    %142 = tpu.matmul %141, %140, %cst_52 {dimension_numbers = #tpu.dot_dimension_numbers<[1], [0], [0], [1], [0, 0, 1, 1], [], []>} : vector<128x256xbf16>, vector<256x256xbf16>, vector<128x256xf32> -> vector<128x256xf32>
    %143 = vector.broadcast %138 : vector<1x256xf32> to vector<128x256xf32>
    %144 = arith.addf %142, %143 : vector<128x256xf32>
    %cst_53 = arith.constant 5.000000e-01 : f32
    %145 = vector.broadcast %cst_53 : f32 to vector<128x256xf32>
    %146 = arith.mulf %145, %144 : vector<128x256xf32>
    %cst_54 = arith.constant 0.707106769 : f32
    %147 = vector.broadcast %cst_54 : f32 to vector<128x256xf32>
    %148 = arith.mulf %144, %147 : vector<128x256xf32>
    %149 = math.erf %148 : vector<128x256xf32>
    %cst_55 = arith.constant 1.000000e+00 : f32
    %150 = vector.broadcast %cst_55 : f32 to vector<128x256xf32>
    %151 = arith.addf %150, %149 : vector<128x256xf32>
    %152 = arith.mulf %146, %151 : vector<128x256xf32>
    %c768 = arith.constant 768 : index
    %c0_56 = arith.constant 0 : index
    %153 = vector.load %arg4[%c768, %c0_56] : memref<1664x256xbf16, #tpu.memory_space<vmem>>, vector<64x256xbf16>
    %cst_57 = arith.constant dense<0.000000e+00> : vector<128x256xf32>
    %154 = tpu.matmul %83, %153, %cst_57 {dimension_numbers = #tpu.dot_dimension_numbers<[1], [0], [0], [1], [0, 0, 1, 1], [], []>} : vector<128x64xbf16>, vector<64x256xbf16>, vector<128x256xf32> -> vector<128x256xf32>
    %c832 = arith.constant 832 : index
    %c0_58 = arith.constant 0 : index
    %155 = vector.load %arg4[%c832, %c0_58] : memref<1664x256xbf16, #tpu.memory_space<vmem>>, vector<64x256xbf16>
    %cst_59 = arith.constant dense<0.000000e+00> : vector<128x256xf32>
    %156 = tpu.matmul %92, %155, %cst_59 {dimension_numbers = #tpu.dot_dimension_numbers<[1], [0], [0], [1], [0, 0, 1, 1], [], []>} : vector<128x64xbf16>, vector<64x256xbf16>, vector<128x256xf32> -> vector<128x256xf32>
    %157 = arith.addf %154, %156 : vector<128x256xf32>
    %158 = vector.broadcast %137 : vector<1x256xf32> to vector<128x256xf32>
    %159 = arith.addf %157, %158 : vector<128x256xf32>
    %160 = arith.addf %152, %159 : vector<128x256xf32>
    %c1152 = arith.constant 1152 : index
    %c0_60 = arith.constant 0 : index
    %161 = vector.load %arg4[%c1152, %c0_60] : memref<1664x256xbf16, #tpu.memory_space<vmem>>, vector<256x256xbf16>
    %162 = arith.truncf %160 : vector<128x256xf32> to vector<128x256xbf16>
    %cst_61 = arith.constant dense<0.000000e+00> : vector<128x256xf32>
    %163 = tpu.matmul %162, %161, %cst_61 {dimension_numbers = #tpu.dot_dimension_numbers<[1], [0], [0], [1], [0, 0, 1, 1], [], []>} : vector<128x256xbf16>, vector<256x256xbf16>, vector<128x256xf32> -> vector<128x256xf32>
    %164 = vector.broadcast %139 : vector<1x256xf32> to vector<128x256xf32>
    %165 = arith.addf %163, %164 : vector<128x256xf32>
    %cst_62 = arith.constant 5.000000e-01 : f32
    %166 = vector.broadcast %cst_62 : f32 to vector<128x256xf32>
    %167 = arith.mulf %166, %165 : vector<128x256xf32>
    %cst_63 = arith.constant 0.707106769 : f32
    %168 = vector.broadcast %cst_63 : f32 to vector<128x256xf32>
    %169 = arith.mulf %165, %168 : vector<128x256xf32>
    %170 = math.erf %169 : vector<128x256xf32>
    %cst_64 = arith.constant 1.000000e+00 : f32
    %171 = vector.broadcast %cst_64 : f32 to vector<128x256xf32>
    %172 = arith.addf %171, %170 : vector<128x256xf32>
    %173 = arith.mulf %167, %172 : vector<128x256xf32>
    %174 = arith.addf %173, %136 : vector<128x256xf32>
    %c1408 = arith.constant 1408 : index
    %c0_65 = arith.constant 0 : index
    %175 = vector.load %arg4[%c1408, %c0_65] : memref<1664x256xbf16, #tpu.memory_space<vmem>>, vector<256x128xbf16>
    %176 = arith.truncf %174 : vector<128x256xf32> to vector<128x256xbf16>
    %cst_66 = arith.constant dense<0.000000e+00> : vector<128x128xf32>
    %177 = tpu.matmul %176, %175, %cst_66 {dimension_numbers = #tpu.dot_dimension_numbers<[1], [0], [0], [1], [0, 0, 1, 1], [], []>} : vector<128x256xbf16>, vector<256x128xbf16>, vector<128x128xf32> -> vector<128x128xf32>
    %178 = vector.broadcast %10 : vector<1x128xf32> to vector<128x128xf32>
    %179 = arith.addf %177, %178 : vector<128x128xf32>
    %c0_67 = arith.constant 0 : index
    %c0_68 = arith.constant 0 : index
    %180 = vector.load %arg7[%c0_67, %c0_68] : memref<128x128xf32, #tpu.memory_space<vmem>>, vector<128x128xf32>
    tpu.vector_store %arg7[%c0_67, %c0_68], %179 {strides = array<i32>} : memref<128x128xf32, #tpu.memory_space<vmem>>, vector<128x128xf32>,
    return
  }
  func.func @transform_0(%arg0: i32) -> (i32, i32) {
    %c0_i32 = arith.constant 0 : i32
    %c0_i32_0 = arith.constant 0 : i32
    return %arg0, %c0_i32 : i32, i32
  }
  func.func @transform_1(%arg0: i32) -> (i32, i32) {
    %c0_i32 = arith.constant 0 : i32
    %c0_i32_0 = arith.constant 0 : i32
    return %arg0, %c0_i32 : i32, i32
  }
  func.func @transform_2(%arg0: i32) -> (i32, i32) {
    %c0_i32 = arith.constant 0 : i32
    %c0_i32_0 = arith.constant 0 : i32
    return %arg0, %c0_i32 : i32, i32
  }
  func.func @transform_3(%arg0: i32) -> (i32, i32) {
    %c0_i32 = arith.constant 0 : i32
    %c0_i32_0 = arith.constant 0 : i32
    %c0_i32_1 = arith.constant 0 : i32
    return %c0_i32, %c0_i32_0 : i32, i32
  }
  func.func @transform_4(%arg0: i32) -> (i32, i32) {
    %c0_i32 = arith.constant 0 : i32
    %c0_i32_0 = arith.constant 0 : i32
    %c0_i32_1 = arith.constant 0 : i32
    return %c0_i32, %c0_i32_0 : i32, i32
  }
  func.func @transform_5(%arg0: i32) -> (i32, i32) {
    %c0_i32 = arith.constant 0 : i32
    %c0_i32_0 = arith.constant 0 : i32
    %c0_i32_1 = arith.constant 0 : i32
    return %c0_i32, %c0_i32_0 : i32, i32
  }
  func.func @transform_6(%arg0: i32) -> (i32, i32) {
    %c0_i32 = arith.constant 0 : i32
    %c0_i32_0 = arith.constant 0 : i32
    return %arg0, %c0_i32 : i32, i32
  }
}

</mosaic_0001>

<bundles_post_ra>
// kernel: fwd.1
= control target key start
LH: loop header
LB: loop body
LE: loop exit
PB: predicated region body
PF: predicated region fallthrough
CT: control target
= control target key end

     0   :  { %s6490_s21 = smov 0   ;;  %s9020_s0 = inlined_call_operand.vmem [shape: f32[256,128], index: 0, kind: input, shape index: {}]   ;;  %s9021_s1 = inlined_call_operand.vmem [shape: f32[256,1], index: 1, kind: input, shape index: {}]   ;;  %s9022_s2 = inlined_call_operand.vmem [shape: f32[256,1], index: 2, kind: input, shape index: {}]   ;;  %s9023_s3 = inlined_call_operand.vmem [shape: bf16[1664,256], index: 3, kind: input, shape index: {}]   ;;  %s9024_s4 = inlined_call_operand.vmem [shape: bf16[192,64], index: 4, kind: input, shape index: {}]   ;;  %s9025_s5 = inlined_call_operand.vmem [shape: f32[16,256], index: 5, kind: input, shape index: {}]   ;;  %s9026_s6 = inlined_call_operand.vmem [shape: f32[256,128], index: 6, kind: output, shape index: {}]  }
   0x1 LB: > { %s5139_s22 = sadd.s32 4294967295, %s6452_s21   ;;  %p5143_p0 = scmp.ge.s32.totalorder %s6452_s21, 1  ;;  %s6452_s21 = sphi %s6490_s21, %s16_s21  }
   0x2   : > { %p235_p1 = scmp.lt.s32.totalorder %s6452_s21, 3 }
   0x4   : > { %p236_p2 = pnand %p5143_p0, %p235_p1 }
   0x6   : > { %239 = sbr.rel (%p236_p2) target bundleno = 2194 (0x892), region = 44 }
   0xd   : > { %s5144_s23 = sshll.u32 %s5139_s22, 4  ;;  %v9027_v0 = vmov 0   ;;  %v5701_v15 = vld [vmem:[%s9024_s4] sm:$0xff]   ;;  %v5702_v18 = vld [vmem:[%s9024_s4 + $0x8] sm:$0xff]   ;;  %v6537_v35 = vld [vmem:[%s9024_s4 + $0x10] sm:$0xff]   ;;  %v399_v36 = vlaneseq  ;;  %vm547_vm0 = vcmask 261120  }
   0xe   : > { %5700 = vset.pattern.permute.xlu1 %v9027_v0  ;;  %5699 = vset.pattern.permute.xlu0 %v9027_v0  ;;  %p276_p3 = scmp.lt.s32.totalorder %s5144_s23, 31  ;;  %v6550_v39 = vld [vmem:[%s9025_s5] sm:$0xff]  ;;  %vm793_vm1 = vcmask 523264  }
   0xf   : > { %5530 = vmatprep.subr.bf16.mxu0 %v5701_v15  ;;  %5618 = vmatprep.subr.bf16.mxu1 %v6537_v35  ;;  %v6542_v37 = vshrl.u32 %v399_v36, 7 }
  0x10   : > { %s9226_s23 = smov (!%p276_p3, %s5144_s23), 31  ;;  %5531 = vmatpush3.bf16.msra.mxu0 %v5701_v15  ;;  %5622 = vmatpush3.bf16.msra.mxu1 %v6537_v35 }
  0x11   : > { %s6500_s24 = sshll.u32 %s9226_s23, 3  ;;  %5532 = vmatprep.subr.bf16.mxu0 %v5702_v18  ;;  %9093 = vst [vmem:[#allocation2_spill] sm:$0xff] %v6542_v37  ;;  %v6545_v38 = vsub.s32 0, %v6542_v37  ;;  %v6553_v40 = vsub.s32 1, %v6542_v37 }
  0x12   : > { %s285_s27 = scalar_lea.vmem %s9021_s1, %s6500_s24  ;;  %s6513_s8 = scalar_lea.vmem %s9022_s2, %s6500_s24 }
  0x13   : > { %v305_v1 = vld [vmem:[%s285_s27 + $0x10] sm:$0xff]  ;;  %v303_v2 = vld [vmem:[%s285_s27] sm:$0xff]  ;;  %v306_v3 = vld [vmem:[%s285_s27 + $0x18] sm:$0xff]  ;;  %v6557_v41 = vrot.slane %v6550_v39, %v6545_v38  ;;  %v6561_v42 = vrot.slane %v6550_v39, %v6553_v40  ;;  %s6944_s19 = scalar_lea.vmem %s9020_s0, %s6500_s24  ;;  %s8983_s18 = scalar_lea.vmem %s9026_s6, %s6500_s24 }
  0x14   : > { %331 = vperm.xlu1 %5700, %v305_v1   ;;  %321 = vperm.xlu0 %5699, %v303_v2   ;;  %v304_v4 = vld [vmem:[%s285_s27 + $0x8] sm:$0xff]  ;;  %v307_v6 = vld [vmem:[%s285_s27 + $0x20] sm:$0xff]  ;;  %v310_v7 = vld [vmem:[%s285_s27 + $0x38] sm:$0xff] }
  0x15   : > { %v308_v5 = vld [vmem:[%s285_s27 + $0x28] sm:$0xff]  ;;  %v309_v8 = vld [vmem:[%s285_s27 + $0x30] sm:$0xff]  ;;  %v311_v10 = vld [vmem:[%s285_s27 + $0x40] sm:$0xff]  ;;  %5533 = vmatpush3.bf16.msra.mxu0 %v5702_v18 }
  0x16   : > { %v312_v9 = vld [vmem:[%s285_s27 + $0x48] sm:$0xff]  ;;  %v314_v11 = vld [vmem:[%s285_s27 + $0x58] sm:$0xff]  ;;  %v313_v12 = vld [vmem:[%s285_s27 + $0x50] sm:$0xff]  ;;  %5550 = vmatprep.subr.bf16.mxu0 %v6537_v35 }
  0x17   : > { %v316_v13 = vld [vmem:[%s285_s27 + $0x68] sm:$0xff]  ;;  %v315_v14 = vld [vmem:[%s285_s27 + $0x60] sm:$0xff]  ;;  %v318_v16 = vld [vmem:[%s285_s27 + $0x78] sm:$0xff] }
  0x18   : > { %336 = vperm.xlu1 %5700, %v306_v3   ;;  %326 = vperm.xlu0 %5699, %v304_v4   ;;  %v317_v17 = vld [vmem:[%s285_s27 + $0x70] sm:$0xff]  ;;  %v916_v19 = vld [vmem:[%s6513_s8 + $0x8] sm:$0xff]  ;;  %v915_v20 = vld [vmem:[%s6513_s8] sm:$0xff] }
  0x19   : > { %v918_v21 = vld [vmem:[%s6513_s8 + $0x18] sm:$0xff]  ;;  %v917_v22 = vld [vmem:[%s6513_s8 + $0x10] sm:$0xff]  ;;  %v920_v23 = vld [vmem:[%s6513_s8 + $0x28] sm:$0xff] }
  0x1a   : > { %v919_v24 = vld [vmem:[%s6513_s8 + $0x20] sm:$0xff]  ;;  %v922_v25 = vld [vmem:[%s6513_s8 + $0x38] sm:$0xff]  ;;  %v921_v26 = vld [vmem:[%s6513_s8 + $0x30] sm:$0xff] }
  0x1b   : > { %v924_v27 = vld [vmem:[%s6513_s8 + $0x48] sm:$0xff]  ;;  %v923_v28 = vld [vmem:[%s6513_s8 + $0x40] sm:$0xff]  ;;  %v926_v29 = vld [vmem:[%s6513_s8 + $0x58] sm:$0xff] }
  0x1c   : > { %346 = vperm.xlu1 %5700, %v308_v5   ;;  %341 = vperm.xlu0 %5699, %v307_v6   ;;  %v925_v30 = vld [vmem:[%s6513_s8 + $0x50] sm:$0xff]  ;;  %v928_v31 = vld [vmem:[%s6513_s8 + $0x68] sm:$0xff]  ;;  %v927_v32 = vld [vmem:[%s6513_s8 + $0x60] sm:$0xff] }
  0x1d   : > { %v930_v33 = vld [vmem:[%s6513_s8 + $0x78] sm:$0xff]  ;;  %v929_v34 = vld [vmem:[%s6513_s8 + $0x70] sm:$0xff] }
  0x20   : > { %356 = vperm.xlu1 %5700, %v310_v7   ;;  %351 = vperm.xlu0 %5699, %v309_v8  }
  0x24   : > { %366 = vperm.xlu1 %5700, %v312_v9   ;;  %361 = vperm.xlu0 %5699, %v311_v10  }
  0x28   : > { %376 = vperm.xlu1 %5700, %v314_v11   ;;  %371 = vperm.xlu0 %5699, %v313_v12  }
  0x2c   : > { %386 = vperm.xlu1 %5700, %v316_v13   ;;  %381 = vperm.xlu0 %5699, %v315_v14  }
  0x30   : > { %396 = vperm.xlu1 %5700, %v318_v16   ;;  %391 = vperm.xlu0 %5699, %v317_v17  }
  0x34   : > { %938 = vperm.xlu1 %5700, %v916_v19   ;;  %933 = vperm.xlu0 %5699, %v915_v20  }
  0x38   : > { %948 = vperm.xlu1 %5700, %v918_v21   ;;  %943 = vperm.xlu0 %5699, %v917_v22  }
  0x3c   : > { %958 = vperm.xlu1 %5700, %v920_v23   ;;  %953 = vperm.xlu0 %5699, %v919_v24  }
  0x40   : > { %968 = vperm.xlu1 %5700, %v922_v25   ;;  %963 = vperm.xlu0 %5699, %v921_v26  }
  0x44   : > { %978 = vperm.xlu1 %5700, %v924_v27   ;;  %973 = vperm.xlu0 %5699, %v923_v28  }
  0x48   : > { %988 = vperm.xlu1 %5700, %v926_v29   ;;  %983 = vperm.xlu0 %5699, %v925_v30  }
  0x4c   : > { %998 = vperm.xlu1 %5700, %v928_v31   ;;  %993 = vperm.xlu0 %5699, %v927_v32  }
  0x50   : > { %1008 = vperm.xlu1 %5700, %v930_v33   ;;  %1003 = vperm.xlu0 %5699, %v929_v34  }
  0x93   : > { %v332_v43 = vpop.permute.xlu1 %331  ;;  %v322_v44 = vpop.permute.xlu0 %321 }
  0x94   : > { %v405_v45 = vmul.f32 %v6557_v41, %v332_v43  ;;  %v403_v46 = vmul.f32 %v6557_v41, %v322_v44 }
  0x96   : > { %v425_v47 = vadd.f32 %v6561_v42, %v405_v45  ;;  %v423_v48 = vadd.f32 %v6561_v42, %v403_v46 }
  0x97   : > { %v337_v49 = vpop.permute.xlu1 %336  ;;  %v327_v50 = vpop.permute.xlu0 %326 }
  0x98   : > { %v457_v51 = vmul.f32 0.70710677, %v425_v47  ;;  %v455_v52 = vmul.f32 0.70710677, %v423_v48  ;;  %v406_v53 = vmul.f32 %v6557_v41, %v337_v49  ;;  %v404_v54 = vmul.f32 %v6557_v41, %v327_v50 }
  0x99   : > { %v441_v20 = vmul.f32 0.5, %v425_v47  ;;  %v439_v23 = vmul.f32 0.5, %v423_v48 }
  0x9a   : > { %v426_v55 = vadd.f32 %v6561_v42, %v406_v53  ;;  %v424_v56 = vadd.f32 %v6561_v42, %v404_v54  ;;  %5993 = verf.f32 %v457_v51 }
  0x9b   : > { %v347_v57 = vpop.permute.xlu1 %346  ;;  %v342_v58 = vpop.permute.xlu0 %341  ;;  %5995 = verf.f32 %v455_v52 }
  0x9c   : > { %v408_v59 = vmul.f32 %v6557_v41, %v347_v57  ;;  %v407_v60 = vmul.f32 %v6557_v41, %v342_v58  ;;  %v458_v61 = vmul.f32 0.70710677, %v426_v55  ;;  %v456_v62 = vmul.f32 0.70710677, %v424_v56 }
  0x9d   : > { %v442_v24 = vmul.f32 0.5, %v426_v55  ;;  %v440_v33 = vmul.f32 0.5, %v424_v56 }
  0x9e   : > { %v428_v63 = vadd.f32 %v6561_v42, %v408_v59  ;;  %v427_v1 = vadd.f32 %v6561_v42, %v407_v60  ;;  %5997 = verf.f32 %v458_v61 }
  0x9f   : > { %v357_v2 = vpop.permute.xlu1 %356  ;;  %v352_v3 = vpop.permute.xlu0 %351  ;;  %5999 = verf.f32 %v456_v62 }
  0xa0   : > { %v460_v4 = vmul.f32 0.70710677, %v428_v63  ;;  %v459_v5 = vmul.f32 0.70710677, %v427_v1  ;;  %v410_v6 = vmul.f32 %v6557_v41, %v357_v2  ;;  %v409_v7 = vmul.f32 %v6557_v41, %v352_v3 }
  0xa1   : > { %v444_v49 = vmul.f32 0.5, %v428_v63  ;;  %v443_v55 = vmul.f32 0.5, %v427_v1 }
  0xa2   : > { %6001 = verf.f32 %v460_v4  ;;  %v430_v8 = vadd.f32 %v6561_v42, %v410_v6  ;;  %v6579_v9 = vadd.f32 %v6561_v42, %v409_v7 }
  0xa3   : > { %6003 = verf.f32 %v459_v5  ;;  %v367_v10 = vpop.permute.xlu1 %366  ;;  %v362_v11 = vpop.permute.xlu0 %361 }
  0xa4   : > { %v412_v12 = vmul.f32 %v6557_v41, %v367_v10  ;;  %v411_v13 = vmul.f32 %v6557_v41, %v362_v11  ;;  %v462_v14 = vmul.f32 0.70710677, %v430_v8  ;;  %v5994_v15 = vpop.eup %5993  ;;  %v461_v16 = vmul.f32 0.70710677, %v6579_v9 }
  0xa5   : > { %v5996_v19 = vpop.eup %5995  ;;  %v489_v27 = vadd.f32 1.0, %v5994_v15  ;;  %v446_v7 = vmul.f32 0.5, %v430_v8 }
  0xa6   : > { %v6585_v17 = vadd.f32 %v6561_v42, %v412_v12  ;;  %v6588_v18 = vadd.f32 %v6561_v42, %v411_v13  ;;  %6005 = verf.f32 %v462_v14  ;;  %v487_v34 = vadd.f32 1.0, %v5996_v19 }
  0xa7   : > { %v377_v21 = vpop.permute.xlu1 %376  ;;  %v372_v22 = vpop.permute.xlu0 %371  ;;  %6007 = verf.f32 %v461_v16  ;;  %v505_v53 = vmul.f32 %v489_v27, %v441_v20  ;;  %v445_v19 = vmul.f32 0.5, %v6579_v9 }
  0xa8   : > { %v464_v25 = vmul.f32 0.70710677, %v6585_v17  ;;  %v5998_v26 = vpop.eup %5997  ;;  %v463_v28 = vmul.f32 0.70710677, %v6588_v18  ;;  %v414_v29 = vmul.f32 %v6557_v41, %v377_v21  ;;  %v413_v30 = vmul.f32 %v6557_v41, %v372_v22 }
  0xa9   : > { %v6000_v31 = vpop.eup %5999  ;;  %v490_v32 = vadd.f32 1.0, %v5998_v26  ;;  %v503_v63 = vmul.f32 %v487_v34, %v439_v23  ;;  %v448_v26 = vmul.f32 0.5, %v6585_v17  ;;  %v447_v9 = vmul.f32 0.5, %v6588_v18 }
  0xaa   : > { %6009 = verf.f32 %v464_v25  ;;  %v6595_v36 = vadd.f32 %v6561_v42, %v414_v29  ;;  %v6598_v43 = vadd.f32 %v6561_v42, %v413_v30  ;;  %v488_v46 = vadd.f32 1.0, %v6000_v31 }
  0xab   : > { %6011 = verf.f32 %v463_v28  ;;  %v387_v44 = vpop.permute.xlu1 %386  ;;  %v382_v45 = vpop.permute.xlu0 %381  ;;  %v506_v48 = vmul.f32 %v490_v32, %v442_v24 }
  0xac   : > { %v6002_v47 = vpop.eup %6001  ;;  %v416_v50 = vmul.f32 %v6557_v41, %v387_v44  ;;  %v415_v51 = vmul.f32 %v6557_v41, %v382_v45  ;;  %v466_v56 = vmul.f32 0.70710677, %v6595_v36  ;;  %v465_v58 = vmul.f32 0.70710677, %v6598_v43 }
  0xad   : > { %v6004_v52 = vpop.eup %6003  ;;  %v492_v54 = vadd.f32 1.0, %v6002_v47  ;;  %v504_v2 = vmul.f32 %v488_v46, %v440_v33  ;;  %v524_v6 = vpack.c.bf16 %v506_v48, %v505_v53  ;;  %v450_v34 = vmul.f32 0.5, %v6595_v36 }
  0xae   : > { %v491_v57 = vadd.f32 1.0, %v6004_v52  ;;  %v436_v59 = vadd.f32 %v6561_v42, %v416_v50  ;;  %v435_v60 = vadd.f32 %v6561_v42, %v415_v51  ;;  %6013 = verf.f32 %v466_v56 }
  0xaf   : > { %v508_v61 = vmul.f32 %v492_v54, %v444_v49  ;;  %v397_v62 = vpop.permute.xlu1 %396  ;;  %v392_v3 = vpop.permute.xlu0 %391  ;;  %6015 = verf.f32 %v465_v58  ;;  %v523_v12 = vpack.c.bf16 %v504_v2, %v503_v63  ;;  %v449_v45 = vmul.f32 0.5, %v6598_v43 }
  0xb0   : > { %v507_v4 = vmul.f32 %v491_v57, %v443_v55  ;;  %v468_v5 = vmul.f32 0.70710677, %v436_v59  ;;  %v6006_v1 = vpop.eup %6005  ;;  %v467_v10 = vmul.f32 0.70710677, %v435_v60  ;;  %v418_v11 = vmul.f32 %v6557_v41, %v397_v62 }
  0xb1   : > { %v6008_v13 = vpop.eup %6007  ;;  %v494_v14 = vadd.f32 1.0, %v6006_v1  ;;  %v417_v15 = vmul.f32 %v6557_v41, %v392_v3  ;;  %5534 = vmatprep.mubr.msk.bf16.mxu0 %vm547_vm0, %v523_v12  ;;  %v452_v49 = vmul.f32 0.5, %v436_v59  ;;  %v451_v51 = vmul.f32 0.5, %v435_v60  ;;  %v5704_v60 = vld [vmem:[%s9024_s4 + $0x18] sm:$0xff]   ;;  %v5705_v3 = vld [vmem:[%s9024_s4 + $0x20] sm:$0xff]  }
  0xb2   : > { %6017 = verf.f32 %v468_v5  ;;  %v525_v16 = vpack.c.bf16 %v508_v61, %v507_v4  ;;  %v493_v20 = vadd.f32 1.0, %v6008_v13  ;;  %v438_v21 = vadd.f32 %v6561_v42, %v418_v11  ;;  %5535 = vmatmul.mubr.msk.bf16.vlgmr.msra.gmra.mrb[0].mxu0 %vm547_vm0, %v524_v6  ;;  %5619 = vmatprep.subr.bf16.mxu1 %v5704_v60  ;;  %v5706_v4 = vld [vmem:[%s9024_s4 + $0x28] sm:$0xff]   ;;  %v6636_v5 = vld [vmem:[%s9024_s4 + $0x30] sm:$0xff]  }
  0xb3   : > { %6019 = verf.f32 %v467_v10  ;;  %v510_v8 = vmul.f32 %v494_v14, %v446_v7  ;;  %v437_v23 = vadd.f32 %v6561_v42, %v417_v15  ;;  %5551 = vmatpush3.bf16.msra.mxu0 %v6537_v35  ;;  %5623 = vmatpush3.bf16.msra.mxu1 %v5704_v60  ;;  %v939_v6 = vpop.permute.xlu1 %938  ;;  %v934_v1 = vpop.permute.xlu0 %933  ;;  %v6640_v7 = vsub.s32 4, %v6542_v37 }
  0xb4   : > { %v6010_v22 = vpop.eup %6009  ;;  %v509_v25 = vmul.f32 %v493_v20, %v445_v19  ;;  %v470_v27 = vmul.f32 0.70710677, %v438_v21  ;;  %5538 = vmatprep.mubr.msk.bf16.mxu0 %vm547_vm0, %v525_v16  ;;  %v454_v57 = vmul.f32 0.5, %v438_v21  ;;  %5552 = vmatprep.subr.bf16.mxu0 %v5704_v60  ;;  %v6647_v13 = vsub.s32 5, %v6542_v37 }
  0xb5   : > { %v6012_v24 = vpop.eup %6011  ;;  %v496_v41 = vadd.f32 1.0, %v6010_v22  ;;  %v469_v29 = vmul.f32 0.70710677, %v437_v23  ;;  %v453_v61 = vmul.f32 0.5, %v437_v23  ;;  %5620 = vmatprep.subr.bf16.mxu1 %v5705_v3  ;;  %9094 = vst [vmem:[#allocation3_spill] sm:$0xff] %v6640_v7  ;;  %v6644_v12 = vrot.slane %v6550_v39, %v6640_v7 }
  0xb6   : > { %v495_v28 = vadd.f32 1.0, %v6012_v24  ;;  %6021 = verf.f32 %v470_v27  ;;  %v526_v42 = vpack.c.bf16 %v510_v8, %v509_v25  ;;  %9095 = vst [vmem:[#allocation4_spill] sm:$0xff] %v6647_v13  ;;  %v6651_v15 = vrot.slane %v6550_v39, %v6647_v13 }
  0xb7   : > { %v512_v30 = vmul.f32 %v496_v41, %v448_v26  ;;  %6023 = verf.f32 %v469_v29  ;;  %5553 = vmatpush3.bf16.msra.mxu0 %v5704_v60  ;;  %5624 = vmatpush3.bf16.msra.mxu1 %v5705_v3  ;;  %v949_v10 = vpop.permute.xlu1 %948  ;;  %v944_v11 = vpop.permute.xlu0 %943  ;;  %v1016_v16 = vmul.f32 %v6644_v12, %v939_v6  ;;  %v1015_v20 = vmul.f32 %v6644_v12, %v934_v1 }
  0xb8   : > { %v511_v31 = vmul.f32 %v495_v28, %v447_v9  ;;  %v6014_v32 = vpop.eup %6013  ;;  %5554 = vmatprep.subr.bf16.mxu0 %v5705_v3  ;;  %5621 = vmatprep.subr.bf16.mxu1 %v5706_v4  ;;  %v1018_v22 = vmul.f32 %v6644_v12, %v949_v10  ;;  %v1017_v23 = vmul.f32 %v6644_v12, %v944_v11  ;;  %v6663_v28 = vsub.s32 2, %v6542_v37 }
  0xb9   : > { %v6016_v33 = vpop.eup %6015  ;;  %v498_v17 = vadd.f32 1.0, %v6014_v32  ;;  %v1036_v21 = vadd.f32 %v6651_v15, %v1016_v16  ;;  %v1035_v8 = vadd.f32 %v6651_v15, %v1015_v20 }
  0xba   : > { %v527_v44 = vpack.c.bf16 %v512_v30, %v511_v31  ;;  %v497_v46 = vadd.f32 1.0, %v6016_v33  ;;  %5539 = vmatmul.mubr.msk.bf16.gmra.mrb[4].mxu0 %vm547_vm0, %v526_v42  ;;  %v1038_v9 = vadd.f32 %v6651_v15, %v1018_v22  ;;  %v1037_v30 = vadd.f32 %v6651_v15, %v1017_v23 }
  0xbb   : > { %v514_v35 = vmul.f32 %v498_v17, %v450_v34  ;;  %5555 = vmatpush3.bf16.msra.mxu0 %v5705_v3  ;;  %5625 = vmatpush3.bf16.msra.mxu1 %v5706_v4  ;;  %v959_v14 = vpop.permute.xlu1 %958  ;;  %v954_v19 = vpop.permute.xlu0 %953  ;;  %v1068_v27 = vmul.f32 0.70710677, %v1036_v21  ;;  %v1067_v29 = vmul.f32 0.70710677, %v1035_v8  ;;  %v1052_v10 = vmul.f32 0.5, %v1036_v21 }
  0xbc   : > { %v6018_v47 = vpop.eup %6017  ;;  %v513_v48 = vmul.f32 %v497_v46, %v449_v45  ;;  %5542 = vmatprep.mubr.msk.bf16.mxu0 %vm547_vm0, %v527_v44  ;;  %5556 = vmatprep.subr.bf16.mxu0 %v5706_v4  ;;  %v1020_v25 = vmul.f32 %v6644_v12, %v959_v14  ;;  %v1019_v41 = vmul.f32 %v6644_v12, %v954_v19  ;;  %v1070_v33 = vmul.f32 0.70710677, %v1038_v9 }
  0xbd   : > { %v6020_v18 = vpop.eup %6019  ;;  %v500_v50 = vadd.f32 1.0, %v6018_v47  ;;  %6025 = verf.f32 %v1068_v27  ;;  %v6675_v44 = vrot.slane %v6550_v39, %v6663_v28  ;;  %v1069_v45 = vmul.f32 0.70710677, %v1037_v30 }
  0xbe   : > { %v499_v52 = vadd.f32 1.0, %v6020_v18  ;;  %v528_v36 = vpack.c.bf16 %v514_v35, %v513_v48  ;;  %v6667_v31 = vadd.f32 %v6651_v15, %v1020_v25  ;;  %v6670_v42 = vadd.f32 %v6651_v15, %v1019_v41 }
  0xbf   : > { %v516_v53 = vmul.f32 %v500_v50, %v452_v49  ;;  %5557 = vmatpush3.bf16.msra.mxu0 %v5706_v4  ;;  %v969_v24 = vpop.permute.xlu1 %968  ;;  %v964_v26 = vpop.permute.xlu0 %963  ;;  %6027 = verf.f32 %v1067_v29  ;;  %v1051_v11 = vmul.f32 0.5, %v1035_v8  ;;  %v6714_v19 = vmul.f32 0.5, %v1038_v9 }
  0xc0   : > { %v515_v54 = vmul.f32 %v499_v52, %v451_v51  ;;  %v6022_v55 = vpop.eup %6021  ;;  %5574 = vmatprep.subr.bf16.mxu0 %v6636_v5  ;;  %v1022_v34 = vmul.f32 %v6644_v12, %v969_v24  ;;  %v1021_v46 = vmul.f32 %v6644_v12, %v964_v26  ;;  %v1072_v47 = vmul.f32 0.70710677, %v6667_v31 }
  0xc1   : > { %v6024_v56 = vpop.eup %6023  ;;  %v502_v43 = vadd.f32 1.0, %v6022_v55  ;;  %v1071_v18 = vmul.f32 0.70710677, %v6670_v42  ;;  %6029 = verf.f32 %v1070_v33  ;;  %v6720_v25 = vmul.f32 0.5, %v1037_v30 }
  0xc2   : > { %v529_v58 = vpack.c.bf16 %v516_v53, %v515_v54  ;;  %v501_v62 = vadd.f32 1.0, %v6024_v56  ;;  %5543 = vmatmul.mubr.msk.bf16.gmra.mrb[8].mxu0 %vm547_vm0, %v528_v36  ;;  %v6683_v50 = vadd.f32 %v6651_v15, %v1022_v34  ;;  %6031 = verf.f32 %v1069_v45 }
  0xc3   : > { %v518_v63 = vmul.f32 %v502_v43, %v454_v57  ;;  %v979_v32 = vpop.permute.xlu1 %978  ;;  %v974_v17 = vpop.permute.xlu0 %973  ;;  %v6689_v52 = vadd.f32 %v6651_v15, %v1021_v46  ;;  %6033 = verf.f32 %v1072_v47 }
  0xc4   : > { %v517_v2 = vmul.f32 %v501_v62, %v453_v61  ;;  %5546 = vmatprep.mubr.msk.bf16.mxu0 %vm547_vm0, %v529_v58  ;;  %v1024_v35 = vmul.f32 %v6644_v12, %v979_v32  ;;  %v1023_v48 = vmul.f32 %v6644_v12, %v974_v17  ;;  %6035 = verf.f32 %v1071_v18 }
  0xc6   : > { %v530_v59 = vpack.c.bf16 %v518_v63, %v517_v2  ;;  %v6695_v36 = vadd.f32 %v6651_v15, %v1024_v35  ;;  %v6702_v43 = vadd.f32 %v6651_v15, %v1023_v48  ;;  %v1074_v63 = vmul.f32 0.70710677, %v6683_v50 }
  0xc7   : > { %v989_v58 = vpop.permute.xlu1 %988  ;;  %v6026_v3 = vpop.eup %6025 }
  0xc8   : > { %v1076_v4 = vmul.f32 0.70710677, %v6695_v36  ;;  %v984_v6 = vpop.permute.xlu0 %983  ;;  %v1075_v14 = vmul.f32 0.70710677, %v6702_v43  ;;  %v1026_v20 = vmul.f32 %v6644_v12, %v989_v58  ;;  %v1100_v24 = vadd.f32 1.0, %v6026_v3 }
  0xc9   : > { %v6028_v1 = vpop.eup %6027  ;;  %v1025_v30 = vmul.f32 %v6644_v12, %v984_v6 }
  0xca   : > { %5547 = vmatmul.mubr.msk.bf16.gmra.mrb[12].mxu0 %vm547_vm0, %v530_v59  ;;  %v1073_v59 = vmul.f32 0.70710677, %v6689_v52  ;;  %v1099_v27 = vadd.f32 1.0, %v6028_v1  ;;  %v6737_v46 = vadd.f32 %v6651_v15, %v1026_v20 }
  0xcb   : > { %v999_v26 = vpop.permute.xlu1 %998  ;;  %v6030_v41 = vpop.eup %6029 }
  0xcc   : > { %v6032_v33 = vpop.eup %6031  ;;  %v1028_v47 = vmul.f32 %v6644_v12, %v999_v26  ;;  %v994_v35 = vpop.permute.xlu0 %993  ;;  %v6752_v58 = vmul.f32 %v1099_v27, %v1051_v11  ;;  %v1078_v3 = vmul.f32 0.70710677, %v6737_v46 }
  0xcd   : > { %v6734_v45 = vpop.eup %6033 }
  0xce   : > { %v6741_v48 = vpop.eup %6035 }
 0x185   : > { %v5536_v49 = vpop.f32.mrb[0].mxu0 }
 0x186   : > { %v6686_v39 = vadd.f32 %v5536_v49, %v6675_v44  ;;  %v606_v51 = vpop.f32.mrb[1].mxu0  ;;  %v6744_v49 = vmul.f32 0.5, %v6667_v31  ;;  %v1027_v31 = vmul.f32 %v6644_v12, %v994_v35 }
 0x187   : > { %v6692_v53 = vadd.f32 %v606_v51, %v6675_v44  ;;  %v5537_v54 = vpop.f32.mrb[2].mxu0  ;;  %v6747_v51 = vmul.f32 0.5, %v6670_v42 }
 0x188   : > { %v687_v55 = vmul.f32 0.70710677, %v6686_v39  ;;  %v6699_v56 = vadd.f32 %v5537_v54, %v6675_v44  ;;  %v609_v57 = vpop.f32.mrb[3].mxu0 }
 0x189   : > { %v685_v61 = vmul.f32 0.70710677, %v6692_v53  ;;  %v6706_v62 = vadd.f32 %v609_v57, %v6675_v44  ;;  %v6750_v57 = vmul.f32 %v1100_v24, %v1052_v10 }
 0x18a   : > { %6037 = verf.f32 %v687_v55  ;;  %v688_v2 = vmul.f32 0.70710677, %v6699_v56 }
 0x18b   : > { %6039 = verf.f32 %v685_v61  ;;  %v686_v60 = vmul.f32 0.70710677, %v6706_v62  ;;  %v6754_v61 = vadd.f32 1.0, %v6030_v41  ;;  %v670_v41 = vmul.f32 0.5, %v6706_v62 }
 0x18c   : > { %6041 = verf.f32 %v688_v2  ;;  %v6757_v2 = vadd.f32 %v6651_v15, %v1025_v30 }
 0x18d   : > { %6043 = verf.f32 %v686_v60  ;;  %v5540_v16 = vpop.f32.mrb[4].mxu0 }
 0x18e   : > { %6045 = verf.f32 %v1074_v63  ;;  %v6718_v22 = vadd.f32 %v5540_v16, %v6675_v44  ;;  %v622_v23 = vpop.f32.mrb[5].mxu0  ;;  %v672_v16 = vmul.f32 0.5, %v6699_v56 }
 0x18f   : > { %6047 = verf.f32 %v1073_v59  ;;  %v6723_v21 = vadd.f32 %v622_v23, %v6675_v44  ;;  %v5541_v8 = vpop.f32.mrb[6].mxu0 }
 0x190   : > { %6049 = verf.f32 %v1076_v4  ;;  %v691_v9 = vmul.f32 0.70710677, %v6718_v22  ;;  %v6727_v29 = vadd.f32 %v5541_v8, %v6675_v44  ;;  %v625_v32 = vpop.f32.mrb[7].mxu0  ;;  %v6762_v4 = vadd.f32 %v6651_v15, %v1028_v47 }
 0x191   : > { %6051 = verf.f32 %v1075_v14  ;;  %v689_v34 = vmul.f32 0.70710677, %v6723_v21  ;;  %v6732_v17 = vadd.f32 %v625_v32, %v6675_v44  ;;  %v671_v14 = vmul.f32 0.5, %v6686_v39 }
 0x192   : > { %6053 = verf.f32 %v691_v9  ;;  %v692_v18 = vmul.f32 0.70710677, %v6727_v29  ;;  %v669_v8 = vmul.f32 0.5, %v6692_v53 }
 0x193   : > { %6055 = verf.f32 %v689_v34  ;;  %v690_v54 = vmul.f32 0.70710677, %v6732_v17 }
 0x194   : > { %v6038_v55 = vpop.eup %6037  ;;  %6057 = verf.f32 %v692_v18 }
 0x195   : > { %v6040_v63 = vpop.eup %6039  ;;  %v719_v59 = vadd.f32 1.0, %v6038_v55  ;;  %6059 = verf.f32 %v690_v54  ;;  %v5544_v42 = vpop.f32.mrb[8].mxu0 }
 0x196   : > { %v6042_v60 = vpop.eup %6041  ;;  %v717_v6 = vadd.f32 1.0, %v6040_v63  ;;  %v6765_v1 = vadd.f32 %v5544_v42, %v6675_v44  ;;  %v638_v10 = vpop.f32.mrb[9].mxu0  ;;  %v6791_v42 = vadd.f32 1.0, %v6032_v33  ;;  %v1080_v33 = vmul.f32 0.70710677, %v6762_v4 }
 0x197   : > { %v6044_v11 = vpop.eup %6043  ;;  %v720_v20 = vadd.f32 1.0, %v6042_v60  ;;  %v6770_v23 = vadd.f32 %v638_v10, %v6675_v44  ;;  %v5545_v24 = vpop.f32.mrb[10].mxu0  ;;  %v735_v39 = vmul.f32 %v719_v59, %v671_v14  ;;  %v6796_v14 = vadd.f32 %v6651_v15, %v1027_v31 }
 0x198   : > { %v6772_v26 = vpop.eup %6045  ;;  %v718_v27 = vadd.f32 1.0, %v6044_v11  ;;  %v695_v9 = vmul.f32 0.70710677, %v6765_v1  ;;  %v641_v32 = vpop.f32.mrb[11].mxu0  ;;  %v6781_v47 = vadd.f32 %v5545_v24, %v6675_v44  ;;  %v733_v18 = vmul.f32 %v717_v6, %v669_v8  ;;  %v5708_v24 = vld [vmem:[%s9024_s4 + $0x38] sm:$0xff]  }
 0x199   : > { %v6777_v30 = vpop.eup %6047  ;;  %v736_v34 = vmul.f32 %v720_v20, %v672_v16  ;;  %v693_v56 = vmul.f32 0.70710677, %v6770_v23  ;;  %v6786_v53 = vadd.f32 %v641_v32, %v6675_v44  ;;  %v1077_v11 = vmul.f32 0.70710677, %v6757_v2 }
 0x19a   : > { %v6783_v35 = vpop.eup %6049  ;;  %v734_v54 = vmul.f32 %v718_v27, %v670_v41  ;;  %6061 = verf.f32 %v695_v9  ;;  %v696_v63 = vmul.f32 0.70710677, %v6781_v47  ;;  %v675_v9 = vmul.f32 0.5, %v6718_v22 }
 0x19b   : > { %v6788_v62 = vpop.eup %6051  ;;  %v758_v55 = vpack.c.bf16 %v736_v34, %v735_v39  ;;  %6063 = verf.f32 %v693_v56  ;;  %v694_v10 = vmul.f32 0.70710677, %v6786_v53  ;;  %v676_v32 = vmul.f32 0.5, %v6727_v29 }
 0x19c   : > { %v6054_v59 = vpop.eup %6053  ;;  %6065 = verf.f32 %v1078_v3  ;;  %v757_v60 = vpack.c.bf16 %v734_v54, %v733_v18  ;;  %v1009_v18 = vpop.permute.xlu1 %1008  ;;  %v673_v54 = vmul.f32 0.5, %v6723_v21 }
 0x19d   : > { %v6056_v6 = vpop.eup %6055  ;;  %v723_v16 = vadd.f32 1.0, %v6054_v59  ;;  %6067 = verf.f32 %v696_v63  ;;  %v5548_v20 = vpop.f32.mrb[12].mxu0  ;;  %v674_v63 = vmul.f32 0.5, %v6732_v17  ;;  %v1030_v17 = vmul.f32 %v6644_v12, %v1009_v18 }
 0x19e   : > { %v6058_v8 = vpop.eup %6057  ;;  %v721_v3 = vadd.f32 1.0, %v6056_v6  ;;  %6069 = verf.f32 %v694_v10  ;;  %v6803_v41 = vadd.f32 %v5548_v20, %v6675_v44  ;;  %v654_v27 = vpop.f32.mrb[13].mxu0  ;;  %5558 = vmatprep.mubr.msk.bf16.mxu0 %vm793_vm1, %v757_v60  ;;  %v1135_v18 = vpack.c.bf16 %v6750_v57, %v6752_v58 }
 0x19f   : > { %v6060_v31 = vpop.eup %6059  ;;  %v724_v39 = vadd.f32 1.0, %v6058_v8  ;;  %v6809_v34 = vadd.f32 %v654_v27, %v6675_v44  ;;  %v5549_v56 = vpop.f32.mrb[14].mxu0  ;;  %5559 = vmatmul.mubr.msk.bf16.vlgmr.msra.gmra.mrb[16].mxu0 %vm793_vm1, %v758_v55  ;;  %v739_v29 = vmul.f32 %v723_v16, %v675_v9 }
 0x1a0   : > { %v722_v59 = vadd.f32 1.0, %v6060_v31  ;;  %v699_v60 = vmul.f32 0.70710677, %v6803_v41  ;;  %5575 = vmatpush3.bf16.msra.mxu0 %v6636_v5  ;;  %v657_v22 = vpop.f32.mrb[15].mxu0  ;;  %v1004_v10 = vpop.permute.xlu0 %1003  ;;  %v6818_v8 = vadd.f32 %v5549_v56, %v6675_v44  ;;  %v737_v55 = vmul.f32 %v721_v3, %v673_v54 }
 0x1a1   : > { %v740_v6 = vmul.f32 %v724_v39, %v676_v32  ;;  %v697_v20 = vmul.f32 0.70710677, %v6809_v34  ;;  %5576 = vmatprep.subr.bf16.mxu0 %v5708_v24  ;;  %v6821_v21 = vadd.f32 %v657_v22, %v6675_v44  ;;  %v1029_v9 = vmul.f32 %v6644_v12, %v1004_v10 }
 0x1a2   : > { %v738_v27 = vmul.f32 %v722_v59, %v674_v63  ;;  %6071 = verf.f32 %v699_v60  ;;  %v700_v5 = vmul.f32 0.70710677, %v6818_v8  ;;  %v1118_v56 = vmul.f32 %v6754_v61, %v6714_v19 }
 0x1a3   : > { %v760_v31 = vpack.c.bf16 %v740_v6, %v739_v29  ;;  %6073 = verf.f32 %v697_v20  ;;  %v698_v39 = vmul.f32 0.70710677, %v6821_v21  ;;  %v1079_v44 = vmul.f32 0.70710677, %v6796_v14 }
 0x1a4   : > { %v6062_v16 = vpop.eup %6061  ;;  %6075 = verf.f32 %v1077_v11  ;;  %v759_v32 = vpack.c.bf16 %v738_v27, %v737_v55  ;;  %5577 = vmatpush3.bf16.msra.mxu0 %v5708_v24  ;;  %v1104_v11 = vadd.f32 1.0, %v6734_v45  ;;  %v1103_v12 = vadd.f32 1.0, %v6741_v48 }
 0x1a5   : > { %v6064_v3 = vpop.eup %6063  ;;  %6077 = verf.f32 %v700_v5  ;;  %v727_v63 = vadd.f32 1.0, %v6062_v16  ;;  %v1117_v19 = vmul.f32 %v6791_v42, %v6720_v25  ;;  %v6840_v61 = vadd.f32 %v6651_v15, %v1030_v17 }
 0x1a6   : > { %v6832_v54 = vpop.eup %6065  ;;  %6079 = verf.f32 %v698_v39  ;;  %5562 = vmatprep.mubr.msk.bf16.mxu0 %vm793_vm1, %v759_v32  ;;  %v725_v57 = vadd.f32 1.0, %v6064_v3  ;;  %v6844_v45 = vadd.f32 %v6651_v15, %v1029_v9  ;;  %v679_v48 = vmul.f32 0.5, %v6765_v1 }
 0x1a7   : > { %v6068_v24 = vpop.eup %6067  ;;  %6081 = verf.f32 %v1080_v33  ;;  %5563 = vmatmul.mubr.msk.bf16.gmra.mrb[20].mxu0 %vm793_vm1, %v760_v31  ;;  %v680_v59 = vmul.f32 0.5, %v6781_v47  ;;  %v677_v25 = vmul.f32 0.5, %v6770_v23  ;;  %v678_v42 = vmul.f32 0.5, %v6786_v53 }
 0x1a8   : > { %v6070_v58 = vpop.eup %6069  ;;  %v728_v60 = vadd.f32 1.0, %v6068_v24  ;;  %5578 = vmatprep.mubr.msk.bf16.mxu0 %vm547_vm0, %v1135_v18  ;;  %6083 = verf.f32 %v1079_v44  ;;  %v1120_v22 = vmul.f32 %v1104_v11, %v6744_v49  ;;  %v1119_v10 = vmul.f32 %v1103_v12, %v6747_v51 }
 0x1a9   : > { %v726_v33 = vadd.f32 1.0, %v6070_v58  ;;  %v743_v29 = vmul.f32 %v727_v63, %v679_v48  ;;  %v1106_v6 = vadd.f32 1.0, %v6772_v26  ;;  %v1082_v1 = vmul.f32 0.70710677, %v6840_v61 }
 0x1aa   : > { %v744_v15 = vmul.f32 %v728_v60, %v680_v59  ;;  %v741_v47 = vmul.f32 %v725_v57, %v677_v25  ;;  %v1058_v27 = vmul.f32 0.5, %v6683_v50  ;;  %v1057_v23 = vmul.f32 0.5, %v6689_v52 }
 0x1ab   : > { %v742_v20 = vmul.f32 %v726_v33, %v678_v42  ;;  %v1081_v53 = vmul.f32 0.70710677, %v6844_v45  ;;  %v1136_v49 = vpack.c.bf16 %v1118_v56, %v1117_v19  ;;  %v1105_v51 = vadd.f32 1.0, %v6777_v30 }
 0x1ac   : > { %v6072_v55 = vpop.eup %6071  ;;  %v762_v17 = vpack.c.bf16 %v744_v15, %v743_v29  ;;  %v1060_v5 = vmul.f32 0.5, %v6695_v36  ;;  %v1108_v9 = vadd.f32 1.0, %v6783_v35  ;;  %v1107_v32 = vadd.f32 1.0, %v6788_v62 }
 0x1ad   : > { %v6074_v31 = vpop.eup %6073  ;;  %v761_v16 = vpack.c.bf16 %v742_v20, %v741_v47  ;;  %v731_v39 = vadd.f32 1.0, %v6072_v55  ;;  %v1137_v3 = vpack.c.bf16 %v1120_v22, %v1119_v10  ;;  %v1122_v44 = vmul.f32 %v1106_v6, %v1058_v27 }
 0x1ae   : > { %v6076_v26 = vpop.eup %6075  ;;  %v1059_v52 = vmul.f32 0.5, %v6702_v43  ;;  %6085 = verf.f32 %v1082_v1  ;;  %v729_v18 = vadd.f32 1.0, %v6074_v31  ;;  %v683_v36 = vmul.f32 0.5, %v6803_v41 }
 0x1af   : > { %v6078_v50 = vpop.eup %6077  ;;  %5566 = vmatprep.mubr.msk.bf16.mxu1 %vm793_vm1, %v761_v16  ;;  %5579 = vmatmul.mubr.msk.bf16.vlgmr.msra.gmra.mrb[24].mxu0 %vm547_vm0, %v1136_v49  ;;  %6087 = verf.f32 %v1081_v53  ;;  %v684_v35 = vmul.f32 0.5, %v6818_v8  ;;  %v1121_v11 = vmul.f32 %v1105_v51, %v1057_v23  ;;  %v681_v43 = vmul.f32 0.5, %v6809_v34  ;;  %v5709_v51 = vld [vmem:[%s9024_s4 + $0x40] sm:$0xff]  }
 0x1b0   : > { %v6080_v30 = vpop.eup %6079  ;;  %v732_v56 = vadd.f32 1.0, %v6078_v50  ;;  %5567 = vmatmul.mubr.msk.bf16.vlgmr.msra.gmra.mrb[0].mxu1 %vm793_vm1, %v762_v17  ;;  %5582 = vmatprep.mubr.msk.bf16.mxu0 %vm547_vm0, %v1137_v3  ;;  %v682_v12 = vmul.f32 0.5, %v6821_v21  ;;  %v1124_v24 = vmul.f32 %v1108_v9, %v1060_v5  ;;  %v1123_v19 = vmul.f32 %v1107_v32, %v1059_v52  ;;  %v5712_v5 = vld [vmem:[%s9024_s4 + $0x58] sm:$0xff]   ;;  %v5715_v16 = vld [vmem:[%s9023_s3 + $0x4] ss:$8 sps:$4 sm:$0xff]  }
 0x1b1   : > { %v6082_v62 = vpop.eup %6081  ;;  %v730_v63 = vadd.f32 1.0, %v6080_v30  ;;  %v747_v57 = vmul.f32 %v731_v39, %v683_v36  ;;  %v745_v41 = vmul.f32 %v729_v18, %v681_v43  ;;  %v1110_v60 = vadd.f32 1.0, %v6832_v54  ;;  %5594 = vmatprep.subr.bf16.mxu1 %v5709_v51  ;;  %1829 = vmatprep.subr.bf16.mxu0 %v5715_v16  ;;  %v5718_v9 = vld [vmem:[%s9023_s3 + $0x14] ss:$8 sps:$4 sm:$0xff]   ;;  %v5716_v32 = vld [vmem:[%s9023_s3 + $0x10] ss:$8 sps:$4 sm:$0xff]  }
 0x1b2   : > { %v748_v58 = vmul.f32 %v732_v56, %v684_v35  ;;  %v6084_v48 = vpop.eup %6083  ;;  %v1109_v25 = vadd.f32 1.0, %v6076_v26  ;;  %v1138_v33 = vpack.c.bf16 %v1122_v44, %v1121_v11  ;;  %v1112_v22 = vadd.f32 1.0, %v6082_v62  ;;  %5595 = vmatpush3.bf16.msra.mxu1 %v5709_v51  ;;  %v5713_v26 = vld [vmem:[%s9023_s3] ss:$8 sps:$4 sm:$0xff]   ;;  %v5721_v39 = vld [vmem:[%s9023_s3 + $0x24] ss:$8 sps:$4 sm:$0xff]  }
 0x1b3   : > { %v746_v59 = vmul.f32 %v730_v63, %v682_v12  ;;  %v1111_v10 = vadd.f32 1.0, %v6084_v48  ;;  %v1139_v29 = vpack.c.bf16 %v1124_v24, %v1123_v19  ;;  %v1062_v34 = vmul.f32 0.5, %v6737_v46  ;;  %1830 = vmatpush1.bf16.msra.mxu0 %v5713_v26  ;;  %v5719_v3 = vld [vmem:[%s9023_s3 + $0x20] ss:$8 sps:$4 sm:$0xff]   ;;  %v5724_v50 = vld [vmem:[%s9023_s3 + $0x34] ss:$8 sps:$4 sm:$0xff]  }
 0x1b4   : > { %v764_v8 = vpack.c.bf16 %v748_v58, %v747_v57  ;;  %v1061_v21 = vmul.f32 0.5, %v6757_v2  ;;  %v1064_v15 = vmul.f32 0.5, %v6762_v4  ;;  %v1063_v6 = vmul.f32 0.5, %v6796_v14  ;;  %1831 = vmatprep.subr.bf16.mxu0 %v5718_v9  ;;  %v5722_v44 = vld [vmem:[%s9023_s3 + $0x30] ss:$8 sps:$4 sm:$0xff]   ;;  %v1701_v12 = vld [vmem:[%s6944_s19] sm:$0xff] }
 0x1b5   : > { %v763_v42 = vpack.c.bf16 %v746_v59, %v745_v41  ;;  %v1126_v1 = vmul.f32 %v1110_v60, %v1062_v34  ;;  %v1066_v17 = vmul.f32 0.5, %v6840_v61  ;;  %v1065_v4 = vmul.f32 0.5, %v6844_v45  ;;  %v5710_v61 = vld [vmem:[%s9024_s4 + $0x48] sm:$0xff]   ;;  %v5711_v45 = vld [vmem:[%s9024_s4 + $0x50] sm:$0xff]   ;;  %v1704_v41 = vld [vmem:[%s6944_s19 + $0x18] sm:$0xff] }
 0x1b6   : > { %v1125_v47 = vmul.f32 %v1109_v25, %v1061_v21  ;;  %v1128_v55 = vmul.f32 %v1112_v22, %v1064_v15  ;;  %v1127_v46 = vmul.f32 %v1111_v10, %v1063_v6  ;;  %5596 = vmatprep.subr.bf16.mxu1 %v5710_v61  ;;  %v5725_v52 = vld [vmem:[%s9023_s3 + $0x40] ss:$8 sps:$4 sm:$0xff]   ;;  %v5727_v18 = vld [vmem:[%s9023_s3 + $0x44] ss:$8 sps:$4 sm:$0xff]   ;;  %v5730_v30 = vld [vmem:[%s9023_s3 + $0x54] ss:$8 sps:$4 sm:$0xff]  }
 0x1b7   : > { %5570 = vmatprep.mubr.msk.bf16.mxu1 %vm793_vm1, %v763_v42  ;;  %5583 = vmatmul.mubr.msk.bf16.gmra.mrb[28].mxu0 %vm547_vm0, %v1138_v33  ;;  %v5728_v36 = vld [vmem:[%s9023_s3 + $0x50] ss:$8 sps:$4 sm:$0xff]   ;;  %v5733_v35 = vld [vmem:[%s9023_s3 + $0x64] ss:$8 sps:$4 sm:$0xff]   ;;  %v5731_v56 = vld [vmem:[%s9023_s3 + $0x60] ss:$8 sps:$4 sm:$0xff]  }
 0x1b8   : > { %5571 = vmatmul.mubr.msk.bf16.gmra.mrb[4].mxu1 %vm793_vm1, %v764_v8  ;;  %5586 = vmatprep.mubr.msk.bf16.mxu0 %vm547_vm0, %v1139_v29  ;;  %v6086_v54 = vpop.eup %6085  ;;  %v1140_v23 = vpack.c.bf16 %v1126_v1, %v1125_v47  ;;  %v1141_v53 = vpack.c.bf16 %v1128_v55, %v1127_v46  ;;  %v5736_v62 = vld [vmem:[%s9023_s3 + $0x74] ss:$8 sps:$4 sm:$0xff]   ;;  %v5745_v11 = vld [vmem:[%s9023_s3 + $0x104] ss:$8 sps:$4 sm:$0xff]   ;;  %v5734_v43 = vld [vmem:[%s9023_s3 + $0x70] ss:$8 sps:$4 sm:$0xff]  }
 0x1b9   : > { %v6088_v20 = vpop.eup %6087  ;;  %v1114_v27 = vadd.f32 1.0, %v6086_v54  ;;  %5597 = vmatpush3.bf16.msra.mxu1 %v5710_v61  ;;  %1832 = vmatpush1.bf16.msra.mxu0 %v5716_v32  ;;  %v1702_v63 = vld [vmem:[%s6944_s19 + $0x8] sm:$0xff]  ;;  %v5742_v58 = vld [vmem:[%s9023_s3 + $0xd4] ss:$8 sps:$4 sm:$0xff]   ;;  %v5740_v59 = vld [vmem:[%s9023_s3 + $0xd0] ss:$8 sps:$4 sm:$0xff]  }
 0x1ba   : > { %v1113_v2 = vadd.f32 1.0, %v6088_v20  ;;  %5598 = vmatprep.subr.bf16.mxu1 %v5711_v45  ;;  %1833 = vmatprep.subr.bf16.mxu0 %v5721_v39  ;;  %v5739_v24 = vld [vmem:[%s9023_s3 + $0xc4] ss:$8 sps:$4 sm:$0xff]   ;;  %v1733_v19 = vpack.c.bf16 %v1702_v63, %v1701_v12  ;;  %v5737_v57 = vld [vmem:[%s9023_s3 + $0xc0] ss:$8 sps:$4 sm:$0xff]   ;;  %v1703_v48 = vld [vmem:[%s6944_s19 + $0x10] sm:$0xff] }
 0x1bb   : > { %v1130_v14 = vmul.f32 %v1114_v27, %v1066_v17  ;;  %v5751_v8 = vld [vmem:[%s9023_s3 + $0xe4] ss:$8 sps:$4 sm:$0xff]   ;;  %v1734_v60 = vpack.c.bf16 %v1704_v41, %v1703_v48  ;;  %v5749_v25 = vld [vmem:[%s9023_s3 + $0xe0] ss:$8 sps:$4 sm:$0xff]   ;;  %v1707_v10 = vld [vmem:[%s6944_s19 + $0x30] sm:$0xff]  ;;  %v6988_v6 = vsub.s32 3, %v6542_v37 }
 0x1bc   : > { %v1129_v31 = vmul.f32 %v1113_v2, %v1065_v4  ;;  %v1705_v42 = vld [vmem:[%s6944_s19 + $0x20] sm:$0xff]  ;;  %v1706_v33 = vld [vmem:[%s6944_s19 + $0x28] sm:$0xff]  ;;  %v1708_v29 = vld [vmem:[%s6944_s19 + $0x38] sm:$0xff]  ;;  %v7011_v39 = vsub.s32 6, %v6542_v37 }
 0x1bd   : > { %5599 = vmatpush3.bf16.msra.mxu1 %v5711_v45  ;;  %1834 = vmatpush1.bf16.msra.mxu0 %v5719_v3  ;;  %v1735_v22 = vpack.c.bf16 %v1706_v33, %v1705_v42  ;;  %v1736_v34 = vpack.c.bf16 %v1708_v29, %v1707_v10  ;;  %v1709_v21 = vld [vmem:[%s6944_s19 + $0x40] sm:$0xff]  ;;  %v1710_v15 = vld [vmem:[%s6944_s19 + $0x48] sm:$0xff]  ;;  %v1711_v55 = vld [vmem:[%s6944_s19 + $0x50] sm:$0xff] }
 0x1be   : > { %v1142_v49 = vpack.c.bf16 %v1130_v14, %v1129_v31  ;;  %5600 = vmatprep.subr.bf16.mxu1 %v5712_v5  ;;  %1835 = vmatprep.subr.bf16.mxu0 %v5724_v50  ;;  %v1737_v54 = vpack.c.bf16 %v1710_v15, %v1709_v21  ;;  %v6993_v1 = vld [vmem:[%s9025_s5] sm:$0xff]  ;;  %v1712_v46 = vld [vmem:[%s6944_s19 + $0x58] sm:$0xff]  ;;  %v1714_v26 = vld [vmem:[%s6944_s19 + $0x68] sm:$0xff]  ;;  %9096 = vst [vmem:[#allocation5_spill] sm:$0xff] %v7011_v39 }
 0x1bf   : > { %5587 = vmatmul.mubr.msk.bf16.gmra.mrb[32].mxu0 %vm547_vm0, %v1140_v23  ;;  %v6997_v47 = vrot.slane %v6993_v1, %v6988_v6  ;;  %v1738_v31 = vpack.c.bf16 %v1712_v46, %v1711_v55  ;;  %v1713_v16 = vld [vmem:[%s6944_s19 + $0x60] sm:$0xff] }
 0x1c0   : > { %5590 = vmatprep.mubr.msk.bf16.mxu0 %vm547_vm0, %v1141_v53 }
 0x1c1   : > { %5601 = vmatpush3.bf16.msra.mxu1 %v5712_v5  ;;  %1836 = vmatpush1.bf16.msra.mxu0 %v5722_v44 }
 0x1c2   : > { %1837 = vmatprep.subr.bf16.mxu0 %v5727_v18  ;;  %2158 = vmatprep.subr.bf16.mxu1 %v5745_v11 }
 0x1c5   : > { %1838 = vmatpush1.bf16.msra.mxu0 %v5725_v52 }
 0x1c6   : > { %1839 = vmatprep.subr.bf16.mxu0 %v5730_v30  ;;  %v1739_v30 = vpack.c.bf16 %v1714_v26, %v1713_v16 }
 0x1c7   : > { %5591 = vmatmul.mubr.msk.bf16.gmra.mrb[36].mxu0 %vm547_vm0, %v1142_v49 }
 0x1c8   : > { %1861 = vmatprep.mubr.bf16.mxu0 %v9027_v0 }
 0x1c9   : > { %1840 = vmatpush1.bf16.msra.mxu0 %v5728_v36 }
 0x1ca   : > { %1841 = vmatprep.subr.bf16.mxu0 %v5733_v35 }
 0x1cd   : > { %1842 = vmatpush1.bf16.msra.mxu0 %v5731_v56 }
 0x1ce   : > { %1843 = vmatprep.subr.bf16.mxu0 %v5736_v62  ;;  %v7026_v62 = vrot.slane %v6993_v1, %v7011_v39 }
 0x1d1   : > { %1844 = vmatpush1.bf16.msra.mxu0 %v5734_v43 }
 0x1d2   : > { %2511 = vmatprep.subr.bf16.mxu0 %v5739_v24 }
 0x1d4   : > { %1862 = vmatmul.mubr.bf16.vlgmr.msra.gmra.mrb[40].mxu0 %v1733_v19  ;;  %v1715_v19 = vld [vmem:[%s6944_s19 + $0x70] sm:$0xff] }
 0x1d5   : > { %1871 = vmatprep.mubr.bf16.mxu0 %v9027_v0  ;;  %2512 = vmatpush1.bf16.msra.mxu0 %v5737_v57  ;;  %v1716_v57 = vld [vmem:[%s6944_s19 + $0x78] sm:$0xff] }
 0x1d6   : > { %2513 = vmatprep.subr.bf16.mxu0 %v5742_v58 }
 0x1d9   : > { %2514 = vmatpush1.bf16.msra.mxu0 %v5740_v59 }
 0x1da   : > { %2515 = vmatprep.subr.bf16.mxu0 %v5751_v8 }
 0x1dc   : > { %1872 = vmatmul.mubr.bf16.gmra.mrb[44].mxu0 %v1734_v60 }
 0x1dd   : > { %1881 = vmatprep.mubr.bf16.mxu0 %v9027_v0  ;;  %2516 = vmatpush1.bf16.msra.mxu0 %v5749_v25 }
 0x1e4   : > { %1882 = vmatmul.mubr.bf16.gmra.mrb[48].mxu0 %v1735_v22 }
 0x1e5   : > { %1891 = vmatprep.mubr.bf16.mxu0 %v9027_v0 }
 0x1ec   : > { %1892 = vmatmul.mubr.bf16.gmra.mrb[52].mxu0 %v1736_v34 }
 0x1ed   : > { %1901 = vmatprep.mubr.bf16.mxu0 %v9027_v0 }
 0x1f4   : > { %1902 = vmatmul.mubr.bf16.gmra.mrb[56].mxu0 %v1737_v54 }
 0x1f5   : > { %1911 = vmatprep.mubr.bf16.mxu0 %v9027_v0 }
 0x1fc   : > { %1912 = vmatmul.mubr.bf16.gmra.mrb[60].mxu0 %v1738_v31 }
 0x1fd   : > { %1921 = vmatprep.mubr.bf16.mxu0 %v9027_v0 }
 0x204   : > { %1922 = vmatmul.mubr.bf16.gmra.mrb[64].mxu0 %v1739_v30 }
 0x205   : > { %1931 = vmatprep.mubr.bf16.mxu0 %v9027_v0 }
 0x272   : > { %v5560_v20 = vpop.f32.mrb[16].mxu0 }
 0x273   : > { %v861_v27 = vadd.f32 %v5560_v20, %v6997_v47  ;;  %v852_v2 = vpop.f32.mrb[17].mxu0 }
 0x274   : > { %v853_v23 = vadd.f32 %v852_v2, %v6997_v47  ;;  %v5561_v53 = vpop.f32.mrb[18].mxu0 }
 0x275   : > { %v1543_v17 = vmul.f32 0.70710677, %v861_v27  ;;  %v864_v4 = vadd.f32 %v5561_v53, %v6997_v47  ;;  %v855_v14 = vpop.f32.mrb[19].mxu0  ;;  %v1527_v48 = vmul.f32 0.5, %v861_v27  ;;  %v1740_v27 = vpack.c.bf16 %v1716_v57, %v1715_v19 }
 0x276   : > { %v1541_v49 = vmul.f32 0.70710677, %v853_v23  ;;  %v856_v51 = vadd.f32 %v855_v14, %v6997_v47  ;;  %v1525_v41 = vmul.f32 0.5, %v853_v23 }
 0x277   : > { %6089 = verf.f32 %v1543_v17  ;;  %v1544_v61 = vmul.f32 0.70710677, %v864_v4  ;;  %v1528_v33 = vmul.f32 0.5, %v864_v4  ;;  %1932 = vmatmul.mubr.bf16.gmra.mrb[68].mxu0 %v1740_v27 }
 0x278   : > { %6091 = verf.f32 %v1541_v49  ;;  %v1542_v45 = vmul.f32 0.70710677, %v856_v51  ;;  %v1526_v15 = vmul.f32 0.5, %v856_v51  ;;  %2543 = vmatprep.mubr.bf16.mxu0 %v9027_v0 }
 0x279   : > { %6093 = verf.f32 %v1544_v61 }
 0x27a   : > { %6095 = verf.f32 %v1542_v45  ;;  %v5564_v5 = vpop.f32.mrb[20].mxu0 }
 0x27b   : > { %v877_v9 = vadd.f32 %v5564_v5, %v6997_v47  ;;  %v868_v32 = vpop.f32.mrb[21].mxu0 }
 0x27c   : > { %v7014_v3 = vadd.f32 %v868_v32, %v6997_v47  ;;  %v5565_v50 = vpop.f32.mrb[22].mxu0 }
 0x27d   : > { %v1547_v44 = vmul.f32 0.70710677, %v877_v9  ;;  %v7017_v52 = vadd.f32 %v5565_v50, %v6997_v47  ;;  %v871_v18 = vpop.f32.mrb[23].mxu0  ;;  %v1531_v61 = vmul.f32 0.5, %v877_v9 }
 0x27e   : > { %v1545_v36 = vmul.f32 0.70710677, %v7014_v3  ;;  %v7021_v35 = vadd.f32 %v871_v18, %v6997_v47 }
 0x27f   : > { %6097 = verf.f32 %v1547_v44  ;;  %v1548_v56 = vmul.f32 0.70710677, %v7017_v52 }
 0x280   : > { %6099 = verf.f32 %v1545_v36  ;;  %v1546_v11 = vmul.f32 0.70710677, %v7021_v35  ;;  %v1530_v57 = vmul.f32 0.5, %v7021_v35 }
 0x281   : > { %v6090_v43 = vpop.eup %6089  ;;  %6101 = verf.f32 %v1548_v56  ;;  %v1529_v56 = vmul.f32 0.5, %v7014_v3 }
 0x282   : > { %v6092_v12 = vpop.eup %6091  ;;  %v1575_v63 = vadd.f32 1.0, %v6090_v43  ;;  %6103 = verf.f32 %v1546_v11  ;;  %v5580_v24 = vpop.f32.mrb[24].mxu0  ;;  %v1532_v43 = vmul.f32 0.5, %v7017_v52 }
 0x283   : > { %v6094_v58 = vpop.eup %6093  ;;  %v1573_v59 = vadd.f32 1.0, %v6092_v12  ;;  %v5568_v8 = vpop.f32.mrb[0].mxu1  ;;  %v7033_v60 = vadd.f32 %v5580_v24, %v7026_v62 }
 0x284   : > { %v1217_v25 = vpop.f32.mrb[25].mxu0  ;;  %v6096_v42 = vpop.eup %6095  ;;  %v1576_v22 = vadd.f32 1.0, %v6094_v58  ;;  %v7036_v10 = vadd.f32 %v5568_v8, %v6997_v47  ;;  %v1591_v2 = vmul.f32 %v1575_v63, %v1527_v48 }
 0x285   : > { %v884_v29 = vpop.f32.mrb[1].mxu1  ;;  %v7039_v34 = vadd.f32 %v1217_v25, %v7026_v62  ;;  %v5581_v21 = vpop.f32.mrb[26].mxu0  ;;  %v1574_v54 = vadd.f32 1.0, %v6096_v42  ;;  %v1298_v20 = vmul.f32 0.70710677, %v7033_v60  ;;  %v1589_v14 = vmul.f32 %v1573_v59, %v1525_v41 }
 0x286   : > { %v5569_v55 = vpop.f32.mrb[2].mxu1  ;;  %v1220_v46 = vpop.f32.mrb[27].mxu0  ;;  %v1592_v23 = vmul.f32 %v1576_v22, %v1528_v33  ;;  %v1551_v53 = vmul.f32 0.70710677, %v7036_v10  ;;  %v7044_v17 = vadd.f32 %v884_v29, %v6997_v47  ;;  %v1229_v32 = vadd.f32 %v5581_v21, %v7026_v62 }
 0x287   : > { %v887_v4 = vpop.f32.mrb[3].mxu1  ;;  %v1590_v31 = vmul.f32 %v1574_v54, %v1526_v15  ;;  %6105 = verf.f32 %v1298_v20  ;;  %v1296_v49 = vmul.f32 0.70710677, %v7039_v34  ;;  %v896_v26 = vadd.f32 %v5569_v55, %v6997_v47 }
 0x288   : > { %v7047_v51 = vpack.c.bf16 %v1592_v23, %v1591_v2  ;;  %6107 = verf.f32 %v1551_v53  ;;  %v1549_v45 = vmul.f32 0.70710677, %v7044_v17  ;;  %v888_v18 = vadd.f32 %v887_v4, %v6997_v47 }
 0x289   : > { %v6098_v5 = vpop.eup %6097  ;;  %v7050_v16 = vpack.c.bf16 %v1590_v31, %v1589_v14  ;;  %6109 = verf.f32 %v1296_v49  ;;  %v1221_v30 = vadd.f32 %v1220_v46, %v7026_v62  ;;  %v1552_v12 = vmul.f32 0.70710677, %v896_v26 }
 0x28a   : > { %v6100_v50 = vpop.eup %6099  ;;  %v1579_v44 = vadd.f32 1.0, %v6098_v5  ;;  %6111 = verf.f32 %v1549_v45  ;;  %v5584_v9 = vpop.f32.mrb[28].mxu0  ;;  %v1299_v58 = vmul.f32 0.70710677, %v1229_v32  ;;  %v1550_v25 = vmul.f32 0.70710677, %v888_v18 }
 0x28b   : > { %v6102_v36 = vpop.eup %6101  ;;  %v1577_v11 = vadd.f32 1.0, %v6100_v50  ;;  %v5572_v63 = vpop.f32.mrb[4].mxu1  ;;  %6113 = verf.f32 %v1552_v12  ;;  %v1297_v29 = vmul.f32 0.70710677, %v1221_v30  ;;  %v7064_v35 = vadd.f32 %v5584_v9, %v7026_v62 }
 0x28c   : > { %v6104_v24 = vpop.eup %6103  ;;  %v1580_v19 = vadd.f32 1.0, %v6102_v36  ;;  %v900_v48 = vpop.f32.mrb[5].mxu1  ;;  %v1595_v59 = vmul.f32 %v1579_v44, %v1531_v61  ;;  %6115 = verf.f32 %v1299_v58  ;;  %v7061_v54 = vadd.f32 %v5572_v63, %v6997_v47 }
 0x28d   : > { %v1233_v41 = vpop.f32.mrb[29].mxu0  ;;  %v1578_v8 = vadd.f32 1.0, %v6104_v24  ;;  %v5573_v42 = vpop.f32.mrb[6].mxu1  ;;  %v1593_v22 = vmul.f32 %v1577_v11, %v1529_v56  ;;  %6117 = verf.f32 %v1550_v25  ;;  %v7069_v55 = vadd.f32 %v900_v48, %v6997_v47 }
 0x28e   : > { %v5585_v33 = vpop.f32.mrb[30].mxu0  ;;  %v1596_v3 = vmul.f32 %v1580_v19, %v1532_v43  ;;  %v903_v52 = vpop.f32.mrb[7].mxu1  ;;  %6119 = verf.f32 %v1297_v29  ;;  %v7072_v46 = vadd.f32 %v1233_v41, %v7026_v62  ;;  %v1282_v23 = vmul.f32 0.5, %v7033_v60 }
 0x28f   : > { %v1236_v21 = vpop.f32.mrb[31].mxu0  ;;  %v1594_v15 = vmul.f32 %v1578_v8, %v1530_v57  ;;  %v1555_v53 = vmul.f32 0.70710677, %v7061_v54  ;;  %v1535_v14 = vmul.f32 0.5, %v7036_v10  ;;  %v1302_v49 = vmul.f32 0.70710677, %v7064_v35 }
 0x290   : > { %v7066_v20 = vpack.c.bf16 %v1596_v3, %v1595_v59  ;;  %v1553_v61 = vmul.f32 0.70710677, %v7069_v55  ;;  %v1533_v5 = vmul.f32 0.5, %v7044_v17  ;;  %v1280_v50 = vmul.f32 0.5, %v7039_v34 }
 0x291   : > { %v6106_v27 = vpop.eup %6105  ;;  %v7074_v2 = vpack.c.bf16 %v1594_v15, %v1593_v22  ;;  %6121 = verf.f32 %v1555_v53  ;;  %v1300_v44 = vmul.f32 0.70710677, %v7072_v46  ;;  %v1536_v36 = vmul.f32 0.5, %v896_v26 }
 0x292   : > { %v6108_v4 = vpop.eup %6107  ;;  %v1330_v31 = vadd.f32 1.0, %v6106_v27  ;;  %v5588_v9 = vpop.f32.mrb[32].mxu0  ;;  %v1283_v56 = vmul.f32 0.5, %v1229_v32  ;;  %6123 = verf.f32 %v1302_v49  ;;  %v912_v10 = vadd.f32 %v5573_v42, %v6997_v47 }
 0x293   : > { %v6110_v45 = vpop.eup %6109  ;;  %v1249_v11 = vpop.f32.mrb[33].mxu0  ;;  %v1583_v43 = vadd.f32 1.0, %v6108_v4  ;;  %v1534_v12 = vmul.f32 0.5, %v888_v18  ;;  %v1281_v63 = vmul.f32 0.5, %v1221_v30  ;;  %v1245_v24 = vadd.f32 %v5585_v33, %v7026_v62 }
 0x294   : > { %v6112_v60 = vpop.eup %6111  ;;  %v5589_v19 = vpop.f32.mrb[34].mxu0  ;;  %v7086_v17 = vmul.f32 %v1330_v31, %v1282_v23  ;;  %v1328_v34 = vadd.f32 1.0, %v6110_v45  ;;  %6125 = verf.f32 %v1553_v61  ;;  %v1556_v57 = vmul.f32 0.70710677, %v912_v10 }
 0x295   : > { %v1252_v58 = vpop.f32.mrb[35].mxu0  ;;  %v6114_v48 = vpop.eup %6113  ;;  %v1581_v41 = vadd.f32 1.0, %v6112_v60  ;;  %6127 = verf.f32 %v1300_v44  ;;  %v1303_v26 = vmul.f32 0.70710677, %v1245_v24  ;;  %v904_v32 = vadd.f32 %v903_v52, %v6997_v47 }
 0x296   : > { %v6116_v59 = vpop.eup %6115  ;;  %v1584_v8 = vadd.f32 1.0, %v6114_v48  ;;  %6129 = verf.f32 %v1556_v57  ;;  %v1237_v18 = vadd.f32 %v1236_v21, %v7026_v62  ;;  %v7091_v30 = vadd.f32 %v5588_v9, %v7026_v62  ;;  %v5748_v57 = vld [vmem:[%s9023_s3 + $0x114] ss:$8 sps:$4 sm:$0xff]  }
 0x297   : > { %v6118_v25 = vpop.eup %6117  ;;  %v1599_v42 = vmul.f32 %v1583_v43, %v1535_v14  ;;  %v1331_v33 = vadd.f32 1.0, %v6116_v59  ;;  %6131 = verf.f32 %v1303_v26  ;;  %v1554_v22 = vmul.f32 0.70710677, %v904_v32 }
 0x298   : > { %v6120_v3 = vpop.eup %6119  ;;  %v1344_v29 = vmul.f32 %v1328_v34, %v1280_v50  ;;  %v1600_v15 = vmul.f32 %v1584_v8, %v1536_v36  ;;  %v1582_v27 = vadd.f32 1.0, %v6118_v25  ;;  %v1301_v23 = vmul.f32 0.70710677, %v1237_v18 }
 0x299   : > { %v1597_v47 = vmul.f32 %v1581_v41, %v1533_v5  ;;  %v1347_v52 = vmul.f32 %v1331_v33, %v1283_v56  ;;  %v1329_v4 = vadd.f32 1.0, %v6120_v3  ;;  %6133 = verf.f32 %v1554_v22 }
 0x29a   : > { %v5592_v53 = vpop.f32.mrb[36].mxu0  ;;  %v7093_v21 = vpack.c.bf16 %v1600_v15, %v1599_v42  ;;  %v1598_v49 = vmul.f32 %v1582_v27, %v1534_v12  ;;  %6135 = verf.f32 %v1301_v23  ;;  %v1306_v14 = vmul.f32 0.70710677, %v7091_v30  ;;  %v5754_v23 = vld [vmem:[%s9023_s3 + $0x124] ss:$8 sps:$4 sm:$0xff]  }
 0x29b   : > { %v1265_v31 = vpop.f32.mrb[37].mxu0  ;;  %v6122_v45 = vpop.eup %6121  ;;  %v1369_v44 = vpack.c.bf16 %v1347_v52, %v7086_v17  ;;  %v1345_v50 = vmul.f32 %v1329_v4, %v1281_v63  ;;  %v7098_v9 = vadd.f32 %v1249_v11, %v7026_v62  ;;  %v7101_v5 = vadd.f32 %v5589_v19, %v7026_v62  ;;  %v5743_v63 = vld [vmem:[%s9023_s3 + $0x100] ss:$8 sps:$4 sm:$0xff]  }
 0x29c   : > { %v5593_v61 = vpop.f32.mrb[38].mxu0  ;;  %v6124_v36 = vpop.eup %6123  ;;  %v7103_v56 = vpack.c.bf16 %v1598_v49, %v1597_v47  ;;  %v1539_v43 = vmul.f32 0.5, %v7061_v54  ;;  %6137 = verf.f32 %v1306_v14  ;;  %v7107_v12 = vadd.f32 %v1252_v58, %v7026_v62 }
 0x29d   : > { %v1268_v60 = vpop.f32.mrb[39].mxu0  ;;  %v1368_v17 = vpack.c.bf16 %v1345_v50, %v1344_v29  ;;  %v1587_v11 = vadd.f32 1.0, %v6122_v45  ;;  %v1286_v34 = vmul.f32 0.5, %v7064_v35  ;;  %v1304_v19 = vmul.f32 0.70710677, %v7098_v9 }
 0x29e   : > { %v6126_v48 = vpop.eup %6125  ;;  %v1537_v54 = vmul.f32 0.5, %v7069_v55  ;;  %v1284_v58 = vmul.f32 0.5, %v7072_v46  ;;  %v1540_v41 = vmul.f32 0.5, %v912_v10  ;;  %v1307_v26 = vmul.f32 0.70710677, %v7101_v5 }
 0x29f   : > { %v6128_v59 = vpop.eup %6127  ;;  %v1334_v8 = vadd.f32 1.0, %v6124_v36  ;;  %v1287_v25 = vmul.f32 0.5, %v1245_v24  ;;  %v1538_v42 = vmul.f32 0.5, %v904_v32  ;;  %6139 = verf.f32 %v1304_v19  ;;  %5602 = vmatprep.mubr.msk.bf16.mxu1 %vm793_vm1, %v1368_v17  ;;  %v5746_v32 = vld [vmem:[%s9023_s3 + $0x110] ss:$8 sps:$4 sm:$0xff]  }
 0x2a0   : > { %v6130_v35 = vpop.eup %6129  ;;  %v1285_v33 = vmul.f32 0.5, %v1237_v18  ;;  %6141 = verf.f32 %v1307_v26  ;;  %v1305_v22 = vmul.f32 0.70710677, %v7107_v12  ;;  %v7123_v3 = vadd.f32 %v5592_v53, %v7026_v62  ;;  %5603 = vmatmul.mubr.msk.bf16.vlgmr.msra.gmra.mrb[8].mxu1 %vm793_vm1, %v1369_v44 }
 0x2a1   : > { %v6132_v55 = vpop.eup %6131  ;;  %v1603_v46 = vmul.f32 %v1587_v11, %v1539_v43  ;;  %v1588_v10 = vadd.f32 1.0, %v6130_v35  ;;  %v7127_v29 = vadd.f32 %v1265_v31, %v7026_v62  ;;  %v1277_v24 = vadd.f32 %v5593_v61, %v7026_v62  ;;  %2159 = vmatpush1.bf16.msra.mxu1 %v5743_v63  ;;  %v5752_v43 = vld [vmem:[%s9023_s3 + $0x120] ss:$8 sps:$4 sm:$0xff]  }
 0x2a2   : > { %v1585_v18 = vadd.f32 1.0, %v6126_v48  ;;  %v1335_v15 = vadd.f32 1.0, %v6132_v55  ;;  %6143 = verf.f32 %v1305_v22  ;;  %v1310_v27 = vmul.f32 0.70710677, %v7123_v3  ;;  %2160 = vmatprep.subr.bf16.mxu1 %v5748_v57 }
 0x2a3   : > { %v6134_v53 = vpop.eup %6133  ;;  %v1350_v47 = vmul.f32 %v1334_v8, %v1286_v34  ;;  %v1332_v52 = vadd.f32 1.0, %v6128_v59  ;;  %v1604_v4 = vmul.f32 %v1588_v10, %v1540_v41  ;;  %v1308_v31 = vmul.f32 0.70710677, %v7127_v29 }
 0x2a4   : > { %v6136_v49 = vpop.eup %6135  ;;  %v1351_v14 = vmul.f32 %v1335_v15, %v1287_v25  ;;  %v1586_v61 = vadd.f32 1.0, %v6134_v53  ;;  %6145 = verf.f32 %v1310_v27  ;;  %v1311_v45 = vmul.f32 0.70710677, %v1277_v24 }
 0x2a5   : > { %v7138_v44 = vpack.c.bf16 %v1604_v4, %v1603_v46  ;;  %v1333_v50 = vadd.f32 1.0, %v6136_v49  ;;  %6147 = verf.f32 %v1308_v31  ;;  %v1269_v36 = vadd.f32 %v1268_v60, %v7026_v62  ;;  %2161 = vmatpush1.bf16.msra.mxu1 %v5746_v32 }
 0x2a6   : > { %v6138_v63 = vpop.eup %6137  ;;  %v1601_v17 = vmul.f32 %v1585_v18, %v1537_v54  ;;  %v1371_v11 = vpack.c.bf16 %v1351_v14, %v1350_v47  ;;  %v1602_v34 = vmul.f32 %v1586_v61, %v1538_v42  ;;  %6149 = verf.f32 %v1311_v45  ;;  %2162 = vmatprep.subr.bf16.mxu1 %v5754_v23 }
 0x2a7   : > { %v1348_v19 = vmul.f32 %v1332_v52, %v1284_v58  ;;  %v1349_v57 = vmul.f32 %v1333_v50, %v1285_v33  ;;  %v1309_v48 = vmul.f32 0.70710677, %v1269_v36  ;;  %v1338_v8 = vadd.f32 1.0, %v6138_v63 }
 0x2a8   : > { %v7144_v41 = vpack.c.bf16 %v1602_v34, %v1601_v17  ;;  %v1290_v60 = vmul.f32 0.5, %v7091_v30  ;;  %v1291_v54 = vmul.f32 0.5, %v7101_v5  ;;  %v1288_v58 = vmul.f32 0.5, %v7098_v9  ;;  %v5763_v17 = vld [vmem:[%s9023_s3 + $0x154] ss:$8 sps:$4 sm:$0xff]  }
 0x2a9   : > { %v6140_v26 = vpop.eup %6139  ;;  %v1370_v59 = vpack.c.bf16 %v1349_v57, %v1348_v19  ;;  %6151 = verf.f32 %v1309_v48  ;;  %2163 = vmatpush1.bf16.msra.mxu1 %v5752_v43  ;;  %v1289_v55 = vmul.f32 0.5, %v7107_v12  ;;  %v1294_v53 = vmul.f32 0.5, %v7123_v3  ;;  %v5757_v3 = vld [vmem:[%s9023_s3 + $0x134] ss:$8 sps:$4 sm:$0xff]   ;;  %v5769_v34 = vld [vmem:[%s9023_s3 + $0x164] ss:$8 sps:$4 sm:$0xff]  }
 0x2aa   : > { %v6142_v62 = vpop.eup %6141  ;;  %v1336_v25 = vadd.f32 1.0, %v6140_v26  ;;  %v1354_v33 = vmul.f32 %v1338_v8, %v1290_v60  ;;  %v1295_v47 = vmul.f32 0.5, %v1277_v24  ;;  %v1292_v12 = vmul.f32 0.5, %v7127_v29  ;;  %v5755_v29 = vld [vmem:[%s9023_s3 + $0x130] ss:$8 sps:$4 sm:$0xff]   ;;  %2164 = vmatprep.subr.bf16.mxu1 %v5757_v3 }
 0x2ab   : > { %v1339_v35 = vadd.f32 1.0, %v6142_v62  ;;  %5606 = vmatprep.mubr.msk.bf16.mxu1 %vm793_vm1, %v1370_v59  ;;  %v1293_v14 = vmul.f32 0.5, %v1269_v36  ;;  %v5760_v24 = vld [vmem:[%s9023_s3 + $0x144] ss:$8 sps:$4 sm:$0xff]   ;;  %v5758_v36 = vld [vmem:[%s9023_s3 + $0x140] ss:$8 sps:$4 sm:$0xff]  }
 0x2ac   : > { %v6144_v42 = vpop.eup %6143  ;;  %5607 = vmatmul.mubr.msk.bf16.gmra.mrb[12].mxu1 %vm793_vm1, %v1371_v11  ;;  %v1352_v18 = vmul.f32 %v1336_v25, %v1288_v58  ;;  %v5761_v11 = vld [vmem:[%s9023_s3 + $0x150] ss:$8 sps:$4 sm:$0xff]   ;;  %v5767_v19 = vld [vmem:[%s9023_s3 + $0x160] ss:$8 sps:$4 sm:$0xff]   ;;  %v5772_v57 = vld [vmem:[%s9023_s3 + $0x174] ss:$8 sps:$4 sm:$0xff]  }
 0x2ad   : > { %v1355_v22 = vmul.f32 %v1339_v35, %v1291_v54  ;;  %v1337_v46 = vadd.f32 1.0, %v6144_v42  ;;  %2165 = vmatpush1.bf16.msra.mxu1 %v5755_v29  ;;  %v5770_v48 = vld [vmem:[%s9023_s3 + $0x170] ss:$8 sps:$4 sm:$0xff]   ;;  %v5766_v26 = vld [vmem:[%s9023_s3 + $0xf4] ss:$8 sps:$4 sm:$0xff]  }
 0x2ae   : > { %v6146_v10 = vpop.eup %6145  ;;  %2166 = vmatprep.subr.bf16.mxu1 %v5760_v24  ;;  %v5775_v59 = vld [vmem:[%s9023_s3 + $0x184] ss:$8 sps:$4 sm:$0xff]   ;;  %v5764_v8 = vld [vmem:[%s9023_s3 + $0xf0] ss:$8 sps:$4 sm:$0xff]   ;;  %v5773_v62 = vld [vmem:[%s9023_s3 + $0x180] ss:$8 sps:$4 sm:$0xff]   ;;  %2517 = vmatprep.subr.bf16.mxu0 %v5766_v26 }
 0x2af   : > { %v6148_v32 = vpop.eup %6147  ;;  %v1373_v30 = vpack.c.bf16 %v1355_v22, %v1354_v33  ;;  %v1353_v15 = vmul.f32 %v1337_v46, %v1289_v55  ;;  %v1342_v27 = vadd.f32 1.0, %v6146_v10  ;;  %2518 = vmatpush1.bf16.msra.mxu0 %v5764_v8  ;;  %v5778_v60 = vld [vmem:[%s9023_s3 + $0x194] ss:$8 sps:$4 sm:$0xff]   ;;  %v5776_v25 = vld [vmem:[%s9023_s3 + $0x190] ss:$8 sps:$4 sm:$0xff]  }
 0x2b0   : > { %v6150_v5 = vpop.eup %6149  ;;  %v1340_v9 = vadd.f32 1.0, %v6148_v32  ;;  %v5784_v54 = vld [vmem:[%s9023_s3 + $0x1a4] ss:$8 sps:$4 sm:$0xff]   ;;  %v5782_v35 = vld [vmem:[%s9023_s3 + $0x1a0] ss:$8 sps:$4 sm:$0xff]  }
 0x2b1   : > { %v1372_v23 = vpack.c.bf16 %v1353_v15, %v1352_v18  ;;  %v1343_v52 = vadd.f32 1.0, %v6150_v5  ;;  %v1358_v31 = vmul.f32 %v1342_v27, %v1294_v53  ;;  %2167 = vmatpush1.bf16.msra.mxu1 %v5758_v36  ;;  %v5787_v42 = vld [vmem:[%s9023_s3 + $0x1b4] ss:$8 sps:$4 sm:$0xff]   ;;  %v5785_v58 = vld [vmem:[%s9023_s3 + $0x1b0] ss:$8 sps:$4 sm:$0xff]   ;;  %v1863_v18 = vpop.f32.mrb[40].mxu0 }
 0x2b2   : > { %v1356_v50 = vmul.f32 %v1340_v9, %v1292_v12  ;;  %2168 = vmatprep.subr.bf16.mxu1 %v5763_v17  ;;  %v5790_v33 = vld [vmem:[%s9023_s3 + $0x1c4] ss:$8 sps:$4 sm:$0xff]   ;;  %v5788_v22 = vld [vmem:[%s9023_s3 + $0x1c0] ss:$8 sps:$4 sm:$0xff]   ;;  %v5793_v55 = vld [vmem:[%s9023_s3 + $0x1d4] ss:$8 sps:$4 sm:$0xff]  }
 0x2b3   : > { %v6152_v4 = vpop.eup %6151  ;;  %v1359_v49 = vmul.f32 %v1343_v52, %v1295_v47  ;;  %5610 = vmatprep.mubr.msk.bf16.mxu1 %vm793_vm1, %v1372_v23  ;;  %v5791_v46 = vld [vmem:[%s9023_s3 + $0x1d0] ss:$8 sps:$4 sm:$0xff]   ;;  %v5781_v10 = vld [vmem:[%s9023_s3 + $0x84] ss:$8 sps:$4 sm:$0xff]   ;;  %v1865_v27 = vpop.f32.mrb[41].mxu0 }
 0x2b4   : > { %v1341_v61 = vadd.f32 1.0, %v6152_v4  ;;  %5611 = vmatmul.mubr.msk.bf16.gmra.mrb[16].mxu1 %vm793_vm1, %v1373_v30  ;;  %v5799_v32 = vld [vmem:[%s9023_s3 + $0x1e4] ss:$8 sps:$4 sm:$0xff]   ;;  %2688 = vmatprep.subr.bf16.mxu0 %v5781_v10  ;;  %v5797_v30 = vld [vmem:[%s9023_s3 + $0x1e0] ss:$8 sps:$4 sm:$0xff]   ;;  %v7242_v15 = vld [vmem:[%s9025_s5 + $0x18] sm:$0xff] }
 0x2b5   : > { %v1375_v45 = vpack.c.bf16 %v1359_v49, %v1358_v31  ;;  %2169 = vmatpush1.bf16.msra.mxu1 %v5761_v11  ;;  %v7247_v5 = vld [vmem:[%s9025_s5 + $0x10] sm:$0xff]  ;;  %v7251_v23 = vrot.slane %v7242_v15, %v6545_v38  ;;  %v1867_v53 = vpop.f32.mrb[42].mxu0 }
 0x2b6   : > { %v1357_v43 = vmul.f32 %v1341_v61, %v1293_v14  ;;  %2170 = vmatprep.subr.bf16.mxu1 %v5769_v34  ;;  %v7255_v47 = vrot.slane %v7247_v5, %v6545_v38  ;;  %v1869_v52 = vpop.f32.mrb[43].mxu0  ;;  %v5802_v9 = vld [vmem:[%s9023_s3 + $0x1f4] ss:$8 sps:$4 sm:$0xff]   ;;  %v5800_v49 = vld [vmem:[%s9023_s3 + $0x1f0] ss:$8 sps:$4 sm:$0xff]  }
 0x2b7   : > { %v7261_v4 = vadd.f32 %v1865_v27, %v7251_v23  ;;  %v7264_v31 = vadd.f32 %v1869_v52, %v7251_v23 }
 0x2b8   : > { %v1374_v63 = vpack.c.bf16 %v1357_v43, %v1356_v50  ;;  %v7270_v12 = vadd.f32 %v1863_v18, %v7255_v47  ;;  %v7273_v38 = vadd.f32 %v1867_v53, %v7255_v47 }
 0x2b9   : > { %2171 = vmatpush1.bf16.msra.mxu1 %v5767_v19  ;;  %9097 = vst [vmem:[#allocation6_spill] sm:$0xff] %v7261_v4  ;;  %v1975_v14 = vpack.c.bf16 %v7264_v31, %v7261_v4 }
 0x2ba   : > { %5614 = vmatprep.mubr.msk.bf16.mxu1 %vm793_vm1, %v1374_v63  ;;  %2172 = vmatprep.subr.bf16.mxu1 %v5772_v57  ;;  %9098 = vst [vmem:[#allocation7_spill] sm:$0xff] %v7270_v12  ;;  %v1974_v61 = vpack.c.bf16 %v7273_v38, %v7270_v12 }
 0x2bc   : > { %5615 = vmatmul.mubr.msk.bf16.gmra.mrb[20].mxu1 %vm793_vm1, %v1375_v45  ;;  %v1873_v45 = vpop.f32.mrb[44].mxu0 }
 0x2bd   : > { %2173 = vmatpush1.bf16.msra.mxu1 %v5770_v48  ;;  %2190 = vmatprep.mubr.bf16.mxu1 %v1975_v14  ;;  %v1875_v50 = vpop.f32.mrb[45].mxu0  ;;  %v7280_v43 = vadd.f32 %v1873_v45, %v7255_v47 }
 0x2be   : > { %2174 = vmatprep.subr.bf16.mxu1 %v5775_v59  ;;  %v7283_v63 = vadd.f32 %v1875_v50, %v7251_v23  ;;  %v1877_v3 = vpop.f32.mrb[46].mxu0 }
 0x2bf   : > { %9099 = vst [vmem:[#allocation8_spill] sm:$0xff] %v7280_v43  ;;  %v7286_v29 = vadd.f32 %v1877_v3, %v7255_v47  ;;  %v1879_v24 = vpop.f32.mrb[47].mxu0 }
 0x2c0   : > { %9100 = vst [vmem:[#allocation9_spill] sm:$0xff] %v7283_v63  ;;  %v7289_v36 = vadd.f32 %v1879_v24, %v7251_v23  ;;  %v1883_v34 = vpop.f32.mrb[48].mxu0 }
 0x2c1   : > { %2175 = vmatpush1.bf16.msra.mxu1 %v5773_v62  ;;  %9101 = vst [vmem:[#allocation10_spill] sm:$0xff] %v7286_v29  ;;  %v1976_v17 = vpack.c.bf16 %v7286_v29, %v7280_v43  ;;  %v1885_v19 = vpop.f32.mrb[49].mxu0  ;;  %v7296_v57 = vadd.f32 %v1883_v34, %v7255_v47 }
 0x2c2   : > { %2176 = vmatprep.subr.bf16.mxu1 %v5778_v60  ;;  %9102 = vst [vmem:[#allocation11_spill] sm:$0xff] %v7289_v36  ;;  %v1977_v11 = vpack.c.bf16 %v7289_v36, %v7283_v63  ;;  %v7299_v48 = vadd.f32 %v1885_v19, %v7251_v23  ;;  %v1887_v26 = vpop.f32.mrb[50].mxu0 }
 0x2c3   : > { %9103 = vst [vmem:[#allocation12_spill] sm:$0xff] %v7296_v57  ;;  %v7302_v59 = vadd.f32 %v1887_v26, %v7255_v47  ;;  %v1889_v8 = vpop.f32.mrb[51].mxu0 }
 0x2c4   : > { %9104 = vst [vmem:[#allocation13_spill] sm:$0xff] %v7299_v48  ;;  %v7305_v62 = vadd.f32 %v1889_v8, %v7251_v23 }
 0x2c5   : > { %2177 = vmatpush1.bf16.msra.mxu1 %v5776_v25  ;;  %9105 = vst [vmem:[#allocation14_spill] sm:$0xff] %v7302_v59  ;;  %v1978_v60 = vpack.c.bf16 %v7302_v59, %v7296_v57 }
 0x2c6   : > { %2178 = vmatprep.subr.bf16.mxu1 %v5784_v54  ;;  %9106 = vst [vmem:[#allocation15_spill] sm:$0xff] %v7305_v62  ;;  %v1979_v25 = vpack.c.bf16 %v7305_v62, %v7299_v48  ;;  %v1893_v54 = vpop.f32.mrb[52].mxu0 }
 0x2c9   : > { %2179 = vmatpush1.bf16.msra.mxu1 %v5782_v35  ;;  %v1895_v35 = vpop.f32.mrb[53].mxu0 }
 0x2ca   : > { %2180 = vmatprep.subr.bf16.mxu1 %v5787_v42  ;;  %v7312_v42 = vadd.f32 %v1893_v54, %v7255_v47 }
 0x2cc   : > { %9107 = vst [vmem:[#allocation16_spill] sm:$0xff] %v7312_v42 }
 0x2cd   : > { %2181 = vmatpush1.bf16.msra.mxu1 %v5785_v58  ;;  %v7315_v58 = vadd.f32 %v1895_v35, %v7251_v23 }
 0x2ce   : > { %2182 = vmatprep.subr.bf16.mxu1 %v5790_v33  ;;  %v1897_v33 = vpop.f32.mrb[54].mxu0 }
 0x2cf   : > { %9108 = vst [vmem:[#allocation17_spill] sm:$0xff] %v7315_v58 }
 0x2d1   : > { %2183 = vmatpush1.bf16.msra.mxu1 %v5788_v22  ;;  %v7318_v22 = vadd.f32 %v1897_v33, %v7255_v47 }
 0x2d2   : > { %2184 = vmatprep.subr.bf16.mxu1 %v5793_v55  ;;  %v1899_v55 = vpop.f32.mrb[55].mxu0 }
 0x2d3   : > { %9109 = vst [vmem:[#allocation18_spill] sm:$0xff] %v7318_v22  ;;  %v1980_v10 = vpack.c.bf16 %v7318_v22, %v7312_v42  ;;  %v1903_v18 = vpop.f32.mrb[56].mxu0 }
 0x2d4   : > { %v7328_v27 = vadd.f32 %v1903_v18, %v7255_v47 }
 0x2d5   : > { %2185 = vmatpush1.bf16.msra.mxu1 %v5791_v46  ;;  %v7321_v46 = vadd.f32 %v1899_v55, %v7251_v23 }
 0x2d6   : > { %2186 = vmatprep.subr.bf16.mxu1 %v5799_v32  ;;  %9111 = vst [vmem:[#allocation20_spill] sm:$0xff] %v7328_v27 }
 0x2d7   : > { %9110 = vst [vmem:[#allocation19_spill] sm:$0xff] %v7321_v46  ;;  %v1981_v32 = vpack.c.bf16 %v7321_v46, %v7315_v58 }
 0x2d9   : > { %2187 = vmatpush1.bf16.msra.mxu1 %v5797_v30  ;;  %v1905_v30 = vpop.f32.mrb[57].mxu0 }
 0x2da   : > { %2188 = vmatprep.subr.bf16.mxu1 %v5802_v9  ;;  %v7331_v53 = vadd.f32 %v1905_v30, %v7251_v23  ;;  %v1907_v52 = vpop.f32.mrb[58].mxu0 }
 0x2db   : > { %v7334_v9 = vadd.f32 %v1907_v52, %v7255_v47 }
 0x2dc   : > { %9112 = vst [vmem:[#allocation21_spill] sm:$0xff] %v7331_v53 }
 0x2dd   : > { %2189 = vmatpush1.bf16.msra.mxu1 %v5800_v49  ;;  %9113 = vst [vmem:[#allocation22_spill] sm:$0xff] %v7334_v9  ;;  %v1909_v49 = vpop.f32.mrb[59].mxu0 }
 0x2de   : > { %v7337_v14 = vadd.f32 %v1909_v49, %v7251_v23  ;;  %v1913_v50 = vpop.f32.mrb[60].mxu0 }
 0x2df   : > { %v1915_v3 = vpop.f32.mrb[61].mxu0  ;;  %v7344_v24 = vadd.f32 %v1913_v50, %v7255_v47 }
 0x2e0   : > { %2191 = vmatmul.mubr.bf16.vlgmr.msra.gmra.mrb[24].mxu1 %v1974_v61  ;;  %9114 = vst [vmem:[#allocation23_spill] sm:$0xff] %v7337_v14  ;;  %v1982_v61 = vpack.c.bf16 %v7334_v9, %v7328_v27  ;;  %v1983_v45 = vpack.c.bf16 %v7337_v14, %v7331_v53 }
 0x2e1   : > { %2200 = vmatprep.mubr.bf16.mxu1 %v1977_v11  ;;  %9115 = vst [vmem:[#allocation24_spill] sm:$0xff] %v7344_v24  ;;  %v1917_v11 = vpop.f32.mrb[62].mxu0 }
 0x2e2   : > { %v7350_v34 = vadd.f32 %v1917_v11, %v7255_v47  ;;  %v1919_v19 = vpop.f32.mrb[63].mxu0 }
 0x2e3   : > { %v7353_v26 = vadd.f32 %v1919_v19, %v7251_v23 }
 0x2e4   : > { %9117 = vst [vmem:[#allocation26_spill] sm:$0xff] %v7350_v34  ;;  %v1984_v8 = vpack.c.bf16 %v7350_v34, %v7344_v24 }
 0x2e5   : > { %9118 = vst [vmem:[#allocation27_spill] sm:$0xff] %v7353_v26 }
 0x2e8   : > { %2201 = vmatmul.mubr.bf16.gmra.mrb[28].mxu1 %v1976_v17  ;;  %v7347_v17 = vadd.f32 %v1915_v3, %v7251_v23 }
 0x2e9   : > { %2210 = vmatprep.mubr.bf16.mxu1 %v1979_v25  ;;  %v1923_v25 = vpop.f32.mrb[64].mxu0 }
 0x2ea   : > { %9116 = vst [vmem:[#allocation25_spill] sm:$0xff] %v7347_v17  ;;  %v1925_v54 = vpop.f32.mrb[65].mxu0  ;;  %v7360_v35 = vadd.f32 %v1923_v25, %v7255_v47 }
 0x2eb   : > { %v7363_v33 = vadd.f32 %v1925_v54, %v7251_v23  ;;  %v1927_v55 = vpop.f32.mrb[66].mxu0  ;;  %v9029_v54 = vsub.s32 7, %v6542_v37 }
 0x2ec   : > { %9119 = vst [vmem:[#allocation28_spill] sm:$0xff] %v7360_v35 }
 0x2ed   : > { %9120 = vst [vmem:[#allocation29_spill] sm:$0xff] %v7363_v33 }
 0x2f0   : > { %2211 = vmatmul.mubr.bf16.gmra.mrb[32].mxu1 %v1978_v60  ;;  %v1985_v60 = vpack.c.bf16 %v7353_v26, %v7347_v17 }
 0x2f1   : > { %2220 = vmatprep.mubr.bf16.mxu1 %v1981_v32  ;;  %v1929_v32 = vpop.f32.mrb[67].mxu0 }
 0x2f2   : > { %v7369_v18 = vadd.f32 %v1929_v32, %v7251_v23 }
 0x2f4   : > { %9122 = vst [vmem:[#allocation31_spill] sm:$0xff] %v7369_v18  ;;  %v1987_v52 = vpack.c.bf16 %v7369_v18, %v7363_v33 }
 0x2f8   : > { %2221 = vmatmul.mubr.bf16.gmra.mrb[36].mxu1 %v1980_v10  ;;  %v7366_v10 = vadd.f32 %v1927_v55, %v7255_v47  ;;  %v7395_v55 = vrot.slane %v6993_v1, %v9029_v54 }
 0x2f9   : > { %2230 = vmatprep.mubr.bf16.mxu1 %v1983_v45 }
 0x2fa   : > { %9121 = vst [vmem:[#allocation30_spill] sm:$0xff] %v7366_v10  ;;  %v1986_v30 = vpack.c.bf16 %v7366_v10, %v7360_v35 }
 0x300   : > { %2231 = vmatmul.mubr.bf16.gmra.mrb[40].mxu1 %v1982_v61 }
 0x301   : > { %2240 = vmatprep.mubr.bf16.mxu1 %v1985_v60 }
 0x308   : > { %2241 = vmatmul.mubr.bf16.gmra.mrb[44].mxu1 %v1984_v8 }
 0x309   : > { %2250 = vmatprep.mubr.bf16.mxu1 %v1987_v52 }
 0x310   : > { %2251 = vmatmul.mubr.bf16.gmra.mrb[48].mxu1 %v1986_v30 }
 0x34a   : > { %v1933_v49 = vpop.f32.mrb[68].mxu0 }
 0x34b   : > { %v1935_v61 = vpop.f32.mrb[69].mxu0  ;;  %v7376_v45 = vadd.f32 %v1933_v49, %v7255_v47 }
 0x34c   : > { %v7379_v50 = vadd.f32 %v1935_v61, %v7251_v23  ;;  %v1937_v3 = vpop.f32.mrb[70].mxu0 }
 0x34d   : > { %9123 = vst [vmem:[#allocation32_spill] sm:$0xff] %v7376_v45  ;;  %v7382_v11 = vadd.f32 %v1937_v3, %v7255_v47  ;;  %v1939_v19 = vpop.f32.mrb[71].mxu0 }
 0x34e   : > { %9124 = vst [vmem:[#allocation33_spill] sm:$0xff] %v7379_v50  ;;  %v7385_v8 = vadd.f32 %v1939_v19, %v7251_v23 }
 0x34f   : > { %9125 = vst [vmem:[#allocation34_spill] sm:$0xff] %v7382_v11  ;;  %v1988_v60 = vpack.c.bf16 %v7382_v11, %v7376_v45 }
 0x350   : > { %9126 = vst [vmem:[#allocation35_spill] sm:$0xff] %v7385_v8  ;;  %v1989_v25 = vpack.c.bf16 %v7385_v8, %v7379_v50 }
 0x352   : > { %2260 = vmatprep.mubr.bf16.mxu1 %v1989_v25 }
 0x353   : > { %2261 = vmatmul.mubr.bf16.gmra.mrb[52].mxu1 %v1988_v60 }
 0x373   : > { %v5604_v47 = vpop.f32.mrb[8].mxu1 }
 0x374   : > { %v1471_v32 = vadd.f32 %v5604_v47, %v7395_v55  ;;  %v1462_v23 = vpop.f32.mrb[9].mxu1 }
 0x375   : > { %v1463_v30 = vadd.f32 %v1462_v23, %v7395_v55  ;;  %v5605_v52 = vpop.f32.mrb[10].mxu1 }
 0x376   : > { %v1631_v49 = vmul.f32 0.70710677, %v1471_v32  ;;  %v1474_v61 = vadd.f32 %v5605_v52, %v7395_v55  ;;  %v1465_v3 = vpop.f32.mrb[11].mxu1  ;;  %v1615_v45 = vmul.f32 0.5, %v1471_v32 }
 0x377   : > { %v1629_v19 = vmul.f32 0.70710677, %v1463_v30  ;;  %v1466_v60 = vadd.f32 %v1465_v3, %v7395_v55  ;;  %v1613_v8 = vmul.f32 0.5, %v1463_v30 }
 0x378   : > { %6153 = verf.f32 %v1631_v49  ;;  %v1632_v25 = vmul.f32 0.70710677, %v1474_v61  ;;  %v1616_v50 = vmul.f32 0.5, %v1474_v61 }
 0x379   : > { %6155 = verf.f32 %v1629_v19  ;;  %v1630_v0 = vmul.f32 0.70710677, %v1466_v60  ;;  %v1614_v10 = vmul.f32 0.5, %v1466_v60  ;;  %v9127_v60 = vmov 0  }
 0x37a   : > { %6157 = verf.f32 %v1632_v25 }
 0x37b   : > { %6159 = verf.f32 %v1630_v0 }
 0x37f   : > { %v5608_v1 = vpop.f32.mrb[12].mxu1 }
 0x380   : > { %v1487_v47 = vadd.f32 %v5608_v1, %v7395_v55  ;;  %v1478_v54 = vpop.f32.mrb[13].mxu1 }
 0x381   : > { %v7403_v23 = vadd.f32 %v1478_v54, %v7395_v55  ;;  %v5609_v37 = vpop.f32.mrb[14].mxu1 }
 0x382   : > { %v6154_v39 = vpop.eup %6153  ;;  %v1635_v52 = vmul.f32 0.70710677, %v1487_v47  ;;  %v1490_v7 = vadd.f32 %v5609_v37, %v7395_v55  ;;  %v1481_v13 = vpop.f32.mrb[15].mxu1 }
 0x383   : > { %v6156_v3 = vpop.eup %6155  ;;  %v1663_v49 = vadd.f32 1.0, %v6154_v39  ;;  %v1633_v19 = vmul.f32 0.70710677, %v7403_v23  ;;  %v7408_v25 = vadd.f32 %v1481_v13, %v7395_v55 }
 0x384   : > { %v6158_v0 = vpop.eup %6157  ;;  %v1661_v1 = vadd.f32 1.0, %v6156_v3  ;;  %6161 = verf.f32 %v1635_v52  ;;  %v1636_v11 = vmul.f32 0.70710677, %v1490_v7 }
 0x385   : > { %v6160_v54 = vpop.eup %6159  ;;  %v1664_v35 = vadd.f32 1.0, %v6158_v0  ;;  %6163 = verf.f32 %v1633_v19  ;;  %v1634_v39 = vmul.f32 0.70710677, %v7408_v25  ;;  %v1679_v18 = vmul.f32 %v1663_v49, %v1615_v45  ;;  %v5794_v49 = vld [vmem:[%s9023_s3 + $0x90] ss:$8 sps:$4 sm:$0xff]  }
 0x386   : > { %v1662_v37 = vadd.f32 1.0, %v6160_v54  ;;  %6165 = verf.f32 %v1636_v11  ;;  %v1677_v13 = vmul.f32 %v1661_v1, %v1613_v8  ;;  %v5779_v11 = vld [vmem:[%s9023_s3 + $0x80] ss:$8 sps:$4 sm:$0xff]   ;;  %v5805_v0 = vld [vmem:[%s9023_s3 + $0xa4] ss:$8 sps:$4 sm:$0xff]  }
 0x387   : > { %v1680_v33 = vmul.f32 %v1664_v35, %v1616_v50  ;;  %v5612_v24 = vpop.f32.mrb[16].mxu1  ;;  %6167 = verf.f32 %v1634_v39 }
 0x388   : > { %v1678_v34 = vmul.f32 %v1662_v37, %v1614_v10  ;;  %v7412_v32 = vadd.f32 %v5612_v24, %v7395_v55  ;;  %v1494_v52 = vpop.f32.mrb[17].mxu1 }
 0x389   : > { %v7414_v3 = vpack.c.bf16 %v1680_v33, %v1679_v18  ;;  %v7417_v30 = vadd.f32 %v1494_v52, %v7395_v55  ;;  %v5613_v61 = vpop.f32.mrb[18].mxu1  ;;  %v5796_v33 = vld [vmem:[%s9023_s3 + $0x94] ss:$8 sps:$4 sm:$0xff]  }
 0x38a   : > { %v7422_v45 = vpack.c.bf16 %v1678_v34, %v1677_v13  ;;  %v1639_v35 = vmul.f32 0.70710677, %v7412_v32  ;;  %v7426_v10 = vadd.f32 %v5613_v61, %v7395_v55  ;;  %v1497_v24 = vpop.f32.mrb[19].mxu1  ;;  %v1619_v13 = vmul.f32 0.5, %v1487_v47 }
 0x38b   : > { %v1637_v18 = vmul.f32 0.70710677, %v7417_v30  ;;  %v7433_v50 = vadd.f32 %v1497_v24, %v7395_v55  ;;  %v1620_v24 = vmul.f32 0.5, %v1490_v7 }
 0x38c   : > { %6169 = verf.f32 %v1639_v35  ;;  %v1640_v8 = vmul.f32 0.70710677, %v7426_v10  ;;  %5252 = vmatmul.mubr.msk.bf16.vlgmr.msra.gmra.mrb[72].mxu0 %vm793_vm1, %v7422_v45 }
 0x38d   : > { %6171 = verf.f32 %v1637_v18  ;;  %v1638_v34 = vmul.f32 0.70710677, %v7433_v50  ;;  %2689 = vmatpush1.bf16.msra.mxu0 %v5779_v11  ;;  %2553 = vmatprep.mubr.bf16.mxu0 %v9127_v60  ;;  %v5803_v11 = vld [vmem:[%s9023_s3 + $0xa0] ss:$8 sps:$4 sm:$0xff]  }
 0x38e   : > { %v6162_v19 = vpop.eup %6161  ;;  %6173 = verf.f32 %v1640_v8  ;;  %2690 = vmatprep.subr.bf16.mxu0 %v5796_v33 }
 0x38f   : > { %v6164_v1 = vpop.eup %6163  ;;  %v1667_v54 = vadd.f32 1.0, %v6162_v19  ;;  %6175 = verf.f32 %v1638_v34  ;;  %v5616_v37 = vpop.f32.mrb[20].mxu1  ;;  %v5808_v34 = vld [vmem:[%s9023_s3 + $0xb4] ss:$8 sps:$4 sm:$0xff]   ;;  %v1617_v19 = vmul.f32 0.5, %v7403_v23 }
 0x390   : > { %v6166_v39 = vpop.eup %6165  ;;  %v7447_v52 = vadd.f32 %v5616_v37, %v7395_v55  ;;  %v1510_v61 = vpop.f32.mrb[21].mxu1  ;;  %v1665_v35 = vadd.f32 1.0, %v6164_v1  ;;  %v1618_v37 = vmul.f32 0.5, %v7408_v25 }
 0x391   : > { %v1668_v33 = vadd.f32 1.0, %v6166_v39  ;;  %v1511_v18 = vadd.f32 %v1510_v61, %v7395_v55  ;;  %v5617_v8 = vpop.f32.mrb[22].mxu1  ;;  %2691 = vmatpush1.bf16.msra.mxu0 %v5794_v49  ;;  %v6168_v47 = vpop.eup %6167  ;;  %v1683_v7 = vmul.f32 %v1667_v54, %v1619_v13 }
 0x392   : > { %v1643_v26 = vmul.f32 0.70710677, %v7447_v52  ;;  %v1522_v17 = vadd.f32 %v5617_v8, %v7395_v55  ;;  %v1513_v1 = vpop.f32.mrb[23].mxu1  ;;  %2692 = vmatprep.subr.bf16.mxu0 %v5805_v0  ;;  %v1666_v61 = vadd.f32 1.0, %v6168_v47  ;;  %v1681_v23 = vmul.f32 %v1665_v35, %v1617_v19  ;;  %v5806_v0 = vld [vmem:[%s9023_s3 + $0xb0] ss:$8 sps:$4 sm:$0xff]  }
 0x393   : > { %v1684_v39 = vmul.f32 %v1668_v33, %v1620_v24  ;;  %v1641_v27 = vmul.f32 0.70710677, %v1511_v18  ;;  %v1514_v9 = vadd.f32 %v1513_v1, %v7395_v55  ;;  %v5811_v55 = vld [vmem:[%s9023_s3 + $0x344] ss:$8 sps:$4 sm:$0xff]   ;;  %v1623_v8 = vmul.f32 0.5, %v7412_v32 }
 0x394   : > { %6177 = verf.f32 %v1643_v26  ;;  %v1644_v49 = vmul.f32 0.70710677, %v1522_v17  ;;  %5253 = vmatmul.mubr.msk.bf16.gmra.mrb[76].mxu0 %vm793_vm1, %v7414_v3  ;;  %v1682_v25 = vmul.f32 %v1666_v61, %v1618_v37  ;;  %v1624_v47 = vmul.f32 0.5, %v7426_v10 }
 0x395   : > { %v7463_v14 = vpack.c.bf16 %v1684_v39, %v1683_v7  ;;  %6179 = verf.f32 %v1641_v27  ;;  %2563 = vmatprep.mubr.bf16.mxu0 %v9127_v60  ;;  %2693 = vmatpush1.bf16.msra.mxu0 %v5803_v11  ;;  %v1642_v26 = vmul.f32 0.70710677, %v1514_v9  ;;  %v1622_v37 = vmul.f32 0.5, %v7433_v50 }
 0x396   : > { %v6170_v54 = vpop.eup %6169  ;;  %6181 = verf.f32 %v1644_v49  ;;  %2694 = vmatprep.subr.bf16.mxu0 %v5808_v34  ;;  %v7472_v35 = vpack.c.bf16 %v1682_v25, %v1681_v23  ;;  %v1621_v34 = vmul.f32 0.5, %v7417_v30  ;;  %v1627_v50 = vmul.f32 0.5, %v7447_v52  ;;  %v5812_v52 = vld [vmem:[%s9023_s3 + $0x350] ss:$8 sps:$4 sm:$0xff]  }
 0x397   : > { %v6172_v13 = vpop.eup %6171  ;;  %v1671_v24 = vadd.f32 1.0, %v6170_v54  ;;  %6183 = verf.f32 %v1642_v26  ;;  %v1628_v26 = vmul.f32 0.5, %v1522_v17  ;;  %v5814_v17 = vld [vmem:[%s9023_s3 + $0x354] ss:$8 sps:$4 sm:$0xff]  }
 0x398   : > { %v6174_v27 = vpop.eup %6173  ;;  %v1669_v33 = vadd.f32 1.0, %v6172_v13 }
 0x399   : > { %v6176_v11 = vpop.eup %6175  ;;  %v1672_v19 = vadd.f32 1.0, %v6174_v27  ;;  %2695 = vmatpush1.bf16.msra.mxu0 %v5806_v0  ;;  %v1687_v7 = vmul.f32 %v1671_v24, %v1623_v8  ;;  %v1625_v24 = vmul.f32 0.5, %v1511_v18  ;;  %v5817_v18 = vld [vmem:[%s9023_s3 + $0x364] ss:$8 sps:$4 sm:$0xff]  }
 0x39a   : > { %v1670_v1 = vadd.f32 1.0, %v6176_v11  ;;  %3939 = vmatprep.subr.bf16.mxu0 %v5811_v55  ;;  %v1685_v61 = vmul.f32 %v1669_v33, %v1621_v34  ;;  %v1626_v11 = vmul.f32 0.5, %v1514_v9  ;;  %v5809_v9 = vld [vmem:[%s9023_s3 + $0x340] ss:$8 sps:$4 sm:$0xff]  }
 0x39b   : > { %v1688_v39 = vmul.f32 %v1672_v19, %v1624_v47 }
 0x39c   : > { %v1686_v49 = vmul.f32 %v1670_v1, %v1622_v37  ;;  %5254 = vmatmul.mubr.msk.bf16.gmra.mrb[80].mxu0 %vm793_vm1, %v7472_v35  ;;  %v5815_v1 = vld [vmem:[%s9023_s3 + $0x360] ss:$8 sps:$4 sm:$0xff]  }
 0x39d   : > { %v7480_v23 = vpack.c.bf16 %v1688_v39, %v1687_v7  ;;  %2573 = vmatprep.mubr.bf16.mxu0 %v9127_v60  ;;  %v5820_v7 = vld [vmem:[%s9023_s3 + $0x374] ss:$8 sps:$4 sm:$0xff]   ;;  %v5818_v39 = vld [vmem:[%s9023_s3 + $0x370] ss:$8 sps:$4 sm:$0xff]  }
 0x39e   : > { %v6178_v32 = vpop.eup %6177  ;;  %v7483_v10 = vpack.c.bf16 %v1686_v49, %v1685_v61  ;;  %v5823_v61 = vld [vmem:[%s9023_s3 + $0x304] ss:$8 sps:$4 sm:$0xff]   ;;  %v5833_v49 = vld [vmem:[%s9023_s3 + $0x200] ss:$8 sps:$4 sm:$0xff]  }
 0x39f   : > { %v6180_v25 = vpop.eup %6179  ;;  %v1675_v30 = vadd.f32 1.0, %v6178_v32  ;;  %v5835_v32 = vld [vmem:[%s9023_s3 + $0x204] ss:$8 sps:$4 sm:$0xff]  }
 0x3a0   : > { %v6182_v0 = vpop.eup %6181  ;;  %v1673_v54 = vadd.f32 1.0, %v6180_v25  ;;  %3089 = vmatprep.subr.bf16.mxu1 %v5835_v32  ;;  %v5836_v25 = vld [vmem:[%s9023_s3 + $0x210] ss:$8 sps:$4 sm:$0xff]   ;;  %v5826_v32 = vld [vmem:[%s9023_s3 + $0x314] ss:$8 sps:$4 sm:$0xff]  }
 0x3a1   : > { %v1676_v55 = vadd.f32 1.0, %v6182_v0  ;;  %v6184_v13 = vpop.eup %6183  ;;  %v1691_v27 = vmul.f32 %v1675_v30, %v1627_v50  ;;  %3090 = vmatpush1.bf16.msra.mxu1 %v5833_v49  ;;  %v5838_v30 = vld [vmem:[%s9023_s3 + $0x214] ss:$8 sps:$4 sm:$0xff]   ;;  %v5841_v0 = vld [vmem:[%s9023_s3 + $0x224] ss:$8 sps:$4 sm:$0xff]  }
 0x3a2   : > { %v1674_v8 = vadd.f32 1.0, %v6184_v13  ;;  %v1689_v47 = vmul.f32 %v1673_v54, %v1625_v24  ;;  %3091 = vmatprep.subr.bf16.mxu1 %v5838_v30  ;;  %v5839_v50 = vld [vmem:[%s9023_s3 + $0x220] ss:$8 sps:$4 sm:$0xff]   ;;  %v5842_v54 = vld [vmem:[%s9023_s3 + $0x230] ss:$8 sps:$4 sm:$0xff]  }
 0x3a3   : > { %v1692_v33 = vmul.f32 %v1676_v55, %v1628_v26  ;;  %v5844_v26 = vld [vmem:[%s9023_s3 + $0x234] ss:$8 sps:$4 sm:$0xff]   ;;  %v5847_v55 = vld [vmem:[%s9023_s3 + $0x244] ss:$8 sps:$4 sm:$0xff]   ;;  %v5845_v13 = vld [vmem:[%s9023_s3 + $0x240] ss:$8 sps:$4 sm:$0xff]  }
 0x3a4   : > { %5255 = vmatmul.mubr.msk.bf16.gmra.mrb[84].mxu0 %vm793_vm1, %v7463_v14  ;;  %v1690_v34 = vmul.f32 %v1674_v8, %v1626_v11  ;;  %v5848_v24 = vld [vmem:[%s9023_s3 + $0x250] ss:$8 sps:$4 sm:$0xff]   ;;  %v5851_v8 = vld [vmem:[%s9023_s3 + $0x260] ss:$8 sps:$4 sm:$0xff]   ;;  %v5862_v30 = vld [vmem:[%s9023_s3 + $0x294] ss:$8 sps:$4 sm:$0xff]  }
 0x3a5   : > { %v7488_v19 = vpack.c.bf16 %v1692_v33, %v1691_v27  ;;  %2583 = vmatprep.mubr.bf16.mxu0 %v9127_v60  ;;  %3092 = vmatpush1.bf16.msra.mxu1 %v5836_v25  ;;  %v5850_v27 = vld [vmem:[%s9023_s3 + $0x254] ss:$8 sps:$4 sm:$0xff]   ;;  %v5853_v33 = vld [vmem:[%s9023_s3 + $0x264] ss:$8 sps:$4 sm:$0xff]  }
 0x3a6   : > { %v7491_v37 = vpack.c.bf16 %v1690_v34, %v1689_v47  ;;  %3093 = vmatprep.subr.bf16.mxu1 %v5841_v0  ;;  %v5860_v0 = vld [vmem:[%s9023_s3 + $0x290] ss:$8 sps:$4 sm:$0xff]  }
 0x3a9   : > { %3094 = vmatpush1.bf16.msra.mxu1 %v5839_v50  ;;  %v5824_v50 = vld [vmem:[%s9023_s3 + $0x310] ss:$8 sps:$4 sm:$0xff]  }
 0x3aa   : > { %3095 = vmatprep.subr.bf16.mxu1 %v5844_v26 }
 0x3ac   : > { %5256 = vmatmul.mubr.msk.bf16.gmra.mrb[88].mxu0 %vm793_vm1, %v7483_v10 }
 0x3ad   : > { %2593 = vmatprep.mubr.bf16.mxu0 %v9127_v60  ;;  %3096 = vmatpush1.bf16.msra.mxu1 %v5842_v54  ;;  %v5865_v54 = vld [vmem:[%s9023_s3 + $0x2a4] ss:$8 sps:$4 sm:$0xff]  }
 0x3ae   : > { %3097 = vmatprep.subr.bf16.mxu1 %v5847_v55 }
 0x3b1   : > { %3098 = vmatpush1.bf16.msra.mxu1 %v5845_v13  ;;  %v5863_v13 = vld [vmem:[%s9023_s3 + $0x2a0] ss:$8 sps:$4 sm:$0xff]  }
 0x3b2   : > { %3099 = vmatprep.subr.bf16.mxu1 %v5850_v27 }
 0x3b3   : > { %v7589_v11 = vpop.f32.mrb[24].mxu1 }
 0x3b4   : > { %5257 = vmatmul.mubr.msk.bf16.gmra.mrb[92].mxu0 %vm793_vm1, %v7480_v23  ;;  %v7594_v47 = vpop.f32.mrb[25].mxu1 }
 0x3b5   : > { %2603 = vmatprep.mubr.bf16.mxu0 %v9127_v60  ;;  %3100 = vmatpush1.bf16.msra.mxu1 %v5848_v24  ;;  %v7596_v34 = vpop.f32.mrb[26].mxu1  ;;  %v5827_v24 = vld [vmem:[%s9023_s3 + $0x320] ss:$8 sps:$4 sm:$0xff]  }
 0x3b6   : > { %3101 = vmatprep.subr.bf16.mxu1 %v5853_v33  ;;  %v5832_v33 = vld [vmem:[%s9023_s3 + $0x334] ss:$8 sps:$4 sm:$0xff]  }
 0x3b9   : > { %3102 = vmatpush1.bf16.msra.mxu1 %v5851_v8 }
 0x3bc   : > { %5258 = vmatmul.mubr.msk.bf16.gmra.mrb[96].mxu0 %vm793_vm1, %v7491_v37 }
 0x3bd   : > { %2613 = vmatprep.mubr.bf16.mxu0 %v9127_v60 }
 0x3c4   : > { %5259 = vmatmul.mubr.msk.bf16.gmra.mrb[100].mxu0 %vm793_vm1, %v7488_v19 }
 0x3c5   : > { %2720 = vmatprep.mubr.bf16.mxu0 %v9127_v60 }
 0x3cc   : > { %5268 = vmatmul.mubr.msk.bf16.vlgmr.msra.gmra.mrb[72].mxu0 %vm793_vm1, %v7050_v16 }
 0x3cd   : > { %2730 = vmatprep.mubr.bf16.mxu0 %v9127_v60  ;;  %3940 = vmatpush1.bf16.msra.mxu0 %v5809_v9  ;;  %v7598_v9 = vpop.f32.mrb[27].mxu1 }
 0x3ce   : > { %3941 = vmatprep.subr.bf16.mxu0 %v5814_v17  ;;  %v5854_v17 = vld [vmem:[%s9023_s3 + $0x270] ss:$8 sps:$4 sm:$0xff]  }
 0x3d1   : > { %3942 = vmatpush1.bf16.msra.mxu0 %v5812_v52  ;;  %v5856_v52 = vld [vmem:[%s9023_s3 + $0x274] ss:$8 sps:$4 sm:$0xff]  }
 0x3d2   : > { %3943 = vmatprep.subr.bf16.mxu0 %v5817_v18  ;;  %v5859_v18 = vld [vmem:[%s9023_s3 + $0x284] ss:$8 sps:$4 sm:$0xff]   ;;  %3103 = vmatprep.subr.bf16.mxu1 %v5856_v52  ;;  %v5866_v52 = vld [vmem:[%s9023_s3 + $0x2b0] ss:$8 sps:$4 sm:$0xff]  }
 0x3d3   : > { %3104 = vmatpush1.bf16.msra.mxu1 %v5854_v17  ;;  %v5868_v17 = vld [vmem:[%s9023_s3 + $0x2b4] ss:$8 sps:$4 sm:$0xff]  }
 0x3d4   : > { %5269 = vmatmul.mubr.msk.bf16.gmra.mrb[76].mxu0 %vm793_vm1, %v7047_v51  ;;  %3105 = vmatprep.subr.bf16.mxu1 %v5859_v18  ;;  %v5830_v18 = vld [vmem:[%s9023_s3 + $0x330] ss:$8 sps:$4 sm:$0xff]  }
 0x3d5   : > { %2740 = vmatprep.mubr.bf16.mxu0 %v9127_v60  ;;  %3944 = vmatpush1.bf16.msra.mxu0 %v5815_v1  ;;  %v7612_v1 = vpop.f32.mrb[28].mxu1 }
 0x3d6   : > { %3945 = vmatprep.subr.bf16.mxu0 %v5820_v7  ;;  %v7614_v7 = vpop.f32.mrb[29].mxu1 }
 0x3d7   : > { %v7622_v49 = vpop.f32.mrb[30].mxu1 }
 0x3d8   : > { %v7627_v25 = vpop.f32.mrb[31].mxu1 }
 0x3d9   : > { %3946 = vmatpush1.bf16.msra.mxu0 %v5818_v39  ;;  %v5857_v39 = vld [vmem:[%s9023_s3 + $0x280] ss:$8 sps:$4 sm:$0xff]   ;;  %v7647_v26 = vpop.f32.mrb[32].mxu1 }
 0x3da   : > { %4092 = vmatprep.subr.bf16.mxu0 %v5823_v61  ;;  %v5821_v61 = vld [vmem:[%s9023_s3 + $0x300] ss:$8 sps:$4 sm:$0xff]   ;;  %3106 = vmatpush1.bf16.msra.mxu1 %v5857_v39  ;;  %v7649_v55 = vpop.f32.mrb[33].mxu1  ;;  %v5871_v39 = vld [vmem:[%s9023_s3 + $0x2c4] ss:$8 sps:$4 sm:$0xff]  }
 0x3db   : > { %3107 = vmatprep.subr.bf16.mxu1 %v5862_v30  ;;  %v7657_v27 = vpop.f32.mrb[34].mxu1 }
 0x3dc   : > { %5270 = vmatmul.mubr.msk.bf16.gmra.mrb[80].mxu0 %vm793_vm1, %v7074_v2  ;;  %v7662_v8 = vpop.f32.mrb[35].mxu1 }
 0x3dd   : > { %2750 = vmatprep.mubr.bf16.mxu0 %v9127_v60 }
 0x3de   : > { %3108 = vmatpush1.bf16.msra.mxu1 %v5860_v0  ;;  %v5874_v0 = vld [vmem:[%s9023_s3 + $0x2d4] ss:$8 sps:$4 sm:$0xff]  }
 0x3df   : > { %3109 = vmatprep.subr.bf16.mxu1 %v5865_v54  ;;  %v5872_v54 = vld [vmem:[%s9023_s3 + $0x2d0] ss:$8 sps:$4 sm:$0xff]  }
 0x3e2   : > { %3110 = vmatpush1.bf16.msra.mxu1 %v5863_v13 }
 0x3e3   : > { %3111 = vmatprep.subr.bf16.mxu1 %v5868_v17  ;;  %v5875_v17 = vld [vmem:[%s9023_s3 + $0x2e0] ss:$8 sps:$4 sm:$0xff]  }
 0x3e4   : > { %5271 = vmatmul.mubr.msk.bf16.gmra.mrb[84].mxu0 %vm793_vm1, %v7066_v20 }
 0x3e5   : > { %2760 = vmatprep.mubr.bf16.mxu0 %v9127_v60 }
 0x3e6   : > { %3112 = vmatpush1.bf16.msra.mxu1 %v5866_v52  ;;  %v5880_v52 = vld [vmem:[%s9023_s3 + $0x2f4] ss:$8 sps:$4 sm:$0xff]  }
 0x3e7   : > { %3113 = vmatprep.subr.bf16.mxu1 %v5871_v39 }
 0x3ec   : > { %5272 = vmatmul.mubr.msk.bf16.gmra.mrb[88].mxu0 %vm793_vm1, %v7103_v56 }
 0x3ed   : > { %2770 = vmatprep.mubr.bf16.mxu0 %v9127_v60 }
 0x3f4   : > { %5273 = vmatmul.mubr.msk.bf16.gmra.mrb[92].mxu0 %vm793_vm1, %v7093_v21 }
 0x3f5   : > { %2780 = vmatprep.mubr.bf16.mxu0 %v9127_v60 }
 0x3fc   : > { %5274 = vmatmul.mubr.msk.bf16.gmra.mrb[96].mxu0 %vm793_vm1, %v7144_v41 }
 0x3fd   : > { %2790 = vmatprep.mubr.bf16.mxu0 %v9127_v60 }
 0x404   : > { %5275 = vmatmul.mubr.msk.bf16.gmra.mrb[100].mxu0 %vm793_vm1, %v7138_v44 }
 0x405   : > { %3971 = vmatprep.mubr.bf16.mxu0 %v9127_v60 }
 0x40c   : > { %5348 = vmatmul.mubr.msk.bf16.vlgmr.msra.gmra.mrb[104].mxu0 %vm793_vm1, %v7422_v45  ;;  %v5829_v45 = vld [vmem:[%s9023_s3 + $0x324] ss:$8 sps:$4 sm:$0xff]  }
 0x40d   : > { %3981 = vmatprep.mubr.bf16.mxu0 %v9127_v60  ;;  %4093 = vmatpush1.bf16.msra.mxu0 %v5821_v61  ;;  %v7679_v61 = vpop.f32.mrb[36].mxu1 }
 0x40e   : > { %4094 = vmatprep.subr.bf16.mxu0 %v5826_v32  ;;  %v5869_v32 = vld [vmem:[%s9023_s3 + $0x2c0] ss:$8 sps:$4 sm:$0xff]  }
 0x40f   : > { %3114 = vmatpush1.bf16.msra.mxu1 %v5869_v32 }
 0x410   : > { %3115 = vmatprep.subr.bf16.mxu1 %v5874_v0 }
 0x411   : > { %4095 = vmatpush1.bf16.msra.mxu0 %v5824_v50 }
 0x412   : > { %4096 = vmatprep.subr.bf16.mxu0 %v5829_v45 }
 0x413   : > { %3116 = vmatpush1.bf16.msra.mxu1 %v5872_v54 }
 0x414   : > { %5349 = vmatmul.mubr.msk.bf16.gmra.mrb[108].mxu0 %vm793_vm1, %v7414_v3  ;;  %v7681_v3 = vpop.f32.mrb[37].mxu1 }
 0x415   : > { %3991 = vmatprep.mubr.bf16.mxu0 %v9127_v60  ;;  %4097 = vmatpush1.bf16.msra.mxu0 %v5827_v24  ;;  %v7686_v30 = vpop.f32.mrb[38].mxu1 }
 0x416   : > { %4098 = vmatprep.subr.bf16.mxu0 %v5832_v33  ;;  %v7691_v50 = vpop.f32.mrb[39].mxu1 }
 0x417   : > { %v7699_v45 = vpop.f32.mrb[40].mxu1 }
 0x418   : > { %v7701_v13 = vpop.f32.mrb[41].mxu1 }
 0x419   : > { %4099 = vmatpush1.bf16.msra.mxu0 %v5830_v18  ;;  %v7703_v24 = vpop.f32.mrb[42].mxu1 }
 0x41a   : > { %v7705_v33 = vpop.f32.mrb[43].mxu1 }
 0x41b   : > { %v7719_v18 = vpop.f32.mrb[44].mxu1 }
 0x41c   : > { %5350 = vmatmul.mubr.msk.bf16.gmra.mrb[112].mxu0 %vm793_vm1, %v7472_v35  ;;  %v5877_v35 = vld [vmem:[%s9023_s3 + $0x2e4] ss:$8 sps:$4 sm:$0xff]   ;;  %v7721_v39 = vpop.f32.mrb[45].mxu1 }
 0x41d   : > { %4001 = vmatprep.mubr.bf16.mxu0 %v9127_v60  ;;  %3117 = vmatprep.subr.bf16.mxu1 %v5877_v35  ;;  %v7726_v32 = vpop.f32.mrb[46].mxu1 }
 0x41e   : > { %3118 = vmatpush1.bf16.msra.mxu1 %v5875_v17  ;;  %v7728_v0 = vpop.f32.mrb[47].mxu1 }
 0x41f   : > { %3119 = vmatprep.subr.bf16.mxu1 %v5880_v52  ;;  %v7733_v54 = vpop.f32.mrb[48].mxu1 }
 0x420   : > { %v7735_v35 = vpop.f32.mrb[49].mxu1 }
 0x421   : > { %v7737_v17 = vpop.f32.mrb[50].mxu1 }
 0x422   : > { %v7739_v53 = vpop.f32.mrb[51].mxu1 }
 0x424   : > { %5351 = vmatmul.mubr.msk.bf16.gmra.mrb[116].mxu0 %vm793_vm1, %v7463_v14  ;;  %v5878_v14 = vld [vmem:[%s9023_s3 + $0x2f0] ss:$8 sps:$4 sm:$0xff]  }
 0x425   : > { %4011 = vmatprep.mubr.bf16.mxu0 %v9127_v60  ;;  %3120 = vmatpush1.bf16.msra.mxu1 %v5878_v14 }
 0x426   : > { %v7744_v52 = vpop.f32.mrb[52].mxu1 }
 0x427   : > { %v7746_v42 = vpop.f32.mrb[53].mxu1 }
 0x42c   : > { %5352 = vmatmul.mubr.msk.bf16.gmra.mrb[120].mxu0 %vm793_vm1, %v7483_v10  ;;  %v7748_v10 = vpop.f32.mrb[54].mxu1 }
 0x42d   : > { %4021 = vmatprep.mubr.bf16.mxu0 %v9127_v60  ;;  %v7750_v14 = vpop.f32.mrb[55].mxu1 }
 0x434   : > { %5353 = vmatmul.mubr.msk.bf16.gmra.mrb[124].mxu0 %vm793_vm1, %v7480_v23 }
 0x435   : > { %4031 = vmatprep.mubr.bf16.mxu0 %v9127_v60 }
 0x43c   : > { %5354 = vmatmul.mubr.msk.bf16.gmra.mrb[128].mxu0 %vm793_vm1, %v7491_v37 }
 0x43d   : > { %4041 = vmatprep.mubr.bf16.mxu0 %v9127_v60 }
 0x444   : > { %5355 = vmatmul.mubr.msk.bf16.gmra.mrb[132].mxu0 %vm793_vm1, %v7488_v19 }
 0x445   : > { %4124 = vmatprep.mubr.bf16.mxu0 %v9127_v60 }
 0x44c   : > { %5364 = vmatmul.mubr.msk.bf16.vlgmr.msra.gmra.mrb[104].mxu0 %vm793_vm1, %v7050_v16  ;;  %v7785_v16 = vrot.slane %v7242_v15, %v6663_v28 }
 0x44d   : > { %4134 = vmatprep.mubr.bf16.mxu0 %v9127_v60 }
 0x44e   : > { %v2205_v19 = vadd.f32 %v7614_v7, %v7785_v16 }
 0x450   : > { %v7817_v59 = vmul.f32 0.5, %v2205_v19 }
 0x454   : > { %5365 = vmatmul.mubr.msk.bf16.gmra.mrb[108].mxu0 %vm793_vm1, %v7047_v51  ;;  %v7781_v51 = vrot.slane %v7247_v5, %v6663_v28 }
 0x455   : > { %4144 = vmatprep.mubr.bf16.mxu0 %v9127_v60 }
 0x456   : > { %v2207_v37 = vadd.f32 %v7622_v49, %v7781_v51  ;;  %v2213_v22 = vadd.f32 %v7647_v26, %v7781_v51  ;;  %v2217_v7 = vadd.f32 %v7657_v27, %v7781_v51 }
 0x458   : > { %v2313_v48 = vmul.f32 0.70710677, %v2217_v7 }
 0x45c   : > { %5366 = vmatmul.mubr.msk.bf16.gmra.mrb[112].mxu0 %vm793_vm1, %v7074_v2  ;;  %v2195_v2 = vadd.f32 %v7594_v47, %v7785_v16 }
 0x45d   : > { %4154 = vmatprep.mubr.bf16.mxu0 %v9127_v60 }
 0x45e   : > { %v2272_v46 = vmul.f32 0.5, %v2195_v2 }
 0x464   : > { %5367 = vmatmul.mubr.msk.bf16.gmra.mrb[116].mxu0 %vm793_vm1, %v7066_v20  ;;  %v2193_v20 = vadd.f32 %v7589_v11, %v7781_v51  ;;  %v2209_v11 = vadd.f32 %v7627_v25, %v7785_v16  ;;  %v7813_v25 = vadd.f32 %v7662_v8, %v7785_v16 }
 0x465   : > { %4164 = vmatprep.mubr.bf16.mxu0 %v9127_v60 }
 0x466   : > { %v2314_v8 = vmul.f32 0.70710677, %v7813_v25 }
 0x46c   : > { %5368 = vmatmul.mubr.msk.bf16.gmra.mrb[120].mxu0 %vm793_vm1, %v7103_v56  ;;  %v2303_v56 = vmul.f32 0.70710677, %v2193_v20 }
 0x46d   : > { %4174 = vmatprep.mubr.bf16.mxu0 %v9127_v60 }
 0x46e   : > { %6185 = verf.f32 %v2303_v56  ;;  %v2310_v56 = vmul.f32 0.70710677, %v2209_v11 }
 0x474   : > { %5369 = vmatmul.mubr.msk.bf16.gmra.mrb[124].mxu0 %vm793_vm1, %v7093_v21  ;;  %v2197_v21 = vadd.f32 %v7596_v34, %v7781_v51  ;;  %v2308_v34 = vmul.f32 0.70710677, %v2205_v19  ;;  %v7838_v19 = vadd.f32 %v7681_v3, %v7785_v16 }
 0x475   : > { %4184 = vmatprep.mubr.bf16.mxu0 %v9127_v60 }
 0x476   : > { %v2305_v23 = vmul.f32 0.70710677, %v2197_v21  ;;  %v2273_v26 = vmul.f32 0.5, %v2197_v21  ;;  %v7832_v21 = vrot.slane %v7242_v15, %v6553_v40 }
 0x478   : > { %v6186_v49 = vpop.eup %6185 }
 0x479   : > { %v2367_v57 = vadd.f32 1.0, %v6186_v49 }
 0x47c   : > { %5370 = vmatmul.mubr.msk.bf16.gmra.mrb[128].mxu0 %vm793_vm1, %v7144_v41  ;;  %v2199_v41 = vadd.f32 %v7598_v9, %v7785_v16  ;;  %v2309_v9 = vmul.f32 0.70710677, %v2207_v37 }
 0x47d   : > { %4194 = vmatprep.mubr.bf16.mxu0 %v9127_v60  ;;  %v2304_v60 = vmul.f32 0.70710677, %v2195_v2  ;;  %v7828_v2 = vadd.f32 %v7679_v61, %v7781_v51 }
 0x47e   : > { %v2306_v28 = vmul.f32 0.70710677, %v2199_v41 }
 0x47f   : > { %6187 = verf.f32 %v2304_v60  ;;  %v2311_v60 = vmul.f32 0.70710677, %v2213_v22 }
 0x480   : > { %6189 = verf.f32 %v2305_v23 }
 0x481   : > { %6191 = verf.f32 %v2306_v28  ;;  %v2271_v28 = vmul.f32 0.5, %v2193_v20 }
 0x483   : > { %v2399_v61 = vmul.f32 %v2367_v57, %v2271_v28 }
 0x484   : > { %5371 = vmatmul.mubr.msk.bf16.gmra.mrb[132].mxu0 %vm793_vm1, %v7138_v44  ;;  %v2203_v44 = vadd.f32 %v7612_v1, %v7781_v51  ;;  %v2215_v1 = vadd.f32 %v7649_v55, %v7785_v16  ;;  %v2274_v55 = vmul.f32 0.5, %v2199_v41 }
 0x486   : > { %v2307_v47 = vmul.f32 0.70710677, %v2203_v44 }
 0x488   : > { %6193 = verf.f32 %v2307_v47  ;;  %v2312_v47 = vmul.f32 0.70710677, %v2215_v1 }
 0x489   : > { %6195 = verf.f32 %v2308_v34  ;;  %v6188_v23 = vpop.eup %6187  ;;  %v7815_v34 = vmul.f32 0.5, %v2203_v44  ;;  %v7834_v44 = vmul.f32 0.5, %v2209_v11  ;;  %v7851_v11 = vmul.f32 0.5, %v2215_v1 }
 0x48a   : > { %6197 = verf.f32 %v2309_v9  ;;  %v6190_v58 = vpop.eup %6189  ;;  %v7819_v9 = vmul.f32 0.5, %v2207_v37  ;;  %v2368_v20 = vadd.f32 1.0, %v6188_v23  ;;  %v7842_v37 = vadd.f32 %v7686_v30, %v7781_v51 }
 0x48b   : > { %6199 = verf.f32 %v2310_v56  ;;  %v6192_v27 = vpop.eup %6191  ;;  %v7824_v56 = vrot.slane %v7247_v5, %v6553_v40  ;;  %v2369_v41 = vadd.f32 1.0, %v6190_v58  ;;  %v7844_v23 = vmul.f32 0.5, %v2213_v22 }
 0x48c   : > { %6201 = verf.f32 %v2311_v60  ;;  %v2370_v5 = vadd.f32 1.0, %v6192_v27  ;;  %v7848_v40 = vadd.f32 %v7691_v50, %v7785_v16  ;;  %v2400_v30 = vmul.f32 %v2368_v20, %v2272_v46 }
 0x48d   : > { %6203 = verf.f32 %v2312_v47  ;;  %v2316_v22 = vmul.f32 0.70710677, %v7838_v19  ;;  %v7859_v46 = vmul.f32 0.5, %v2217_v7  ;;  %v7869_v7 = vadd.f32 %v7701_v13, %v7785_v16 }
 0x48e   : > { %6205 = verf.f32 %v2313_v48  ;;  %v2315_v48 = vmul.f32 0.70710677, %v7828_v2  ;;  %v2402_v1 = vmul.f32 %v2370_v5, %v2274_v55  ;;  %v2318_v20 = vmul.f32 0.70710677, %v7848_v40 }
 0x48f   : > { %6207 = verf.f32 %v2314_v8  ;;  %v2401_v8 = vmul.f32 %v2369_v41, %v2273_v26 }
 0x490   : > { %6209 = verf.f32 %v2315_v48 }
 0x491   : > { %6211 = verf.f32 %v2316_v22 }
 0x492   : > { %v6194_v60 = vpop.eup %6193 }
 0x493   : > { %v6196_v3 = vpop.eup %6195  ;;  %v2371_v63 = vadd.f32 1.0, %v6194_v60 }
 0x494   : > { %v6198_v47 = vpop.eup %6197  ;;  %v2372_v12 = vadd.f32 1.0, %v6196_v3 }
 0x495   : > { %v6200_v43 = vpop.eup %6199  ;;  %v2373_v4 = vadd.f32 1.0, %v6198_v47 }
 0x496   : > { %v2374_v41 = vadd.f32 1.0, %v6200_v43  ;;  %v6202_v55 = vpop.eup %6201  ;;  %v7873_v43 = vadd.f32 %v7703_v24, %v7781_v51  ;;  %v2404_v13 = vmul.f32 %v2372_v12, %v7817_v59 }
 0x497   : > { %v6204_v3 = vpop.eup %6203 }
 0x498   : > { %v2406_v22 = vmul.f32 %v2374_v41, %v7834_v44  ;;  %v2284_v44 = vmul.f32 0.5, %v7838_v19  ;;  %v7895_v41 = vadd.f32 %v7719_v18, %v7781_v51  ;;  %v7904_v19 = vadd.f32 %v7726_v32, %v7781_v51 }
 0x499   : > { %v7913_v32 = vadd.f32 %v7728_v0, %v7785_v16  ;;  %v2286_v0 = vmul.f32 0.5, %v7848_v40  ;;  %v7929_v40 = vadd.f32 %v7735_v35, %v7785_v16  ;;  %v7939_v35 = vadd.f32 %v7739_v53, %v7785_v16 }
 0x49a   : > { %v2289_v53 = vmul.f32 0.5, %v7873_v43 }
 0x49f   : > { %v2722_v49 = vpop.f32.mrb[72].mxu0 }
 0x4a0   : > { %v2809_v15 = vadd.f32 %v7824_v56, %v2722_v49  ;;  %v2724_v58 = vpop.f32.mrb[73].mxu0  ;;  %v2317_v49 = vmul.f32 0.70710677, %v7842_v37 }
 0x4a1   : > { %v2810_v57 = vadd.f32 %v7832_v21, %v2724_v58  ;;  %v2726_v28 = vpop.f32.mrb[74].mxu0 }
 0x4a2   : > { %v2841_v27 = vadd.f32 %v2809_v15, %v2399_v61  ;;  %v2811_v50 = vadd.f32 %v7824_v56, %v2726_v28  ;;  %v2728_v62 = vpop.f32.mrb[75].mxu0  ;;  %v7864_v61 = vadd.f32 %v7699_v45, %v7781_v51  ;;  %6213 = verf.f32 %v2317_v49 }
 0x4a3   : > { %v2842_v29 = vadd.f32 %v2810_v57, %v2400_v30  ;;  %v2812_v36 = vadd.f32 %v7832_v21, %v2728_v62  ;;  %v2282_v62 = vmul.f32 0.5, %v7813_v25  ;;  %6215 = verf.f32 %v2318_v20  ;;  %v6206_v30 = vpop.eup %6205 }
 0x4a4   : > { %v2843_v58 = vadd.f32 %v2811_v50, %v2401_v8  ;;  %v7879_v25 = vadd.f32 %v7705_v33, %v7785_v16  ;;  %v2405_v57 = vmul.f32 %v2373_v4, %v7819_v9  ;;  %v6208_v24 = vpop.eup %6207  ;;  %v2319_v47 = vmul.f32 0.70710677, %v7864_v61 }
 0x4a5   : > { %v2844_v26 = vadd.f32 %v2812_v36, %v2402_v1  ;;  %v2403_v36 = vmul.f32 %v2371_v63, %v7815_v34  ;;  %v2375_v33 = vadd.f32 1.0, %v6202_v55  ;;  %v2320_v8 = vmul.f32 0.70710677, %v7869_v7  ;;  %v6210_v55 = vpop.eup %6209 }
 0x4a6   : > { %v2905_v15 = vpack.c.bf16 %v2843_v58, %v2841_v27  ;;  %v2376_v50 = vadd.f32 1.0, %v6204_v3  ;;  %v2283_v4 = vmul.f32 0.5, %v7828_v2  ;;  %v2321_v9 = vmul.f32 0.70710677, %v7873_v43 }
 0x4a7   : > { %v2732_v5 = vpop.f32.mrb[76].mxu0  ;;  %v2906_v60 = vpack.c.bf16 %v2844_v26, %v2842_v29  ;;  %v2377_v1 = vadd.f32 1.0, %v6206_v30  ;;  %v2378_v20 = vadd.f32 1.0, %v6208_v24  ;;  %v2322_v58 = vmul.f32 0.70710677, %v7879_v25 }
 0x4a8   : > { %v2813_v45 = vadd.f32 %v7824_v56, %v2732_v5  ;;  %v2734_v48 = vpop.f32.mrb[77].mxu0  ;;  %6217 = verf.f32 %v2319_v47  ;;  %v7899_v2 = vadd.f32 %v7721_v39, %v7785_v16  ;;  %v2407_v5 = vmul.f32 %v2375_v33, %v7844_v23 }
 0x4a9   : > { %v2814_v29 = vadd.f32 %v7832_v21, %v2734_v48  ;;  %v2736_v28 = vpop.f32.mrb[78].mxu0  ;;  %3121 = vmatprep.mubr.bf16.mxu1 %v2906_v60  ;;  %6219 = verf.f32 %v2320_v8  ;;  %v2325_v33 = vmul.f32 0.70710677, %v7904_v19  ;;  %v7956_v43 = vadd.f32 %v7746_v42, %v7785_v16 }
 0x4aa   : > { %v2845_v63 = vadd.f32 %v2813_v45, %v2403_v36  ;;  %v2815_v34 = vadd.f32 %v7824_v56, %v2736_v28  ;;  %v2738_v27 = vpop.f32.mrb[79].mxu0  ;;  %3122 = vmatmul.mubr.bf16.vlgmr.msra.gmra.mrb[56].mxu1 %v2905_v15  ;;  %v6212_v36 = vpop.eup %6211  ;;  %6221 = verf.f32 %v2321_v9  ;;  %v2408_v45 = vmul.f32 %v2376_v50, %v7851_v11 }
 0x4ab   : > { %v2846_v12 = vadd.f32 %v2814_v29, %v2404_v13  ;;  %v2816_v59 = vadd.f32 %v7832_v21, %v2738_v27  ;;  %6223 = verf.f32 %v2322_v58  ;;  %v2409_v13 = vmul.f32 %v2377_v1, %v7859_v46 }
 0x4ac   : > { %v2847_v49 = vadd.f32 %v2815_v34, %v2405_v57  ;;  %v6214_v30 = vpop.eup %6213  ;;  %v2410_v29 = vmul.f32 %v2378_v20, %v2282_v62  ;;  %v2323_v28 = vmul.f32 0.70710677, %v7895_v41  ;;  %v2324_v34 = vmul.f32 0.70710677, %v7899_v2 }
 0x4ad   : > { %v2848_v26 = vadd.f32 %v2816_v59, %v2406_v22  ;;  %v6216_v57 = vpop.eup %6215  ;;  %v2380_v27 = vadd.f32 1.0, %v6212_v36  ;;  %v2285_v62 = vmul.f32 0.5, %v7842_v37  ;;  %v2287_v9 = vmul.f32 0.5, %v7864_v61 }
 0x4ae   : > { %v2907_v15 = vpack.c.bf16 %v2847_v49, %v2845_v63  ;;  %v2379_v63 = vadd.f32 1.0, %v6210_v55  ;;  %v2382_v59 = vadd.f32 1.0, %v6216_v57  ;;  %6225 = verf.f32 %v2323_v28 }
 0x4af   : > { %v2742_v60 = vpop.f32.mrb[80].mxu0  ;;  %v2908_v3 = vpack.c.bf16 %v2848_v26, %v2846_v12  ;;  %v2381_v12 = vadd.f32 1.0, %v6214_v30  ;;  %v2326_v49 = vmul.f32 0.70710677, %v7913_v32  ;;  %6227 = verf.f32 %v2324_v34 }
 0x4b0   : > { %v2817_v18 = vadd.f32 %v7824_v56, %v2742_v60  ;;  %v2744_v48 = vpop.f32.mrb[81].mxu0  ;;  %v7925_v20 = vadd.f32 %v7733_v54, %v7781_v51  ;;  %v2411_v37 = vmul.f32 %v2379_v63, %v2283_v4  ;;  %6229 = verf.f32 %v2325_v33 }
 0x4b1   : > { %v2818_v39 = vadd.f32 %v7832_v21, %v2744_v48  ;;  %v2746_v23 = vpop.f32.mrb[82].mxu0  ;;  %3131 = vmatprep.mubr.bf16.mxu1 %v2908_v3  ;;  %v2412_v55 = vmul.f32 %v2380_v27, %v2284_v44  ;;  %v7934_v3 = vadd.f32 %v7737_v17, %v7781_v51  ;;  %v2413_v4 = vmul.f32 %v2381_v12, %v2285_v62 }
 0x4b2   : > { %v2849_v24 = vadd.f32 %v2817_v18, %v2407_v5  ;;  %v2819_v11 = vadd.f32 %v7824_v56, %v2746_v23  ;;  %v2748_v47 = vpop.f32.mrb[83].mxu0  ;;  %3132 = vmatmul.mubr.bf16.gmra.mrb[60].mxu1 %v2907_v15  ;;  %v6218_v15 = vpop.eup %6217  ;;  %v2414_v18 = vmul.f32 %v2382_v59, %v2286_v0  ;;  %6231 = verf.f32 %v2326_v49 }
 0x4b3   : > { %v2850_v22 = vadd.f32 %v2818_v39, %v2408_v45  ;;  %v2820_v46 = vadd.f32 %v7832_v21, %v2748_v47  ;;  %v6220_v60 = vpop.eup %6219  ;;  %v2383_v17 = vadd.f32 1.0, %v6218_v15  ;;  %v2288_v57 = vmul.f32 0.5, %v7869_v7 }
 0x4b4   : > { %v2851_v8 = vadd.f32 %v2819_v11, %v2409_v13  ;;  %v6222_v45 = vpop.eup %6221  ;;  %v2327_v13 = vmul.f32 0.70710677, %v7925_v20  ;;  %v2384_v28 = vadd.f32 1.0, %v6220_v60  ;;  %v2329_v63 = vmul.f32 0.70710677, %v7934_v3 }
 0x4b5   : > { %v2852_v50 = vadd.f32 %v2820_v46, %v2410_v29  ;;  %v6224_v39 = vpop.eup %6223  ;;  %v2385_v47 = vadd.f32 1.0, %v6222_v45  ;;  %v2330_v27 = vmul.f32 0.70710677, %v7939_v35  ;;  %v7952_v7 = vadd.f32 %v7744_v52, %v7781_v51 }
 0x4b6   : > { %v2909_v1 = vpack.c.bf16 %v2851_v8, %v2849_v24  ;;  %v2328_v24 = vmul.f32 0.70710677, %v7929_v40  ;;  %v2386_v46 = vadd.f32 1.0, %v6224_v39  ;;  %6233 = verf.f32 %v2327_v13 }
 0x4b7   : > { %v2752_v58 = vpop.f32.mrb[84].mxu0  ;;  %v2910_v26 = vpack.c.bf16 %v2852_v50, %v2850_v22  ;;  %v2290_v22 = vmul.f32 0.5, %v7879_v25  ;;  %v2415_v33 = vmul.f32 %v2383_v17, %v2287_v9  ;;  %v2416_v59 = vmul.f32 %v2384_v28, %v2288_v57 }
 0x4b8   : > { %v2821_v61 = vadd.f32 %v7824_v56, %v2752_v58  ;;  %v2754_v5 = vpop.f32.mrb[85].mxu0  ;;  %v6226_v0 = vpop.eup %6225  ;;  %6235 = verf.f32 %v2328_v24  ;;  %v2417_v9 = vmul.f32 %v2385_v47, %v2289_v53  ;;  %v7966_v42 = vadd.f32 %v7750_v14, %v7785_v16 }
 0x4b9   : > { %v2822_v54 = vadd.f32 %v7832_v21, %v2754_v5  ;;  %v2756_v36 = vpop.f32.mrb[86].mxu0  ;;  %3141 = vmatprep.mubr.bf16.mxu1 %v2910_v26  ;;  %v6228_v49 = vpop.eup %6227  ;;  %6237 = verf.f32 %v2329_v63  ;;  %v2292_v14 = vmul.f32 0.5, %v7899_v2  ;;  %v2294_v13 = vmul.f32 0.5, %v7913_v32 }
 0x4ba   : > { %v2853_v48 = vadd.f32 %v2821_v61, %v2411_v37  ;;  %v2823_v44 = vadd.f32 %v7824_v56, %v2756_v36  ;;  %v2758_v30 = vpop.f32.mrb[87].mxu0  ;;  %3142 = vmatmul.mubr.bf16.gmra.mrb[64].mxu1 %v2909_v1  ;;  %v7961_v1 = vadd.f32 %v7748_v10, %v7781_v51  ;;  %v6230_v58 = vpop.eup %6229  ;;  %6239 = verf.f32 %v2330_v27 }
 0x4bb   : > { %v2854_v23 = vadd.f32 %v2822_v54, %v2412_v55  ;;  %v2824_v29 = vadd.f32 %v7832_v21, %v2758_v30  ;;  %v2331_v55 = vmul.f32 0.70710677, %v7952_v7  ;;  %v2418_v51 = vmul.f32 %v2386_v46, %v2290_v22 }
 0x4bc   : > { %v2855_v11 = vadd.f32 %v2823_v44, %v2413_v4  ;;  %v6232_v60 = vpop.eup %6231  ;;  %v2291_v54 = vmul.f32 0.5, %v7895_v41  ;;  %v2387_v4 = vadd.f32 1.0, %v6226_v0  ;;  %v2332_v36 = vmul.f32 0.70710677, %v7956_v43 }
 0x4bd   : > { %v2856_v34 = vadd.f32 %v2824_v29, %v2414_v18  ;;  %v2388_v16 = vadd.f32 1.0, %v6228_v49  ;;  %v2333_v45 = vmul.f32 0.70710677, %v7961_v1  ;;  %v2293_v44 = vmul.f32 0.5, %v7904_v19 }
 0x4be   : > { %v2911_v62 = vpack.c.bf16 %v2855_v11, %v2853_v48  ;;  %v2389_v30 = vadd.f32 1.0, %v6230_v58  ;;  %v2334_v39 = vmul.f32 0.70710677, %v7966_v42  ;;  %6241 = verf.f32 %v2331_v55 }
 0x4bf   : > { %v2762_v8 = vpop.f32.mrb[88].mxu0  ;;  %v2912_v12 = vpack.c.bf16 %v2856_v34, %v2854_v23  ;;  %v2390_v23 = vadd.f32 1.0, %v6232_v60  ;;  %6243 = verf.f32 %v2332_v36  ;;  %v2419_v57 = vmul.f32 %v2387_v4, %v2291_v54 }
 0x4c0   : > { %v2825_v25 = vadd.f32 %v7824_v56, %v2762_v8  ;;  %v2764_v50 = vpop.f32.mrb[89].mxu0  ;;  %v6234_v24 = vpop.eup %6233  ;;  %6245 = verf.f32 %v2333_v45  ;;  %v2420_v11 = vmul.f32 %v2388_v16, %v2292_v14  ;;  %v2421_v32 = vmul.f32 %v2389_v30, %v2293_v44 }
 0x4c1   : > { %v2826_v52 = vadd.f32 %v7832_v21, %v2764_v50  ;;  %v2766_v37 = vpop.f32.mrb[90].mxu0  ;;  %3151 = vmatprep.mubr.bf16.mxu1 %v2912_v12  ;;  %6247 = verf.f32 %v2334_v39  ;;  %v2295_v12 = vmul.f32 0.5, %v7925_v20  ;;  %v2391_v0 = vadd.f32 1.0, %v6234_v24 }
 0x4c2   : > { %v2857_v26 = vadd.f32 %v2825_v25, %v2415_v33  ;;  %v2827_v15 = vadd.f32 %v7824_v56, %v2766_v37  ;;  %v2768_v61 = vpop.f32.mrb[91].mxu0  ;;  %3152 = vmatmul.mubr.bf16.gmra.mrb[68].mxu1 %v2911_v62  ;;  %v6236_v47 = vpop.eup %6235  ;;  %v2422_v62 = vmul.f32 %v2390_v23, %v2294_v13  ;;  %v2298_v58 = vmul.f32 0.5, %v7939_v35 }
 0x4c3   : > { %v2858_v10 = vadd.f32 %v2826_v52, %v2416_v59  ;;  %v2828_v5 = vadd.f32 %v7832_v21, %v2768_v61  ;;  %v6238_v46 = vpop.eup %6237  ;;  %v2296_v59 = vmul.f32 0.5, %v7929_v40  ;;  %v2392_v50 = vadd.f32 1.0, %v6236_v47 }
 0x4c4   : > { %v2859_v18 = vadd.f32 %v2827_v15, %v2417_v9  ;;  %v6240_v8 = vpop.eup %6239  ;;  %v2297_v52 = vmul.f32 0.5, %v7934_v3  ;;  %v2393_v9 = vadd.f32 1.0, %v6238_v46  ;;  %v2423_v55 = vmul.f32 %v2391_v0, %v2295_v12  ;;  %v5886_v12 = vld [vmem:[%s9023_s3 + $0x394] ss:$8 sps:$4 sm:$0xff]  }
 0x4c5   : > { %v2860_v48 = vadd.f32 %v2828_v5, %v2418_v51  ;;  %v2424_v5 = vmul.f32 %v2392_v50, %v2296_v59  ;;  %v2299_v44 = vmul.f32 0.5, %v7952_v7  ;;  %v5881_v7 = vld [vmem:[%s9023_s3 + $0x380] ss:$8 sps:$4 sm:$0xff]  }
 0x4c6   : > { %v2913_v17 = vpack.c.bf16 %v2859_v18, %v2857_v26  ;;  %v2394_v26 = vadd.f32 1.0, %v6240_v8  ;;  %v2425_v3 = vmul.f32 %v2393_v9, %v2297_v52  ;;  %v5884_v8 = vld [vmem:[%s9023_s3 + $0x390] ss:$8 sps:$4 sm:$0xff]   ;;  %v5895_v9 = vld [vmem:[%s9023_s3 + $0x3c4] ss:$8 sps:$4 sm:$0xff]  }
 0x4c7   : > { %v2772_v41 = vpop.f32.mrb[92].mxu0  ;;  %v2914_v29 = vpack.c.bf16 %v2860_v48, %v2858_v10  ;;  %v5890_v52 = vld [vmem:[%s9023_s3 + $0x3b0] ss:$8 sps:$4 sm:$0xff]  }
 0x4c8   : > { %v2829_v2 = vadd.f32 %v7824_v56, %v2772_v41  ;;  %v2774_v28 = vpop.f32.mrb[93].mxu0  ;;  %v6242_v20 = vpop.eup %6241  ;;  %v2426_v16 = vmul.f32 %v2394_v26, %v2298_v58  ;;  %v2301_v41 = vmul.f32 0.5, %v7961_v1  ;;  %v5898_v58 = vld [vmem:[%s9023_s3 + $0x3d4] ss:$8 sps:$4 sm:$0xff]   ;;  %v5896_v26 = vld [vmem:[%s9023_s3 + $0x3d0] ss:$8 sps:$4 sm:$0xff]  }
 0x4c9   : > { %v2830_v19 = vadd.f32 %v7832_v21, %v2774_v28  ;;  %v2776_v53 = vpop.f32.mrb[94].mxu0  ;;  %3161 = vmatprep.mubr.bf16.mxu1 %v2914_v29  ;;  %v6244_v54 = vpop.eup %6243  ;;  %v2395_v30 = vadd.f32 1.0, %v6242_v20  ;;  %v5905_v20 = vld [vmem:[%s9023_s3 + $0x400] ss:$8 sps:$4 sm:$0xff]  }
 0x4ca   : > { %v2861_v63 = vadd.f32 %v2829_v2, %v2419_v57  ;;  %v2831_v34 = vadd.f32 %v7824_v56, %v2776_v53  ;;  %v2778_v22 = vpop.f32.mrb[95].mxu0  ;;  %3162 = vmatmul.mubr.bf16.gmra.mrb[72].mxu1 %v2913_v17  ;;  %v6246_v35 = vpop.eup %6245  ;;  %v2300_v17 = vmul.f32 0.5, %v7956_v43  ;;  %v2396_v13 = vadd.f32 1.0, %v6244_v54  ;;  %v5883_v43 = vld [vmem:[%s9023_s3 + $0x384] ss:$8 sps:$4 sm:$0xff]  }
 0x4cb   : > { %v2862_v27 = vadd.f32 %v2830_v19, %v2420_v11  ;;  %v2832_v33 = vadd.f32 %v7832_v21, %v2778_v22  ;;  %v6248_v48 = vpop.eup %6247  ;;  %v2397_v29 = vadd.f32 1.0, %v6246_v35  ;;  %v2302_v2 = vmul.f32 0.5, %v7966_v42  ;;  %3610 = vmatprep.subr.bf16.mxu1 %v5883_v43  ;;  %v5911_v54 = vld [vmem:[%s9023_s3 + $0x420] ss:$8 sps:$4 sm:$0xff]   ;;  %v5922_v35 = vld [vmem:[%s9023_s3 + $0x454] ss:$8 sps:$4 sm:$0xff]  }
 0x4cc   : > { %v2863_v25 = vadd.f32 %v2831_v34, %v2421_v32  ;;  %v2398_v28 = vadd.f32 1.0, %v6248_v48  ;;  %v2427_v19 = vmul.f32 %v2395_v30, %v2299_v44  ;;  %v2428_v1 = vmul.f32 %v2396_v13, %v2300_v17  ;;  %3611 = vmatpush1.bf16.msra.mxu1 %v5881_v7  ;;  %v5928_v48 = vld [vmem:[%s9023_s3 + $0x474] ss:$8 sps:$4 sm:$0xff]   ;;  %v5926_v44 = vld [vmem:[%s9023_s3 + $0x470] ss:$8 sps:$4 sm:$0xff]  }
 0x4cd   : > { %v2864_v49 = vadd.f32 %v2832_v33, %v2422_v62  ;;  %v2429_v34 = vmul.f32 %v2397_v29, %v2301_v41  ;;  %3612 = vmatprep.subr.bf16.mxu1 %v5886_v12  ;;  %v5931_v12 = vld [vmem:[%s9023_s3 + $0x484] ss:$8 sps:$4 sm:$0xff]  }
 0x4ce   : > { %v2915_v37 = vpack.c.bf16 %v2863_v25, %v2861_v63  ;;  %v2430_v62 = vmul.f32 %v2398_v28, %v2302_v2 }
 0x4cf   : > { %v2782_v15 = vpop.f32.mrb[96].mxu0  ;;  %v2916_v61 = vpack.c.bf16 %v2864_v49, %v2862_v27  ;;  %v5892_v49 = vld [vmem:[%s9023_s3 + $0x3b4] ss:$8 sps:$4 sm:$0xff]  }
 0x4d0   : > { %v2833_v10 = vadd.f32 %v7824_v56, %v2782_v15  ;;  %v2784_v51 = vpop.f32.mrb[97].mxu0  ;;  %3613 = vmatpush1.bf16.msra.mxu1 %v5884_v8  ;;  %v5901_v15 = vld [vmem:[%s9023_s3 + $0x3e4] ss:$8 sps:$4 sm:$0xff]  }
 0x4d1   : > { %v2834_v60 = vadd.f32 %v7832_v21, %v2784_v51  ;;  %v2786_v40 = vpop.f32.mrb[98].mxu0  ;;  %3171 = vmatprep.mubr.bf16.mxu1 %v2916_v61  ;;  %v5899_v61 = vld [vmem:[%s9023_s3 + $0x3e0] ss:$8 sps:$4 sm:$0xff]   ;;  %v5907_v51 = vld [vmem:[%s9023_s3 + $0x404] ss:$8 sps:$4 sm:$0xff]  }
 0x4d2   : > { %v2865_v4 = vadd.f32 %v2833_v10, %v2423_v55  ;;  %v2835_v36 = vadd.f32 %v7824_v56, %v2786_v40  ;;  %v2788_v18 = vpop.f32.mrb[99].mxu0  ;;  %3172 = vmatmul.mubr.bf16.gmra.mrb[76].mxu1 %v2915_v37  ;;  %v5893_v37 = vld [vmem:[%s9023_s3 + $0x3c0] ss:$8 sps:$4 sm:$0xff]   ;;  %v5904_v55 = vld [vmem:[%s9023_s3 + $0x3f4] ss:$8 sps:$4 sm:$0xff]  }
 0x4d3   : > { %v2866_v14 = vadd.f32 %v2834_v60, %v2424_v5  ;;  %v2836_v45 = vadd.f32 %v7832_v21, %v2788_v18  ;;  %v5902_v10 = vld [vmem:[%s9023_s3 + $0x3f0] ss:$8 sps:$4 sm:$0xff]   ;;  %v5910_v5 = vld [vmem:[%s9023_s3 + $0x414] ss:$8 sps:$4 sm:$0xff]   ;;  %v5913_v40 = vld [vmem:[%s9023_s3 + $0x424] ss:$8 sps:$4 sm:$0xff]  }
 0x4d4   : > { %v2867_v39 = vadd.f32 %v2835_v36, %v2425_v3  ;;  %v5908_v60 = vld [vmem:[%s9023_s3 + $0x410] ss:$8 sps:$4 sm:$0xff]   ;;  %v5919_v36 = vld [vmem:[%s9023_s3 + $0x444] ss:$8 sps:$4 sm:$0xff]   ;;  %v5917_v18 = vld [vmem:[%s9023_s3 + $0x440] ss:$8 sps:$4 sm:$0xff]  }
 0x4d5   : > { %v2868_v23 = vadd.f32 %v2836_v45, %v2426_v16  ;;  %v5914_v3 = vld [vmem:[%s9023_s3 + $0x430] ss:$8 sps:$4 sm:$0xff]   ;;  %v5925_v16 = vld [vmem:[%s9023_s3 + $0x464] ss:$8 sps:$4 sm:$0xff]   ;;  %v5923_v45 = vld [vmem:[%s9023_s3 + $0x460] ss:$8 sps:$4 sm:$0xff]  }
 0x4d6   : > { %v2917_v57 = vpack.c.bf16 %v2867_v39, %v2865_v4  ;;  %v5916_v4 = vld [vmem:[%s9023_s3 + $0x434] ss:$8 sps:$4 sm:$0xff]  }
 0x4d7   : > { %v2792_v24 = vpop.f32.mrb[100].mxu0  ;;  %v2918_v11 = vpack.c.bf16 %v2868_v23, %v2866_v14  ;;  %v5920_v14 = vld [vmem:[%s9023_s3 + $0x450] ss:$8 sps:$4 sm:$0xff]  }
 0x4d8   : > { %v2837_v53 = vadd.f32 %v7824_v56, %v2792_v24  ;;  %v2794_v47 = vpop.f32.mrb[101].mxu0 }
 0x4d9   : > { %v2838_v63 = vadd.f32 %v7832_v21, %v2794_v47  ;;  %v2796_v32 = vpop.f32.mrb[102].mxu0  ;;  %3181 = vmatprep.mubr.bf16.mxu1 %v2918_v11 }
 0x4da   : > { %v2869_v42 = vadd.f32 %v2837_v53, %v2427_v19  ;;  %v2839_v22 = vadd.f32 %v7824_v56, %v2796_v32  ;;  %v2798_v46 = vpop.f32.mrb[103].mxu0  ;;  %3182 = vmatmul.mubr.bf16.gmra.mrb[80].mxu1 %v2917_v57  ;;  %v5889_v56 = vld [vmem:[%s9023_s3 + $0x3a4] ss:$8 sps:$4 sm:$0xff]  }
 0x4db   : > { %v2870_v27 = vadd.f32 %v2838_v63, %v2428_v1  ;;  %v2840_v33 = vadd.f32 %v7832_v21, %v2798_v46  ;;  %v5887_v21 = vld [vmem:[%s9023_s3 + $0x3a0] ss:$8 sps:$4 sm:$0xff]   ;;  %3614 = vmatprep.subr.bf16.mxu1 %v5889_v56 }
 0x4dc   : > { %v2871_v0 = vadd.f32 %v2839_v22, %v2429_v34  ;;  %3615 = vmatpush1.bf16.msra.mxu1 %v5887_v21 }
 0x4dd   : > { %v2872_v25 = vadd.f32 %v2840_v33, %v2430_v62  ;;  %3616 = vmatprep.subr.bf16.mxu1 %v5892_v49  ;;  %v8173_v49 = vld [vmem:[%s9025_s5 + $0x18] sm:$0xff] }
 0x4de   : > { %v2919_v59 = vpack.c.bf16 %v2871_v0, %v2869_v42 }
 0x4df   : > { %v2920_v50 = vpack.c.bf16 %v2872_v25, %v2870_v27 }
 0x4e0   : > { %3617 = vmatpush1.bf16.msra.mxu1 %v5890_v52  ;;  %v8177_v52 = vrot.slane %v8173_v49, %v6988_v6 }
 0x4e1   : > { %3191 = vmatprep.mubr.bf16.mxu1 %v2920_v50  ;;  %3618 = vmatprep.subr.bf16.mxu1 %v5895_v9  ;;  %v8164_v50 = vld [vmem:[%s9025_s5 + $0x10] sm:$0xff] }
 0x4e2   : > { %3192 = vmatmul.mubr.bf16.gmra.mrb[84].mxu1 %v2919_v59  ;;  %v8168_v21 = vrot.slane %v8164_v50, %v6988_v6 }
 0x4e4   : > { %3619 = vmatpush1.bf16.msra.mxu1 %v5893_v37 }
 0x4e5   : > { %3620 = vmatprep.subr.bf16.mxu1 %v5898_v58 }
 0x4e8   : > { %3621 = vmatpush1.bf16.msra.mxu1 %v5896_v26 }
 0x4e9   : > { %3622 = vmatprep.subr.bf16.mxu1 %v5901_v15 }
 0x4ec   : > { %3623 = vmatpush1.bf16.msra.mxu1 %v5899_v61 }
 0x4ed   : > { %3624 = vmatprep.subr.bf16.mxu1 %v5904_v55 }
 0x4f0   : > { %3625 = vmatpush1.bf16.msra.mxu1 %v5902_v10 }
 0x4f1   : > { %3626 = vmatprep.subr.bf16.mxu1 %v5907_v51 }
 0x4f4   : > { %3627 = vmatpush1.bf16.msra.mxu1 %v5905_v20 }
 0x4f5   : > { %3628 = vmatprep.subr.bf16.mxu1 %v5910_v5 }
 0x4f8   : > { %3629 = vmatpush1.bf16.msra.mxu1 %v5908_v60 }
 0x4f9   : > { %3630 = vmatprep.subr.bf16.mxu1 %v5913_v40 }
 0x4fc   : > { %3631 = vmatpush1.bf16.msra.mxu1 %v5911_v54 }
 0x4fd   : > { %3632 = vmatprep.subr.bf16.mxu1 %v5916_v4 }
 0x500   : > { %3633 = vmatpush1.bf16.msra.mxu1 %v5914_v3 }
 0x501   : > { %3634 = vmatprep.subr.bf16.mxu1 %v5919_v36 }
 0x504   : > { %3635 = vmatpush1.bf16.msra.mxu1 %v5917_v18 }
 0x505   : > { %3636 = vmatprep.subr.bf16.mxu1 %v5922_v35 }
 0x508   : > { %3637 = vmatpush1.bf16.msra.mxu1 %v5920_v14 }
 0x509   : > { %3638 = vmatprep.subr.bf16.mxu1 %v5925_v16 }
 0x50c   : > { %3639 = vmatpush1.bf16.msra.mxu1 %v5923_v45 }
 0x50d   : > { %3640 = vmatprep.subr.bf16.mxu1 %v5928_v48 }
 0x510   : > { %3641 = vmatpush1.bf16.msra.mxu1 %v5926_v44 }
 0x511   : > { %4493 = vmatprep.subr.bf16.mxu1 %v5931_v12 }
 0x51f   : > { %v8094_v30 = vpop.f32.mrb[104].mxu0 }
 0x520   : > { %v8096_v39 = vpop.f32.mrb[105].mxu0 }
 0x521   : > { %v8098_v17 = vpop.f32.mrb[106].mxu0 }
 0x522   : > { %v8100_v13 = vpop.f32.mrb[107].mxu0 }
 0x527   : > { %v8102_v23 = vpop.f32.mrb[108].mxu0 }
 0x528   : > { %v8104_v41 = vpop.f32.mrb[109].mxu0 }
 0x529   : > { %v8106_v29 = vpop.f32.mrb[110].mxu0 }
 0x52a   : > { %v8108_v57 = vpop.f32.mrb[111].mxu0 }
 0x52f   : > { %v8110_v2 = vpop.f32.mrb[112].mxu0 }
 0x530   : > { %v8112_v28 = vpop.f32.mrb[113].mxu0 }
 0x531   : > { %v8114_v24 = vpop.f32.mrb[114].mxu0 }
 0x532   : > { %v8116_v11 = vpop.f32.mrb[115].mxu0 }
 0x537   : > { %v8118_v19 = vpop.f32.mrb[116].mxu0 }
 0x538   : > { %v8120_v53 = vpop.f32.mrb[117].mxu0 }
 0x539   : > { %v8122_v47 = vpop.f32.mrb[118].mxu0 }
 0x53a   : > { %v8124_v7 = vpop.f32.mrb[119].mxu0 }
 0x53f   : > { %v8126_v43 = vpop.f32.mrb[120].mxu0 }
 0x540   : > { %v8128_v1 = vpop.f32.mrb[121].mxu0 }
 0x541   : > { %v8130_v63 = vpop.f32.mrb[122].mxu0 }
 0x542   : > { %v8132_v32 = vpop.f32.mrb[123].mxu0 }
 0x547   : > { %v8134_v42 = vpop.f32.mrb[124].mxu0 }
 0x548   : > { %v8136_v34 = vpop.f32.mrb[125].mxu0 }
 0x549   : > { %v8138_v22 = vpop.f32.mrb[126].mxu0 }
 0x54a   : > { %v8140_v46 = vpop.f32.mrb[127].mxu0 }
 0x54f   : > { %v8142_v27 = vpop.f32.mrb[128].mxu0 }
 0x550   : > { %v8144_v62 = vpop.f32.mrb[129].mxu0 }
 0x551   : > { %v8146_v33 = vpop.f32.mrb[130].mxu0 }
 0x552   : > { %v8148_v8 = vpop.f32.mrb[131].mxu0 }
 0x553   : > { %9128 = vst [vmem:[#allocation36_spill] sm:$0xff] %v8148_v8 }
 0x557   : > { %v8153_v0 = vpop.f32.mrb[132].mxu0 }
 0x558   : > { %9129 = vst [vmem:[#allocation37_spill] sm:$0xff] %v8153_v0  ;;  %v8155_v56 = vpop.f32.mrb[133].mxu0 }
 0x559   : > { %9130 = vst [vmem:[#allocation38_spill] sm:$0xff] %v8155_v56  ;;  %v8157_v25 = vpop.f32.mrb[134].mxu0 }
 0x55a   : > { %9131 = vst [vmem:[#allocation39_spill] sm:$0xff] %v8157_v25  ;;  %v8159_v59 = vpop.f32.mrb[135].mxu0 }
 0x55b   : > { %9132 = vst [vmem:[#allocation40_spill] sm:$0xff] %v8159_v59 }
 0x57d   : > { %v3123_v9 = vpop.f32.mrb[56].mxu1 }
 0x57e   : > { %v3124_v37 = vadd.f32 %v3123_v9, %v8168_v21  ;;  %v3125_v58 = vpop.f32.mrb[57].mxu1 }
 0x57f   : > { %v3126_v26 = vadd.f32 %v3125_v58, %v8177_v52  ;;  %v3127_v15 = vpop.f32.mrb[58].mxu1 }
 0x580   : > { %v3234_v61 = vmul.f32 0.70710677, %v3124_v37  ;;  %v3128_v55 = vadd.f32 %v3127_v15, %v8168_v21  ;;  %v3129_v10 = vpop.f32.mrb[59].mxu1 }
 0x581   : > { %v3235_v51 = vmul.f32 0.70710677, %v3126_v26  ;;  %v3130_v20 = vadd.f32 %v3129_v10, %v8177_v52 }
 0x582   : > { %6249 = verf.f32 %v3234_v61  ;;  %v3236_v5 = vmul.f32 0.70710677, %v3128_v55 }
 0x583   : > { %6251 = verf.f32 %v3235_v51  ;;  %v3237_v60 = vmul.f32 0.70710677, %v3130_v20 }
 0x584   : > { %6253 = verf.f32 %v3236_v5  ;;  %v3204_v5 = vmul.f32 0.5, %v3128_v55 }
 0x585   : > { %6255 = verf.f32 %v3237_v60  ;;  %v3133_v6 = vpop.f32.mrb[60].mxu1 }
 0x586   : > { %v3134_v40 = vadd.f32 %v3133_v6, %v8168_v21  ;;  %v3135_v54 = vpop.f32.mrb[61].mxu1 }
 0x587   : > { %v3136_v4 = vadd.f32 %v3135_v54, %v8177_v52  ;;  %v3137_v3 = vpop.f32.mrb[62].mxu1 }
 0x588   : > { %v3238_v36 = vmul.f32 0.70710677, %v3134_v40  ;;  %v3138_v18 = vadd.f32 %v3137_v3, %v8168_v21  ;;  %v3139_v35 = vpop.f32.mrb[63].mxu1  ;;  %v3205_v3 = vmul.f32 0.5, %v3130_v20 }
 0x589   : > { %v3239_v14 = vmul.f32 0.70710677, %v3136_v4  ;;  %v3140_v16 = vadd.f32 %v3139_v35, %v8177_v52  ;;  %v3207_v56 = vmul.f32 0.5, %v3136_v4 }
 0x58a   : > { %6257 = verf.f32 %v3238_v36  ;;  %v3240_v45 = vmul.f32 0.70710677, %v3138_v18 }
 0x58b   : > { %6259 = verf.f32 %v3239_v14  ;;  %v3241_v48 = vmul.f32 0.70710677, %v3140_v16 }
 0x58c   : > { %v6250_v44 = vpop.eup %6249  ;;  %6261 = verf.f32 %v3240_v45 }
 0x58d   : > { %v6252_v12 = vpop.eup %6251  ;;  %6263 = verf.f32 %v3241_v48  ;;  %v3143_v9 = vpop.f32.mrb[64].mxu1  ;;  %v3298_v45 = vadd.f32 1.0, %v6250_v44  ;;  %v3203_v48 = vmul.f32 0.5, %v3126_v26 }
 0x58e   : > { %v6254_v58 = vpop.eup %6253  ;;  %v8188_v15 = vadd.f32 %v3143_v9, %v8168_v21  ;;  %v3145_v61 = vpop.f32.mrb[65].mxu1  ;;  %v3299_v51 = vadd.f32 1.0, %v6252_v12 }
 0x58f   : > { %v6256_v10 = vpop.eup %6255  ;;  %v3300_v60 = vadd.f32 1.0, %v6254_v58  ;;  %v8191_v6 = vadd.f32 %v3145_v61, %v8177_v52  ;;  %v3147_v54 = vpop.f32.mrb[66].mxu1  ;;  %v3202_v58 = vmul.f32 0.5, %v3124_v37 }
 0x590   : > { %v3301_v36 = vadd.f32 1.0, %v6256_v10  ;;  %v3242_v35 = vmul.f32 0.70710677, %v8188_v15  ;;  %v3149_v14 = vpop.f32.mrb[67].mxu1  ;;  %v8196_v12 = vadd.f32 %v3147_v54, %v8168_v21  ;;  %v3331_v61 = vmul.f32 %v3299_v51, %v3203_v48 }
 0x591   : > { %v3332_v59 = vmul.f32 %v3300_v60, %v3204_v5  ;;  %v3243_v9 = vmul.f32 0.70710677, %v8191_v6  ;;  %v8199_v55 = vadd.f32 %v3149_v14, %v8177_v52  ;;  %v3206_v10 = vmul.f32 0.5, %v3134_v40 }
 0x592   : > { %v3333_v25 = vmul.f32 %v3301_v36, %v3205_v3  ;;  %6265 = verf.f32 %v3242_v35  ;;  %v3244_v44 = vmul.f32 0.70710677, %v8196_v12  ;;  %v3330_v60 = vmul.f32 %v3298_v45, %v3202_v58 }
 0x593   : > { %6267 = verf.f32 %v3243_v9  ;;  %v3245_v26 = vmul.f32 0.70710677, %v8199_v55  ;;  %v8204_v3 = vadd.f32 %v3332_v59, %v7273_v38  ;;  %v3208_v54 = vmul.f32 0.5, %v3138_v18  ;;  %v9135_v59 = vld [vmem:[#allocation6_spill] sm:$0xff] }
 0x594   : > { %v6258_v20 = vpop.eup %6257  ;;  %v3209_v36 = vmul.f32 0.5, %v3140_v16  ;;  %6269 = verf.f32 %v3244_v44  ;;  %v8210_v4 = vadd.f32 %v3333_v25, %v7264_v31  ;;  %v8216_v18 = vadd.f32 %v3331_v61, %v9135_v59  ;;  %v9141_v59 = vld [vmem:[#allocation11_spill] sm:$0xff] }
 0x595   : > { %v6260_v5 = vpop.eup %6259  ;;  %9133 = vst [vmem:[#allocation41_spill] sm:$0xff] %v8204_v3  ;;  %v3153_v35 = vpop.f32.mrb[68].mxu1  ;;  %6271 = verf.f32 %v3245_v26  ;;  %v3302_v16 = vadd.f32 1.0, %v6258_v20 }
 0x596   : > { %v6262_v14 = vpop.eup %6261  ;;  %v3303_v0 = vadd.f32 1.0, %v6260_v5  ;;  %v8207_v37 = vadd.f32 %v3153_v35, %v8168_v21  ;;  %v3155_v40 = vpop.f32.mrb[69].mxu1  ;;  %9134 = vst [vmem:[#allocation42_spill] sm:$0xff] %v8210_v4  ;;  %9136 = vst [vmem:[#allocation6_spill] sm:$0xff] %v8216_v18  ;;  %v9137_v35 = vld [vmem:[#allocation7_spill] sm:$0xff] }
 0x597   : > { %v6264_v51 = vpop.eup %6263  ;;  %v3304_v48 = vadd.f32 1.0, %v6262_v14  ;;  %v8213_v45 = vadd.f32 %v3155_v40, %v8177_v52  ;;  %v3157_v38 = vpop.f32.mrb[70].mxu1  ;;  %v8220_v8 = vadd.f32 %v3330_v60, %v9137_v35  ;;  %v3334_v40 = vmul.f32 %v3302_v16, %v3206_v10 }
 0x598   : > { %v3335_v9 = vmul.f32 %v3303_v0, %v3207_v56  ;;  %v3305_v58 = vadd.f32 1.0, %v6264_v51  ;;  %v3246_v44 = vmul.f32 0.70710677, %v8207_v37  ;;  %v3159_v5 = vpop.f32.mrb[71].mxu1  ;;  %v8224_v26 = vadd.f32 %v3157_v38, %v8168_v21  ;;  %v5929_v56 = vld [vmem:[%s9023_s3 + $0x480] ss:$8 sps:$4 sm:$0xff]  }
 0x599   : > { %9138 = vst [vmem:[#allocation7_spill] sm:$0xff] %v8220_v8  ;;  %v3336_v31 = vmul.f32 %v3304_v48, %v3208_v54  ;;  %v3247_v25 = vmul.f32 0.70710677, %v8213_v45  ;;  %v8227_v61 = vadd.f32 %v3159_v5, %v8177_v52  ;;  %v3427_v0 = vpack.c.bf16 %v8210_v4, %v8216_v18  ;;  %v5934_v54 = vld [vmem:[%s9023_s3 + $0x494] ss:$8 sps:$4 sm:$0xff]  }
 0x59a   : > { %v3337_v14 = vmul.f32 %v3305_v58, %v3209_v36  ;;  %6273 = verf.f32 %v3246_v44  ;;  %v3426_v20 = vpack.c.bf16 %v8204_v3, %v8220_v8  ;;  %v3248_v60 = vmul.f32 0.70710677, %v8224_v26  ;;  %v9139_v48 = vld [vmem:[#allocation9_spill] sm:$0xff]  ;;  %v9149_v3 = vld [vmem:[#allocation14_spill] sm:$0xff] }
 0x59b   : > { %6275 = verf.f32 %v3247_v25  ;;  %v3249_v51 = vmul.f32 0.70710677, %v8227_v61  ;;  %3642 = vmatprep.mubr.bf16.mxu1 %v3427_v0  ;;  %v8242_v38 = vadd.f32 %v3335_v9, %v9139_v48  ;;  %v3210_v5 = vmul.f32 0.5, %v8188_v15  ;;  %v9143_v0 = vld [vmem:[#allocation10_spill] sm:$0xff] }
 0x59c   : > { %v6266_v36 = vpop.eup %6265  ;;  %v8245_v58 = vadd.f32 %v3337_v14, %v9141_v59  ;;  %6277 = verf.f32 %v3248_v60  ;;  %3643 = vmatmul.mubr.bf16.vlgmr.msra.gmra.mrb[88].mxu1 %v3426_v20  ;;  %v8254_v9 = vadd.f32 %v3336_v31, %v9143_v0  ;;  %v5932_v14 = vld [vmem:[%s9023_s3 + $0x490] ss:$8 sps:$4 sm:$0xff]   ;;  %v3211_v15 = vmul.f32 0.5, %v8191_v6  ;;  %v5937_v31 = vld [vmem:[%s9023_s3 + $0x4a4] ss:$8 sps:$4 sm:$0xff]  }
 0x59d   : > { %9140 = vst [vmem:[#allocation9_spill] sm:$0xff] %v8242_v38  ;;  %v6268_v44 = vpop.eup %6267  ;;  %v3163_v35 = vpop.f32.mrb[72].mxu1  ;;  %6279 = verf.f32 %v3249_v51  ;;  %4494 = vmatpush1.bf16.msra.mxu1 %v5929_v56  ;;  %v3212_v60 = vmul.f32 0.5, %v8196_v12  ;;  %v3306_v56 = vadd.f32 1.0, %v6266_v36 }
 0x59e   : > { %9142 = vst [vmem:[#allocation11_spill] sm:$0xff] %v8245_v58  ;;  %v8249_v25 = vadd.f32 %v3163_v35, %v8168_v21  ;;  %v3165_v10 = vpop.f32.mrb[73].mxu1  ;;  %v3429_v16 = vpack.c.bf16 %v8245_v58, %v8242_v38  ;;  %9144 = vst [vmem:[#allocation10_spill] sm:$0xff] %v8254_v9  ;;  %v3307_v20 = vadd.f32 1.0, %v6268_v44  ;;  %4495 = vmatprep.subr.bf16.mxu1 %v5934_v54  ;;  %v6270_v59 = vpop.eup %6269  ;;  %v9145_v44 = vld [vmem:[#allocation8_spill] sm:$0xff]  ;;  %v3213_v54 = vmul.f32 0.5, %v8199_v55 }
 0x59f   : > { %v8262_v51 = vadd.f32 %v3165_v10, %v8177_v52  ;;  %v3167_v48 = vpop.f32.mrb[74].mxu1  ;;  %v8272_v12 = vadd.f32 %v3334_v40, %v9145_v44  ;;  %v6272_v10 = vpop.eup %6271  ;;  %v3308_v58 = vadd.f32 1.0, %v6270_v59  ;;  %v5935_v40 = vld [vmem:[%s9023_s3 + $0x4a0] ss:$8 sps:$4 sm:$0xff]   ;;  %v3338_v44 = vmul.f32 %v3306_v56, %v3210_v5 }
 0x5a0   : > { %v3250_v35 = vmul.f32 0.70710677, %v8249_v25  ;;  %v8269_v0 = vadd.f32 %v3167_v48, %v8168_v21  ;;  %v3169_v6 = vpop.f32.mrb[75].mxu1  ;;  %3652 = vmatprep.mubr.bf16.mxu1 %v3429_v16  ;;  %v3309_v36 = vadd.f32 1.0, %v6272_v10  ;;  %v3339_v16 = vmul.f32 %v3307_v20, %v3211_v15 }
 0x5a1   : > { %9146 = vst [vmem:[#allocation8_spill] sm:$0xff] %v8272_v12  ;;  %v3251_v38 = vmul.f32 0.70710677, %v8262_v51  ;;  %v8277_v18 = vadd.f32 %v3169_v6, %v8177_v52  ;;  %v3428_v48 = vpack.c.bf16 %v8254_v9, %v8272_v12  ;;  %4496 = vmatpush1.bf16.msra.mxu1 %v5932_v14  ;;  %v3340_v59 = vmul.f32 %v3308_v58, %v3212_v60  ;;  %v9147_v60 = vld [vmem:[#allocation15_spill] sm:$0xff] }
 0x5a2   : > { %6281 = verf.f32 %v3250_v35  ;;  %v3252_v4 = vmul.f32 0.70710677, %v8269_v0  ;;  %4497 = vmatprep.subr.bf16.mxu1 %v5937_v31  ;;  %v5940_v35 = vld [vmem:[%s9023_s3 + $0x4b4] ss:$8 sps:$4 sm:$0xff]   ;;  %v3341_v10 = vmul.f32 %v3309_v36, %v3213_v54  ;;  %v3214_v14 = vmul.f32 0.5, %v8207_v37 }
 0x5a3   : > { %6283 = verf.f32 %v3251_v38  ;;  %v3253_v55 = vmul.f32 0.70710677, %v8277_v18  ;;  %v3215_v12 = vmul.f32 0.5, %v8213_v45  ;;  %v8298_v5 = vadd.f32 %v3340_v59, %v9149_v3  ;;  %v5938_v37 = vld [vmem:[%s9023_s3 + $0x4b0] ss:$8 sps:$4 sm:$0xff]  }
 0x5a4   : > { %v6274_v6 = vpop.eup %6273  ;;  %6285 = verf.f32 %v3252_v4  ;;  %3653 = vmatmul.mubr.bf16.gmra.mrb[92].mxu1 %v3428_v48  ;;  %v8295_v31 = vadd.f32 %v3341_v10, %v9147_v60  ;;  %v3216_v45 = vmul.f32 0.5, %v8224_v26  ;;  %v9151_v36 = vld [vmem:[#allocation13_spill] sm:$0xff]  ;;  %v5943_v3 = vld [vmem:[%s9023_s3 + $0x4c4] ss:$8 sps:$4 sm:$0xff]  }
 0x5a5   : > { %v6276_v9 = vpop.eup %6275  ;;  %6287 = verf.f32 %v3253_v55  ;;  %v3173_v58 = vpop.f32.mrb[76].mxu1  ;;  %9150 = vst [vmem:[#allocation14_spill] sm:$0xff] %v8298_v5  ;;  %4498 = vmatpush1.bf16.msra.mxu1 %v5935_v40  ;;  %v8309_v48 = vadd.f32 %v3339_v16, %v9151_v36  ;;  %v3310_v59 = vadd.f32 1.0, %v6274_v6  ;;  %v5946_v36 = vld [vmem:[%s9023_s3 + $0x4d4] ss:$8 sps:$4 sm:$0xff]  }
 0x5a6   : > { %v3311_v38 = vadd.f32 1.0, %v6276_v9  ;;  %v8292_v15 = vadd.f32 %v3173_v58, %v8168_v21  ;;  %v3175_v20 = vpop.f32.mrb[77].mxu1  ;;  %9148 = vst [vmem:[#allocation15_spill] sm:$0xff] %v8295_v31  ;;  %v6278_v4 = vpop.eup %6277  ;;  %v3217_v9 = vmul.f32 0.5, %v8227_v61  ;;  %4499 = vmatprep.subr.bf16.mxu1 %v5940_v35  ;;  %v9153_v58 = vld [vmem:[#allocation12_spill] sm:$0xff] }
 0x5a7   : > { %v8306_v56 = vadd.f32 %v3175_v20, %v8177_v52  ;;  %v3177_v54 = vpop.f32.mrb[78].mxu1  ;;  %9152 = vst [vmem:[#allocation13_spill] sm:$0xff] %v8309_v48  ;;  %v6280_v40 = vpop.eup %6279  ;;  %v3312_v55 = vadd.f32 1.0, %v6278_v4  ;;  %v8316_v61 = vadd.f32 %v3338_v44, %v9153_v58  ;;  %v3431_v6 = vpack.c.bf16 %v8295_v31, %v8309_v48 }
 0x5a8   : > { %v3254_v10 = vmul.f32 0.70710677, %v8292_v15  ;;  %v3179_v26 = vpop.f32.mrb[79].mxu1  ;;  %v3343_v20 = vmul.f32 %v3311_v38, %v3215_v12  ;;  %v3313_v60 = vadd.f32 1.0, %v6280_v40  ;;  %v8320_v16 = vadd.f32 %v3177_v54, %v8168_v21  ;;  %v5941_v12 = vld [vmem:[%s9023_s3 + $0x4c0] ss:$8 sps:$4 sm:$0xff]  }
 0x5a9   : > { %v3255_v8 = vmul.f32 0.70710677, %v8306_v56  ;;  %v8323_v35 = vadd.f32 %v3179_v26, %v8177_v52  ;;  %v3430_v4 = vpack.c.bf16 %v8298_v5, %v8316_v61  ;;  %4500 = vmatpush1.bf16.msra.mxu1 %v5938_v37  ;;  %v3344_v44 = vmul.f32 %v3312_v55, %v3216_v45  ;;  %3662 = vmatprep.mubr.bf16.mxu1 %v3431_v6 }
 0x5aa   : > { %6289 = verf.f32 %v3254_v10  ;;  %v3345_v38 = vmul.f32 %v3313_v60, %v3217_v9  ;;  %v3256_v54 = vmul.f32 0.70710677, %v8320_v16  ;;  %4501 = vmatprep.subr.bf16.mxu1 %v5943_v3  ;;  %v3218_v10 = vmul.f32 0.5, %v8249_v25  ;;  %v9154_v3 = vld [vmem:[#allocation17_spill] sm:$0xff]  ;;  %v9156_v60 = vld [vmem:[#allocation19_spill] sm:$0xff] }
 0x5ab   : > { %6291 = verf.f32 %v3255_v8  ;;  %v3219_v26 = vmul.f32 0.5, %v8262_v51  ;;  %v3220_v37 = vmul.f32 0.5, %v8269_v0  ;;  %v3257_v58 = vmul.f32 0.70710677, %v8323_v35 }
 0x5ac   : > { %v6282_v40 = vpop.eup %6281  ;;  %v3342_v9 = vmul.f32 %v3310_v59, %v3214_v14  ;;  %6293 = verf.f32 %v3256_v54  ;;  %3663 = vmatmul.mubr.bf16.gmra.mrb[96].mxu1 %v3430_v4  ;;  %v8341_v55 = vadd.f32 %v3343_v20, %v9154_v3  ;;  %v8344_v48 = vadd.f32 %v3345_v38, %v9156_v60  ;;  %v5944_v14 = vld [vmem:[%s9023_s3 + $0x4d0] ss:$8 sps:$4 sm:$0xff]   ;;  %v9158_v54 = vld [vmem:[#allocation18_spill] sm:$0xff] }
 0x5ad   : > { %v6284_v45 = vpop.eup %6283  ;;  %v3183_v8 = vpop.f32.mrb[80].mxu1  ;;  %v3314_v25 = vadd.f32 1.0, %v6282_v40  ;;  %6295 = verf.f32 %v3257_v58  ;;  %4502 = vmatpush1.bf16.msra.mxu1 %v5941_v12  ;;  %v8358_v40 = vadd.f32 %v3344_v44, %v9158_v54  ;;  %v5949_v12 = vld [vmem:[%s9023_s3 + $0x4e4] ss:$8 sps:$4 sm:$0xff]   ;;  %v9160_v44 = vld [vmem:[#allocation16_spill] sm:$0xff] }
 0x5ae   : > { %9155 = vst [vmem:[#allocation12_spill] sm:$0xff] %v8341_v55  ;;  %9157 = vst [vmem:[#allocation17_spill] sm:$0xff] %v8344_v48  ;;  %v6286_v31 = vpop.eup %6285  ;;  %v3315_v5 = vadd.f32 1.0, %v6284_v45  ;;  %v8347_v51 = vadd.f32 %v3183_v8, %v8168_v21  ;;  %v3185_v0 = vpop.f32.mrb[81].mxu1  ;;  %v3433_v38 = vpack.c.bf16 %v8344_v48, %v8341_v55  ;;  %4503 = vmatprep.subr.bf16.mxu1 %v5946_v36  ;;  %v3221_v45 = vmul.f32 0.5, %v8277_v18 }
 0x5af   : > { %v6288_v59 = vpop.eup %6287  ;;  %v3316_v6 = vadd.f32 1.0, %v6286_v31  ;;  %v8353_v20 = vadd.f32 %v3185_v0, %v8177_v52  ;;  %v3187_v4 = vpop.f32.mrb[82].mxu1  ;;  %9159 = vst [vmem:[#allocation19_spill] sm:$0xff] %v8358_v40  ;;  %v8370_v36 = vadd.f32 %v3342_v9, %v9160_v44  ;;  %v5947_v18 = vld [vmem:[%s9023_s3 + $0x4e0] ss:$8 sps:$4 sm:$0xff]  }
 0x5b0   : > { %v3347_v58 = vmul.f32 %v3315_v5, %v3219_v26  ;;  %v3317_v8 = vadd.f32 1.0, %v6288_v59  ;;  %v3258_v31 = vmul.f32 0.70710677, %v8347_v51  ;;  %v3189_v3 = vpop.f32.mrb[83].mxu1  ;;  %v8367_v48 = vadd.f32 %v3187_v4, %v8168_v21  ;;  %3672 = vmatprep.mubr.bf16.mxu1 %v3433_v38  ;;  %v5952_v9 = vld [vmem:[%s9023_s3 + $0x4f4] ss:$8 sps:$4 sm:$0xff]  }
 0x5b1   : > { %v3348_v60 = vmul.f32 %v3316_v6, %v3220_v37  ;;  %v3259_v0 = vmul.f32 0.70710677, %v8353_v20  ;;  %9161 = vst [vmem:[#allocation18_spill] sm:$0xff] %v8370_v36  ;;  %v8373_v55 = vadd.f32 %v3189_v3, %v8177_v52  ;;  %4504 = vmatpush1.bf16.msra.mxu1 %v5944_v14  ;;  %v3346_v5 = vmul.f32 %v3314_v25, %v3218_v10  ;;  %v9162_v6 = vld [vmem:[#allocation21_spill] sm:$0xff]  ;;  %v9164_v38 = vld [vmem:[#allocation23_spill] sm:$0xff] }
 0x5b2   : > { %v3349_v54 = vmul.f32 %v3317_v8, %v3221_v45  ;;  %v3260_v26 = vmul.f32 0.70710677, %v8367_v48  ;;  %v3432_v37 = vpack.c.bf16 %v8358_v40, %v8370_v36  ;;  %4505 = vmatprep.subr.bf16.mxu1 %v5949_v12  ;;  %v8386_v4 = vadd.f32 %v3347_v58, %v9162_v6  ;;  %v9166_v8 = vld [vmem:[#allocation22_spill] sm:$0xff]  ;;  %v5950_v44 = vld [vmem:[%s9023_s3 + $0x4f0] ss:$8 sps:$4 sm:$0xff]  }
 0x5b3   : > { %6297 = verf.f32 %v3259_v0  ;;  %v3261_v14 = vmul.f32 0.70710677, %v8373_v55  ;;  %v8392_v12 = vadd.f32 %v3348_v60, %v9166_v8  ;;  %v3224_v60 = vmul.f32 0.5, %v8320_v16 }
 0x5b4   : > { %v6290_v59 = vpop.eup %6289  ;;  %6299 = verf.f32 %v3258_v31  ;;  %9163 = vst [vmem:[#allocation16_spill] sm:$0xff] %v8386_v4  ;;  %v8389_v10 = vadd.f32 %v3349_v54, %v9164_v38  ;;  %3673 = vmatmul.mubr.bf16.gmra.mrb[100].mxu1 %v3432_v37  ;;  %v3225_v37 = vmul.f32 0.5, %v8323_v35  ;;  %v3222_v36 = vmul.f32 0.5, %v8292_v15 }
 0x5b5   : > { %v6292_v25 = vpop.eup %6291  ;;  %6301 = verf.f32 %v3260_v26  ;;  %v3193_v45 = vpop.f32.mrb[84].mxu1  ;;  %4506 = vmatpush1.bf16.msra.mxu1 %v5947_v18  ;;  %v3223_v26 = vmul.f32 0.5, %v8306_v56  ;;  %v5955_v18 = vld [vmem:[%s9023_s3 + $0x504] ss:$8 sps:$4 sm:$0xff]   ;;  %v9167_v56 = vld [vmem:[#allocation20_spill] sm:$0xff] }
 0x5b6   : > { %9165 = vst [vmem:[#allocation21_spill] sm:$0xff] %v8389_v10  ;;  %v3319_v3 = vadd.f32 1.0, %v6292_v25  ;;  %6303 = verf.f32 %v3261_v14  ;;  %v8395_v0 = vadd.f32 %v3193_v45, %v8168_v21  ;;  %v3195_v31 = vpop.f32.mrb[85].mxu1  ;;  %v3435_v58 = vpack.c.bf16 %v8389_v10, %v8386_v4  ;;  %v6294_v54 = vpop.eup %6293  ;;  %4507 = vmatprep.subr.bf16.mxu1 %v5952_v9 }
 0x5b7   : > { %v8406_v14 = vadd.f32 %v3195_v31, %v8177_v52  ;;  %v3197_v6 = vpop.f32.mrb[86].mxu1  ;;  %v6296_v38 = vpop.eup %6295  ;;  %v3318_v25 = vadd.f32 1.0, %v6290_v59  ;;  %v3320_v45 = vadd.f32 1.0, %v6294_v54  ;;  %v8413_v16 = vadd.f32 %v3346_v5, %v9167_v56 }
 0x5b8   : > { %v3262_v8 = vmul.f32 0.70710677, %v8395_v0  ;;  %v3199_v10 = vpop.f32.mrb[87].mxu1  ;;  %3682 = vmatprep.mubr.bf16.mxu1 %v3435_v58  ;;  %v3351_v35 = vmul.f32 %v3319_v3, %v3223_v26  ;;  %v3321_v4 = vadd.f32 1.0, %v6296_v38  ;;  %v3198_v9 = vadd.f32 %v3197_v6, %v8168_v21  ;;  %v5953_v58 = vld [vmem:[%s9023_s3 + $0x500] ss:$8 sps:$4 sm:$0xff]  }
 0x5b9   : > { %v3263_v31 = vmul.f32 0.70710677, %v8406_v14  ;;  %v3200_v40 = vadd.f32 %v3199_v10, %v8177_v52  ;;  %v3434_v59 = vpack.c.bf16 %v8392_v12, %v8413_v16  ;;  %4508 = vmatpush1.bf16.msra.mxu1 %v5950_v44  ;;  %v3352_v5 = vmul.f32 %v3320_v45, %v3224_v60  ;;  %v5958_v21 = vld [vmem:[%s9023_s3 + $0x514] ss:$8 sps:$4 sm:$0xff]   ;;  %v9169_v6 = vld [vmem:[#allocation27_spill] sm:$0xff] }
 0x5ba   : > { %v3353_v54 = vmul.f32 %v3321_v4, %v3225_v37  ;;  %v3264_v3 = vmul.f32 0.70710677, %v3198_v9  ;;  %4509 = vmatprep.subr.bf16.mxu1 %v5955_v18  ;;  %v3350_v10 = vmul.f32 %v3318_v25, %v3222_v36  ;;  %v9168_v44 = vld [vmem:[#allocation25_spill] sm:$0xff]  ;;  %v3227_v45 = vmul.f32 0.5, %v8353_v20  ;;  %v9171_v25 = vld [vmem:[#allocation26_spill] sm:$0xff] }
 0x5bb   : > { %6305 = verf.f32 %v3263_v31  ;;  %v3265_v15 = vmul.f32 0.70710677, %v3200_v40  ;;  %v8428_v26 = vadd.f32 %v3351_v35, %v9168_v44  ;;  %v5956_v37 = vld [vmem:[%s9023_s3 + $0x510] ss:$8 sps:$4 sm:$0xff]   ;;  %v3228_v35 = vmul.f32 0.5, %v8367_v48 }
 0x5bc   : > { %6307 = verf.f32 %v3262_v8  ;;  %3683 = vmatmul.mubr.bf16.gmra.mrb[104].mxu1 %v3434_v59  ;;  %v8431_v38 = vadd.f32 %v3353_v54, %v9169_v6  ;;  %v8440_v8 = vadd.f32 %v3352_v5, %v9171_v25  ;;  %v3229_v59 = vmul.f32 0.5, %v8373_v55  ;;  %v9177_v25 = vld [vmem:[#allocation30_spill] sm:$0xff] }
 0x5bd   : > { %v6298_v52 = vpop.eup %6297  ;;  %6309 = verf.f32 %v3264_v3  ;;  %4510 = vmatpush1.bf16.msra.mxu1 %v5953_v58  ;;  %v3226_v20 = vmul.f32 0.5, %v8347_v51 }
 0x5be   : > { %9170 = vst [vmem:[#allocation23_spill] sm:$0xff] %v8431_v38  ;;  %v6300_v4 = vpop.eup %6299  ;;  %v3323_v60 = vadd.f32 1.0, %v6298_v52  ;;  %6311 = verf.f32 %v3265_v15  ;;  %v3437_v36 = vpack.c.bf16 %v8431_v38, %v8428_v26  ;;  %4511 = vmatprep.subr.bf16.mxu1 %v5958_v21  ;;  %v9172_v15 = vld [vmem:[#allocation24_spill] sm:$0xff] }
 0x5bf   : > { %v6302_v18 = vpop.eup %6301  ;;  %v3322_v58 = vadd.f32 1.0, %v6300_v4  ;;  %v8445_v52 = vadd.f32 %v3350_v10, %v9172_v15  ;;  %v9175_v4 = vld [vmem:[#allocation31_spill] sm:$0xff] }
 0x5c0   : > { %v6304_v56 = vpop.eup %6303  ;;  %v3324_v31 = vadd.f32 1.0, %v6302_v18  ;;  %v3355_v54 = vmul.f32 %v3323_v60, %v3227_v45  ;;  %3692 = vmatprep.mubr.bf16.mxu1 %v3437_v36  ;;  %v9173_v18 = vld [vmem:[#allocation29_spill] sm:$0xff] }
 0x5c1   : > { %v3325_v3 = vadd.f32 1.0, %v6304_v56  ;;  %4512 = vmatpush1.bf16.msra.mxu1 %v5956_v37  ;;  %v3436_v21 = vpack.c.bf16 %v8440_v8, %v8445_v52  ;;  %v3354_v48 = vmul.f32 %v3322_v58, %v3226_v20  ;;  %v3231_v37 = vmul.f32 0.5, %v8406_v14  ;;  %v9179_v20 = vld [vmem:[#allocation28_spill] sm:$0xff] }
 0x5c2   : > { %v3356_v44 = vmul.f32 %v3324_v31, %v3228_v35  ;;  %v8451_v55 = vadd.f32 %v3355_v54, %v9173_v18  ;;  %v3232_v31 = vmul.f32 0.5, %v3198_v9  ;;  %v3233_v58 = vmul.f32 0.5, %v3200_v40  ;;  %v9183_v40 = vld [vmem:[#allocation35_spill] sm:$0xff] }
 0x5c3   : > { %v3357_v5 = vmul.f32 %v3325_v3, %v3229_v59 }
 0x5c4   : > { %3693 = vmatmul.mubr.bf16.gmra.mrb[108].mxu1 %v3436_v21  ;;  %9174 = vst [vmem:[#allocation22_spill] sm:$0xff] %v8451_v55  ;;  %v8460_v56 = vadd.f32 %v3356_v44, %v9177_v25  ;;  %v3230_v21 = vmul.f32 0.5, %v8395_v0  ;;  %v9187_v0 = vld [vmem:[#allocation32_spill] sm:$0xff]  ;;  %v5961_v25 = vld [vmem:[%s9023_s3 + $0x524] ss:$8 sps:$4 sm:$0xff]  }
 0x5c5   : > { %v6306_v6 = vpop.eup %6305  ;;  %v8454_v60 = vadd.f32 %v3357_v5, %v9175_v4  ;;  %v8463_v5 = vadd.f32 %v3354_v48, %v9179_v20  ;;  %v9181_v4 = vld [vmem:[#allocation33_spill] sm:$0xff]  ;;  %v9185_v48 = vld [vmem:[#allocation34_spill] sm:$0xff]  ;;  %4513 = vmatprep.subr.bf16.mxu1 %v5961_v25 }
 0x5c6   : > { %v6308_v45 = vpop.eup %6307  ;;  %v3327_v10 = vadd.f32 1.0, %v6306_v6  ;;  %9178 = vst [vmem:[#allocation25_spill] sm:$0xff] %v8460_v56  ;;  %v5973_v20 = vld [vmem:[%s9023_s3 + $0x564] ss:$8 sps:$4 sm:$0xff]  }
 0x5c7   : > { %9176 = vst [vmem:[#allocation20_spill] sm:$0xff] %v8454_v60  ;;  %v6310_v36 = vpop.eup %6309  ;;  %v3439_v51 = vpack.c.bf16 %v8454_v60, %v8451_v55  ;;  %v3326_v54 = vadd.f32 1.0, %v6308_v45  ;;  %9180 = vst [vmem:[#allocation27_spill] sm:$0xff] %v8463_v5  ;;  %v3438_v18 = vpack.c.bf16 %v8460_v56, %v8463_v5 }
 0x5c8   : > { %v6312_v35 = vpop.eup %6311  ;;  %v3328_v59 = vadd.f32 1.0, %v6310_v36  ;;  %v3359_v3 = vmul.f32 %v3327_v10, %v3231_v37 }
 0x5c9   : > { %v3329_v15 = vadd.f32 1.0, %v6312_v35  ;;  %3702 = vmatprep.mubr.bf16.mxu1 %v3439_v51  ;;  %v3358_v44 = vmul.f32 %v3326_v54, %v3230_v21  ;;  %v5959_v35 = vld [vmem:[%s9023_s3 + $0x520] ss:$8 sps:$4 sm:$0xff]  }
 0x5ca   : > { %v3360_v14 = vmul.f32 %v3328_v59, %v3232_v31  ;;  %v8469_v9 = vadd.f32 %v3359_v3, %v9181_v4  ;;  %4514 = vmatpush1.bf16.msra.mxu1 %v5959_v35  ;;  %v5964_v31 = vld [vmem:[%s9023_s3 + $0x534] ss:$8 sps:$4 sm:$0xff]   ;;  %v5962_v59 = vld [vmem:[%s9023_s3 + $0x530] ss:$8 sps:$4 sm:$0xff]   ;;  %v5965_v54 = vld [vmem:[%s9023_s3 + $0x540] ss:$8 sps:$4 sm:$0xff]  }
 0x5cb   : > { %v3361_v6 = vmul.f32 %v3329_v15, %v3233_v58  ;;  %v8480_v37 = vadd.f32 %v3358_v44, %v9187_v0  ;;  %4515 = vmatprep.subr.bf16.mxu1 %v5964_v31  ;;  %v5967_v58 = vld [vmem:[%s9023_s3 + $0x544] ss:$8 sps:$4 sm:$0xff]   ;;  %v5970_v3 = vld [vmem:[%s9023_s3 + $0x554] ss:$8 sps:$4 sm:$0xff]   ;;  %v5968_v15 = vld [vmem:[%s9023_s3 + $0x550] ss:$8 sps:$4 sm:$0xff]  }
 0x5cc   : > { %3703 = vmatmul.mubr.bf16.gmra.mrb[112].mxu1 %v3438_v18  ;;  %9182 = vst [vmem:[#allocation26_spill] sm:$0xff] %v8469_v9  ;;  %v8477_v36 = vadd.f32 %v3360_v14, %v9185_v48  ;;  %v5971_v21 = vld [vmem:[%s9023_s3 + $0x560] ss:$8 sps:$4 sm:$0xff]   ;;  %v5976_v14 = vld [vmem:[%s9023_s3 + $0x574] ss:$8 sps:$4 sm:$0xff]  }
 0x5cd   : > { %v8472_v45 = vadd.f32 %v3361_v6, %v9183_v40  ;;  %9188 = vst [vmem:[#allocation31_spill] sm:$0xff] %v8480_v37  ;;  %v5974_v6 = vld [vmem:[%s9023_s3 + $0x570] ss:$8 sps:$4 sm:$0xff]   ;;  %v5977_v18 = vld [vmem:[%s9023_s3 + $0x600] ss:$8 sps:$4 sm:$0xff]  }
 0x5ce   : > { %9186 = vst [vmem:[#allocation29_spill] sm:$0xff] %v8477_v36  ;;  %v3440_v51 = vpack.c.bf16 %v8477_v36, %v8480_v37  ;;  %4516 = vmatpush1.bf16.msra.mxu1 %v5962_v59  ;;  %v9189_v44 = vld [vmem:[#allocation4_spill] sm:$0xff] }
 0x5cf   : > { %9184 = vst [vmem:[#allocation24_spill] sm:$0xff] %v8472_v45  ;;  %v3441_v10 = vpack.c.bf16 %v8472_v45, %v8469_v9  ;;  %4517 = vmatprep.subr.bf16.mxu1 %v5967_v58  ;;  %v8525_v4 = vrot.slane %v8164_v50, %v9189_v44  ;;  %v8529_v40 = vrot.slane %v8173_v49, %v9189_v44 }
 0x5d1   : > { %3712 = vmatprep.mubr.bf16.mxu1 %v3441_v10 }
 0x5d2   : > { %4518 = vmatpush1.bf16.msra.mxu1 %v5965_v54 }
 0x5d3   : > { %4519 = vmatprep.subr.bf16.mxu1 %v5970_v3 }
 0x5d4   : > { %3713 = vmatmul.mubr.bf16.gmra.mrb[116].mxu1 %v3440_v51 }
 0x5d6   : > { %4520 = vmatpush1.bf16.msra.mxu1 %v5968_v15 }
 0x5d7   : > { %4521 = vmatprep.subr.bf16.mxu1 %v5973_v20  ;;  %v9190_v20 = vld [vmem:[#allocation3_spill] sm:$0xff] }
 0x5da   : > { %4522 = vmatpush1.bf16.msra.mxu1 %v5971_v21  ;;  %v8537_v21 = vrot.slane %v8164_v50, %v9190_v20 }
 0x5db   : > { %4523 = vmatprep.subr.bf16.mxu1 %v5976_v14  ;;  %v8541_v14 = vrot.slane %v8173_v49, %v9190_v20 }
 0x5dc   : > { %v4213_v50 = vadd.f32 %v8537_v21, %v8094_v30  ;;  %v8565_v30 = vadd.f32 %v8537_v21, %v8102_v23  ;;  %v8582_v23 = vadd.f32 %v8537_v21, %v8110_v2  ;;  %v8590_v9 = vadd.f32 %v8537_v21, %v8114_v24 }
 0x5dd   : > { %v4214_v49 = vadd.f32 %v8541_v14, %v8096_v39  ;;  %v4216_v20 = vadd.f32 %v8541_v14, %v8100_v13  ;;  %v8569_v39 = vadd.f32 %v8541_v14, %v8104_v41  ;;  %v8578_v13 = vadd.f32 %v8541_v14, %v8108_v57 }
 0x5de   : > { %4524 = vmatpush1.bf16.msra.mxu1 %v5974_v6  ;;  %v8586_v41 = vadd.f32 %v8541_v14, %v8112_v28 }
 0x5df   : > { %5466 = vmatprep.subr.bf16.mxu1 %v5977_v18 }
 0x66f   : > { %v3644_v10 = vpop.f32.mrb[88].mxu1 }
 0x670   : > { %v3645_v48 = vadd.f32 %v3644_v10, %v8525_v4  ;;  %v3646_v0 = vpop.f32.mrb[89].mxu1 }
 0x671   : > { %v3647_v51 = vadd.f32 %v3646_v0, %v8529_v40  ;;  %v3648_v25 = vpop.f32.mrb[90].mxu1 }
 0x672   : > { %v3755_v35 = vmul.f32 0.70710677, %v3645_v48  ;;  %v3649_v31 = vadd.f32 %v3648_v25, %v8525_v4  ;;  %v3650_v59 = vpop.f32.mrb[91].mxu1 }
 0x673   : > { %v3756_v58 = vmul.f32 0.70710677, %v3647_v51  ;;  %v3651_v54 = vadd.f32 %v3650_v59, %v8529_v40  ;;  %v3724_v57 = vmul.f32 0.5, %v3647_v51  ;;  %v8601_v51 = vadd.f32 %v8541_v14, %v8116_v11 }
 0x674   : > { %6313 = verf.f32 %v3755_v35  ;;  %v3757_v3 = vmul.f32 0.70710677, %v3649_v31  ;;  %v3725_v55 = vmul.f32 0.5, %v3649_v31 }
 0x675   : > { %6315 = verf.f32 %v3756_v58  ;;  %v3758_v15 = vmul.f32 0.70710677, %v3651_v54  ;;  %v3726_v56 = vmul.f32 0.5, %v3651_v54 }
 0x676   : > { %6317 = verf.f32 %v3757_v3 }
 0x677   : > { %6319 = verf.f32 %v3758_v15  ;;  %v3654_v6 = vpop.f32.mrb[92].mxu1  ;;  %v4215_v15 = vadd.f32 %v8537_v21, %v8098_v17  ;;  %v8574_v17 = vadd.f32 %v8537_v21, %v8106_v29 }
 0x678   : > { %v3655_v18 = vadd.f32 %v3654_v6, %v8525_v4  ;;  %v3656_v44 = vpop.f32.mrb[93].mxu1 }
 0x679   : > { %v8545_v10 = vadd.f32 %v3656_v44, %v8529_v40  ;;  %v3658_v0 = vpop.f32.mrb[94].mxu1 }
 0x67a   : > { %v3759_v25 = vmul.f32 0.70710677, %v3655_v18  ;;  %v8548_v35 = vadd.f32 %v3658_v0, %v8525_v4  ;;  %v3660_v59 = vpop.f32.mrb[95].mxu1 }
 0x67b   : > { %v3760_v58 = vmul.f32 0.70710677, %v8545_v10  ;;  %v8556_v3 = vadd.f32 %v3660_v59, %v8529_v40  ;;  %v3723_v59 = vmul.f32 0.5, %v3645_v48 }
 0x67c   : > { %6321 = verf.f32 %v3759_v25  ;;  %v3761_v6 = vmul.f32 0.70710677, %v8548_v35 }
 0x67d   : > { %6323 = verf.f32 %v3760_v58  ;;  %v3762_v44 = vmul.f32 0.70710677, %v8556_v3 }
 0x67e   : > { %v6314_v0 = vpop.eup %6313  ;;  %6325 = verf.f32 %v3761_v6 }
 0x67f   : > { %v6316_v25 = vpop.eup %6315  ;;  %v3819_v58 = vadd.f32 1.0, %v6314_v0  ;;  %6327 = verf.f32 %v3762_v44  ;;  %v3664_v45 = vpop.f32.mrb[96].mxu1 }
 0x680   : > { %v6318_v29 = vpop.eup %6317  ;;  %v3820_v36 = vadd.f32 1.0, %v6316_v25  ;;  %v8593_v2 = vadd.f32 %v3664_v45, %v8525_v4  ;;  %v3666_v6 = vpop.f32.mrb[97].mxu1 }
 0x681   : > { %v6320_v37 = vpop.eup %6319  ;;  %v3851_v60 = vmul.f32 %v3819_v58, %v3723_v59  ;;  %v3821_v28 = vadd.f32 1.0, %v6318_v29  ;;  %v8596_v48 = vadd.f32 %v3666_v6, %v8529_v40  ;;  %v3668_v44 = vpop.f32.mrb[98].mxu1 }
 0x682   : > { %v3852_v0 = vmul.f32 %v3820_v36, %v3724_v57  ;;  %v3822_v5 = vadd.f32 1.0, %v6320_v37  ;;  %v3763_v24 = vmul.f32 0.70710677, %v8593_v2  ;;  %v3670_v38 = vpop.f32.mrb[99].mxu1  ;;  %v8607_v58 = vadd.f32 %v3668_v44, %v8525_v4 }
 0x683   : > { %v8603_v45 = vadd.f32 %v4213_v50, %v3851_v60  ;;  %v3853_v25 = vmul.f32 %v3821_v28, %v3725_v55  ;;  %v3764_v31 = vmul.f32 0.70710677, %v8596_v48  ;;  %v8610_v36 = vadd.f32 %v3670_v38, %v8529_v40 }
 0x684   : > { %v3854_v59 = vmul.f32 %v3822_v5, %v3726_v56  ;;  %6329 = verf.f32 %v3763_v24  ;;  %v8614_v37 = vadd.f32 %v8537_v21, %v8118_v19  ;;  %v4246_v11 = vadd.f32 %v4214_v49, %v3852_v0 }
 0x685   : > { %v4247_v54 = vadd.f32 %v4215_v15, %v3853_v25  ;;  %6331 = verf.f32 %v3764_v31  ;;  %v8618_v55 = vadd.f32 %v8541_v14, %v8120_v53  ;;  %v3727_v56 = vmul.f32 0.5, %v3655_v18 }
 0x686   : > { %v6322_v60 = vpop.eup %6321  ;;  %v3765_v5 = vmul.f32 0.70710677, %v8607_v58  ;;  %v3766_v50 = vmul.f32 0.70710677, %v8610_v36  ;;  %v3728_v19 = vmul.f32 0.5, %v8545_v10  ;;  %v4248_v15 = vadd.f32 %v4216_v20, %v3854_v59 }
 0x687   : > { %v6324_v29 = vpop.eup %6323  ;;  %v4309_v38 = vpack.c.bf16 %v4247_v54, %v8603_v45  ;;  %v3823_v57 = vadd.f32 1.0, %v6322_v60  ;;  %v3674_v6 = vpop.f32.mrb[100].mxu1  ;;  %v3729_v44 = vmul.f32 0.5, %v8548_v35  ;;  %v3730_v25 = vmul.f32 0.5, %v8556_v3 }
 0x688   : > { %v6326_v28 = vpop.eup %6325  ;;  %v3824_v49 = vadd.f32 1.0, %v6324_v29  ;;  %6333 = verf.f32 %v3765_v5  ;;  %v8626_v53 = vadd.f32 %v3674_v6, %v8525_v4  ;;  %v3676_v18 = vpop.f32.mrb[101].mxu1  ;;  %v8635_v60 = vadd.f32 %v8537_v21, %v8122_v47 }
 0x689   : > { %v6328_v0 = vpop.eup %6327  ;;  %v3825_v24 = vadd.f32 1.0, %v6326_v28  ;;  %6335 = verf.f32 %v3766_v50  ;;  %v8630_v45 = vadd.f32 %v3676_v18, %v8529_v40  ;;  %v3678_v10 = vpop.f32.mrb[102].mxu1  ;;  %v3855_v31 = vmul.f32 %v3823_v57, %v3727_v56  ;;  %v5978_v57 = vld [vmem:[%s9023_s3 + $0x580] ss:$8 sps:$4 sm:$0xff]  }
 0x68a   : > { %v3856_v20 = vmul.f32 %v3824_v49, %v3728_v19  ;;  %v3826_v59 = vadd.f32 1.0, %v6328_v0  ;;  %v3767_v54 = vmul.f32 0.70710677, %v8626_v53  ;;  %v3680_v35 = vpop.f32.mrb[103].mxu1  ;;  %v8639_v3 = vadd.f32 %v3678_v10, %v8525_v4  ;;  %v5979_v49 = vld [vmem:[%s9023_s3 + $0x610] ss:$8 sps:$4 sm:$0xff]  }
 0x68b   : > { %v3857_v5 = vmul.f32 %v3825_v24, %v3729_v44  ;;  %v3768_v29 = vmul.f32 0.70710677, %v8630_v45  ;;  %v8642_v6 = vadd.f32 %v3680_v35, %v8529_v40  ;;  %v4310_v56 = vpack.c.bf16 %v4248_v15, %v4246_v11  ;;  %v5981_v35 = vld [vmem:[%s9023_s3 + $0x620] ss:$8 sps:$4 sm:$0xff]  }
 0x68c   : > { %v3858_v50 = vmul.f32 %v3826_v59, %v3730_v25  ;;  %6337 = verf.f32 %v3767_v54  ;;  %v8649_v47 = vadd.f32 %v8541_v14, %v8124_v7  ;;  %v3769_v19 = vmul.f32 0.70710677, %v8639_v3 }
 0x68d   : > { %6339 = verf.f32 %v3768_v29  ;;  %v4250_v28 = vadd.f32 %v8569_v39, %v3856_v20  ;;  %v3731_v11 = vmul.f32 0.5, %v8593_v2  ;;  %v3770_v15 = vmul.f32 0.70710677, %v8642_v6  ;;  %4525 = vmatprep.mubr.bf16.mxu1 %v4310_v56 }
 0x68e   : > { %v6330_v44 = vpop.eup %6329  ;;  %v4252_v18 = vadd.f32 %v8578_v13, %v3858_v50  ;;  %v4249_v7 = vadd.f32 %v8565_v30, %v3855_v31  ;;  %v3732_v25 = vmul.f32 0.5, %v8596_v48  ;;  %6341 = verf.f32 %v3769_v19  ;;  %4526 = vmatmul.mubr.bf16.vlgmr.msra.gmra.mrb[120].mxu1 %v4309_v38  ;;  %v5980_v30 = vld [vmem:[%s9023_s3 + $0x590] ss:$8 sps:$4 sm:$0xff]  }
 0x68f   : > { %v6332_v0 = vpop.eup %6331  ;;  %v3827_v24 = vadd.f32 1.0, %v6330_v44  ;;  %v3684_v39 = vpop.f32.mrb[104].mxu1  ;;  %v4251_v10 = vadd.f32 %v8574_v17, %v3857_v5  ;;  %6343 = verf.f32 %v3770_v15  ;;  %5467 = vmatpush3.bf16.msra.mxu1 %v5978_v57  ;;  %v8670_v13 = vadd.f32 %v8537_v21, %v8126_v43 }
 0x690   : > { %v3828_v20 = vadd.f32 1.0, %v6332_v0  ;;  %v8663_v2 = vadd.f32 %v3684_v39, %v8525_v4  ;;  %v3686_v59 = vpop.f32.mrb[105].mxu1  ;;  %v4312_v54 = vpack.c.bf16 %v4252_v18, %v4250_v28  ;;  %v8674_v48 = vadd.f32 %v8541_v14, %v8128_v1  ;;  %5468 = vmatprep.subr.bf16.mxu1 %v5979_v49 }
 0x691   : > { %v8677_v17 = vadd.f32 %v3686_v59, %v8529_v40  ;;  %v3688_v38 = vpop.f32.mrb[106].mxu1  ;;  %v4311_v31 = vpack.c.bf16 %v4251_v10, %v4249_v7  ;;  %v3859_v29 = vmul.f32 %v3827_v24, %v3731_v11  ;;  %v3733_v19 = vmul.f32 0.5, %v8607_v58  ;;  %v5982_v7 = vld [vmem:[%s9023_s3 + $0x5a0] ss:$8 sps:$4 sm:$0xff]  }
 0x692   : > { %v6334_v5 = vpop.eup %6333  ;;  %v3860_v50 = vmul.f32 %v3828_v20, %v3732_v25  ;;  %v3771_v43 = vmul.f32 0.70710677, %v8663_v2  ;;  %v8684_v56 = vadd.f32 %v3688_v38, %v8525_v4  ;;  %v3690_v1 = vpop.f32.mrb[107].mxu1  ;;  %4535 = vmatprep.mubr.bf16.mxu1 %v4312_v54  ;;  %v3734_v15 = vmul.f32 0.5, %v8610_v36  ;;  %v5983_v36 = vld [vmem:[%s9023_s3 + $0x630] ss:$8 sps:$4 sm:$0xff]  }
 0x693   : > { %v6336_v57 = vpop.eup %6335  ;;  %v3829_v28 = vadd.f32 1.0, %v6334_v5  ;;  %v3772_v49 = vmul.f32 0.70710677, %v8677_v17  ;;  %v8689_v44 = vadd.f32 %v3690_v1, %v8529_v40  ;;  %5469 = vmatpush3.bf16.msra.mxu1 %v5980_v30  ;;  %v8698_v58 = vadd.f32 %v8537_v21, %v8130_v63 }
 0x694   : > { %v3830_v11 = vadd.f32 1.0, %v6336_v57  ;;  %6345 = verf.f32 %v3771_v43  ;;  %v3773_v18 = vmul.f32 0.70710677, %v8684_v56  ;;  %5470 = vmatprep.subr.bf16.mxu1 %v5981_v35  ;;  %v4254_v10 = vadd.f32 %v8586_v41, %v3860_v50 }
 0x695   : > { %v3861_v0 = vmul.f32 %v3829_v28, %v3733_v19  ;;  %6347 = verf.f32 %v3772_v49  ;;  %v3774_v24 = vmul.f32 0.70710677, %v8689_v44  ;;  %v4253_v20 = vadd.f32 %v8582_v23, %v3859_v29  ;;  %v5984_v23 = vld [vmem:[%s9023_s3 + $0x5b0] ss:$8 sps:$4 sm:$0xff]  }
 0x696   : > { %v6338_v25 = vpop.eup %6337  ;;  %v3862_v39 = vmul.f32 %v3830_v11, %v3734_v15  ;;  %6349 = verf.f32 %v3773_v18  ;;  %v3735_v63 = vmul.f32 0.5, %v8626_v53  ;;  %4536 = vmatmul.mubr.bf16.gmra.mrb[124].mxu1 %v4311_v31  ;;  %v3736_v35 = vmul.f32 0.5, %v8630_v45 }
 0x697   : > { %v6340_v59 = vpop.eup %6339  ;;  %v3831_v54 = vadd.f32 1.0, %v6338_v25  ;;  %6351 = verf.f32 %v3774_v24  ;;  %v3694_v30 = vpop.f32.mrb[108].mxu1  ;;  %v4255_v38 = vadd.f32 %v8590_v9, %v3861_v0  ;;  %5471 = vmatpush3.bf16.msra.mxu1 %v5982_v7  ;;  %v8718_v31 = vadd.f32 %v8541_v14, %v8132_v32  ;;  %v5986_v25 = vld [vmem:[%s9023_s3 + $0x5c0] ss:$8 sps:$4 sm:$0xff]  }
 0x698   : > { %v3832_v5 = vadd.f32 1.0, %v6340_v59  ;;  %v8710_v43 = vadd.f32 %v3694_v30, %v8525_v4  ;;  %v3696_v1 = vpop.f32.mrb[109].mxu1  ;;  %v4256_v41 = vadd.f32 %v8601_v51, %v3862_v39  ;;  %v6342_v53 = vpop.eup %6341  ;;  %v3737_v9 = vmul.f32 0.5, %v8639_v3  ;;  %5472 = vmatprep.subr.bf16.mxu1 %v5983_v36  ;;  %v5985_v51 = vld [vmem:[%s9023_s3 + $0x640] ss:$8 sps:$4 sm:$0xff]  }
 0x699   : > { %v8722_v45 = vadd.f32 %v3696_v1, %v8529_v40  ;;  %v3698_v29 = vpop.f32.mrb[110].mxu1  ;;  %v4313_v50 = vpack.c.bf16 %v4255_v38, %v4253_v20  ;;  %v6344_v57 = vpop.eup %6343  ;;  %v3863_v19 = vmul.f32 %v3831_v54, %v3735_v63  ;;  %v3833_v49 = vadd.f32 1.0, %v6342_v53 }
 0x69a   : > { %v3864_v28 = vmul.f32 %v3832_v5, %v3736_v35  ;;  %v3775_v15 = vmul.f32 0.70710677, %v8710_v43  ;;  %v3700_v32 = vpop.f32.mrb[111].mxu1  ;;  %v3738_v11 = vmul.f32 0.5, %v8642_v6  ;;  %v3834_v3 = vadd.f32 1.0, %v6344_v57 }
 0x69b   : > { %v3776_v18 = vmul.f32 0.70710677, %v8722_v45  ;;  %v8731_v7 = vadd.f32 %v3698_v29, %v8525_v4  ;;  %v3865_v0 = vmul.f32 %v3833_v49, %v3737_v9  ;;  %v8734_v24 = vadd.f32 %v3700_v32, %v8529_v40  ;;  %5473 = vmatpush3.bf16.msra.mxu1 %v5984_v23 }
 0x69c   : > { %6353 = verf.f32 %v3775_v15  ;;  %v4314_v36 = vpack.c.bf16 %v4256_v41, %v4254_v10  ;;  %v3866_v39 = vmul.f32 %v3834_v3, %v3738_v11  ;;  %v3739_v6 = vmul.f32 0.5, %v8663_v2  ;;  %5474 = vmatprep.subr.bf16.mxu1 %v5985_v51 }
 0x69d   : > { %6355 = verf.f32 %v3776_v18  ;;  %v3777_v20 = vmul.f32 0.70710677, %v8731_v7  ;;  %v3740_v63 = vmul.f32 0.5, %v8677_v17  ;;  %v3778_v54 = vmul.f32 0.70710677, %v8734_v24 }
 0x69e   : > { %v6346_v59 = vpop.eup %6345  ;;  %4545 = vmatprep.mubr.bf16.mxu1 %v4314_v36  ;;  %v4258_v10 = vadd.f32 %v8618_v55, %v3864_v28  ;;  %v4257_v30 = vadd.f32 %v8614_v37, %v3863_v19  ;;  %v4260_v2 = vadd.f32 %v8649_v47, %v3866_v39  ;;  %v4259_v1 = vadd.f32 %v8635_v60, %v3865_v0 }
 0x69f   : > { %v6348_v38 = vpop.eup %6347  ;;  %v3835_v35 = vadd.f32 1.0, %v6346_v59  ;;  %6357 = verf.f32 %v3777_v20  ;;  %4546 = vmatmul.mubr.bf16.gmra.mrb[128].mxu1 %v4313_v50  ;;  %v3704_v5 = vpop.f32.mrb[112].mxu1  ;;  %v3741_v17 = vmul.f32 0.5, %v8684_v56  ;;  %v3742_v29 = vmul.f32 0.5, %v8689_v44 }
 0x6a0   : > { %v6350_v41 = vpop.eup %6349  ;;  %v3836_v23 = vadd.f32 1.0, %v6348_v38  ;;  %6359 = verf.f32 %v3778_v54  ;;  %v8749_v53 = vadd.f32 %v3704_v5, %v8525_v4  ;;  %v3706_v55 = vpop.f32.mrb[113].mxu1  ;;  %5475 = vmatpush3.bf16.msra.mxu1 %v5986_v25  ;;  %v4316_v51 = vpack.c.bf16 %v4260_v2, %v4258_v10 }
 0x6a1   : > { %v6352_v37 = vpop.eup %6351  ;;  %v3837_v9 = vadd.f32 1.0, %v6350_v41  ;;  %v8753_v50 = vadd.f32 %v3706_v55, %v8529_v40  ;;  %v3708_v47 = vpop.f32.mrb[114].mxu1  ;;  %v3867_v60 = vmul.f32 %v3835_v35, %v3739_v6  ;;  %v4233_v49 = vadd.f32 %v8537_v21, %v8134_v42 }
 0x6a2   : > { %v3868_v57 = vmul.f32 %v3836_v23, %v3740_v63  ;;  %v3838_v19 = vadd.f32 1.0, %v6352_v37  ;;  %v3779_v56 = vmul.f32 0.70710677, %v8749_v53  ;;  %v3710_v28 = vpop.f32.mrb[115].mxu1  ;;  %v8760_v11 = vadd.f32 %v3708_v47, %v8525_v4  ;;  %4555 = vmatprep.mubr.bf16.mxu1 %v4316_v51 }
 0x6a3   : > { %v3869_v15 = vmul.f32 %v3837_v9, %v3741_v17  ;;  %v3780_v32 = vmul.f32 0.70710677, %v8753_v50  ;;  %v8763_v3 = vadd.f32 %v3710_v28, %v8529_v40  ;;  %v4315_v18 = vpack.c.bf16 %v4259_v1, %v4257_v30 }
 0x6a4   : > { %v3870_v44 = vmul.f32 %v3838_v19, %v3742_v29  ;;  %6361 = verf.f32 %v3779_v56  ;;  %v4234_v0 = vadd.f32 %v8541_v14, %v8136_v34  ;;  %v3781_v36 = vmul.f32 0.70710677, %v8760_v11 }
 0x6a5   : > { %6363 = verf.f32 %v3780_v32  ;;  %v4262_v42 = vadd.f32 %v8674_v48, %v3868_v57  ;;  %v3743_v39 = vmul.f32 0.5, %v8710_v43  ;;  %v3782_v6 = vmul.f32 0.70710677, %v8763_v3 }
 0x6a6   : > { %v6354_v25 = vpop.eup %6353  ;;  %v4264_v20 = vadd.f32 %v8718_v31, %v3870_v44  ;;  %v4261_v59 = vadd.f32 %v8670_v13, %v3867_v60  ;;  %v3744_v10 = vmul.f32 0.5, %v8722_v45  ;;  %6365 = verf.f32 %v3781_v36 }
 0x6a7   : > { %v6356_v63 = vpop.eup %6355  ;;  %v3839_v54 = vadd.f32 1.0, %v6354_v25  ;;  %4556 = vmatmul.mubr.bf16.gmra.mrb[132].mxu1 %v4315_v18  ;;  %v3714_v34 = vpop.f32.mrb[116].mxu1  ;;  %v4263_v30 = vadd.f32 %v8698_v58, %v3869_v15  ;;  %6367 = verf.f32 %v3782_v6  ;;  %v4235_v31 = vadd.f32 %v8537_v21, %v8138_v22 }
 0x6a8   : > { %v3840_v38 = vadd.f32 1.0, %v6356_v63  ;;  %v3715_v48 = vadd.f32 %v3714_v34, %v8525_v4  ;;  %v3716_v43 = vpop.f32.mrb[117].mxu1  ;;  %v4318_v35 = vpack.c.bf16 %v4264_v20, %v4262_v42  ;;  %v3745_v13 = vmul.f32 0.5, %v8731_v7 }
 0x6a9   : > { %v6358_v5 = vpop.eup %6357  ;;  %v3717_v2 = vadd.f32 %v3716_v43, %v8529_v40  ;;  %v3718_v45 = vpop.f32.mrb[118].mxu1  ;;  %v4317_v1 = vpack.c.bf16 %v4263_v30, %v4261_v59  ;;  %v3871_v23 = vmul.f32 %v3839_v54, %v3743_v39  ;;  %v3746_v9 = vmul.f32 0.5, %v8734_v24 }
 0x6aa   : > { %v6360_v41 = vpop.eup %6359  ;;  %v3872_v17 = vmul.f32 %v3840_v38, %v3744_v10  ;;  %v3841_v58 = vadd.f32 1.0, %v6358_v5  ;;  %v3783_v55 = vmul.f32 0.70710677, %v3715_v48  ;;  %v3720_v37 = vpop.f32.mrb[119].mxu1  ;;  %4565 = vmatprep.mubr.bf16.mxu1 %v4318_v35  ;;  %v3719_v51 = vadd.f32 %v3718_v45, %v8525_v4  ;;  %v9191_v38 = vld [vmem:[#allocation36_spill] sm:$0xff] }
 0x6ab   : > { %v3842_v29 = vadd.f32 1.0, %v6360_v41  ;;  %v3784_v47 = vmul.f32 0.70710677, %v3717_v2  ;;  %v3721_v7 = vadd.f32 %v3720_v37, %v8529_v40  ;;  %v4236_v57 = vadd.f32 %v8541_v14, %v8140_v46 }
 0x6ac   : > { %v3873_v22 = vmul.f32 %v3841_v58, %v3745_v13  ;;  %6369 = verf.f32 %v3783_v55  ;;  %v4266_v60 = vadd.f32 %v4234_v0, %v3872_v17  ;;  %v3785_v56 = vmul.f32 0.70710677, %v3719_v51  ;;  %v9192_v17 = vld [vmem:[#allocation37_spill] sm:$0xff] }
 0x6ad   : > { %v3874_v19 = vmul.f32 %v3842_v29, %v3746_v9  ;;  %6371 = verf.f32 %v3784_v47  ;;  %v3786_v15 = vmul.f32 0.70710677, %v3721_v7  ;;  %v4265_v32 = vadd.f32 %v4233_v49, %v3871_v23  ;;  %v9193_v9 = vld [vmem:[#allocation38_spill] sm:$0xff] }
 0x6ae   : > { %v6362_v28 = vpop.eup %6361  ;;  %v4267_v44 = vadd.f32 %v4235_v31, %v3873_v22  ;;  %v3747_v18 = vmul.f32 0.5, %v8749_v53  ;;  %6373 = verf.f32 %v3785_v56  ;;  %v3748_v40 = vmul.f32 0.5, %v8753_v50 }
 0x6af   : > { %v6364_v24 = vpop.eup %6363  ;;  %v3843_v36 = vadd.f32 1.0, %v6362_v28  ;;  %4566 = vmatmul.mubr.bf16.gmra.mrb[136].mxu1 %v4317_v1  ;;  %v4268_v4 = vadd.f32 %v4236_v57, %v3874_v19  ;;  %6375 = verf.f32 %v3786_v15  ;;  %v4237_v25 = vadd.f32 %v8537_v21, %v8142_v27 }
 0x6b0   : > { %v3844_v0 = vadd.f32 1.0, %v6364_v24  ;;  %v4319_v42 = vpack.c.bf16 %v4267_v44, %v4265_v32  ;;  %v6366_v46 = vpop.eup %6365  ;;  %v4238_v20 = vadd.f32 %v8541_v14, %v8144_v62  ;;  %v3749_v59 = vmul.f32 0.5, %v8760_v11  ;;  %v9195_v32 = vld [vmem:[#allocation40_spill] sm:$0xff] }
 0x6b1   : > { %v3875_v39 = vmul.f32 %v3843_v36, %v3747_v18  ;;  %v4320_v6 = vpack.c.bf16 %v4268_v4, %v4266_v60  ;;  %v6368_v49 = vpop.eup %6367  ;;  %v3845_v63 = vadd.f32 1.0, %v6366_v46  ;;  %v3750_v54 = vmul.f32 0.5, %v8763_v3  ;;  %v8826_v46 = vld [vmem:[%s9025_s5 + $0x10] sm:$0xff] }
 0x6b2   : > { %v3876_v53 = vmul.f32 %v3844_v0, %v3748_v40  ;;  %v3846_v50 = vadd.f32 1.0, %v6368_v49  ;;  %v4239_v34 = vadd.f32 %v8537_v21, %v8146_v33  ;;  %v4240_v43 = vadd.f32 %v8541_v14, %v9191_v38  ;;  %v5991_v0 = vld [vmem:[%s9023_s3 + $0x670] ss:$8 sps:$4 sm:$0xff]  }
 0x6b3   : > { %4575 = vmatprep.mubr.bf16.mxu1 %v4320_v6  ;;  %v4269_v10 = vadd.f32 %v4237_v25, %v3875_v39  ;;  %v3877_v30 = vmul.f32 %v3845_v63, %v3749_v59  ;;  %v3751_v13 = vmul.f32 0.5, %v3715_v48  ;;  %v3752_v3 = vmul.f32 0.5, %v3717_v2  ;;  %v9194_v2 = vld [vmem:[#allocation39_spill] sm:$0xff]  ;;  %v9196_v25 = vld [vmem:[#allocation5_spill] sm:$0xff] }
 0x6b4   : > { %v4270_v27 = vadd.f32 %v4238_v20, %v3876_v53  ;;  %v3878_v35 = vmul.f32 %v3846_v50, %v3750_v54  ;;  %v4241_v33 = vadd.f32 %v8537_v21, %v9192_v17  ;;  %v4242_v29 = vadd.f32 %v8541_v14, %v9193_v9  ;;  %v6445_v6 = vld [vmem:[%s9025_s5 + $0x18] sm:$0xff] }
 0x6b5   : > { %v4271_v62 = vadd.f32 %v4239_v34, %v3877_v30  ;;  %v3753_v22 = vmul.f32 0.5, %v3719_v51  ;;  %v3754_v48 = vmul.f32 0.5, %v3721_v7  ;;  %v4243_v56 = vadd.f32 %v8537_v21, %v9194_v2  ;;  %v5987_v51 = vld [vmem:[%s9023_s3 + $0x650] ss:$8 sps:$4 sm:$0xff]   ;;  %v5990_v7 = vld [vmem:[%s9023_s3 + $0x5e0] ss:$8 sps:$4 sm:$0xff]  }
 0x6b6   : > { %v6370_v5 = vpop.eup %6369  ;;  %v4272_v45 = vadd.f32 %v4240_v43, %v3878_v35  ;;  %v4244_v44 = vadd.f32 %v8541_v14, %v9195_v32  ;;  %v5988_v21 = vld [vmem:[%s9023_s3 + $0x5d0] ss:$8 sps:$4 sm:$0xff]   ;;  %5476 = vmatprep.subr.bf16.mxu1 %v5987_v51  ;;  %v5989_v14 = vld [vmem:[%s9023_s3 + $0x660] ss:$8 sps:$4 sm:$0xff]   ;;  %v8830_v39 = vrot.slane %v8826_v46, %v9196_v25  ;;  %v8836_v49 = vrot.slane %v6445_v6, %v9196_v25 }
 0x6b7   : > { %v6372_v31 = vpop.eup %6371  ;;  %v3847_v11 = vadd.f32 1.0, %v6370_v5  ;;  %4576 = vmatmul.mubr.bf16.gmra.mrb[140].mxu1 %v4319_v42  ;;  %v4321_v41 = vpack.c.bf16 %v4271_v62, %v4269_v10  ;;  %v5992_v42 = vld [vmem:[%s9023_s3 + $0x5f0] ss:$8 sps:$4 sm:$0xff]  }
 0x6b8   : > { %v3848_v1 = vadd.f32 1.0, %v6372_v31  ;;  %v6374_v23 = vpop.eup %6373  ;;  %v4322_v55 = vpack.c.bf16 %v4272_v45, %v4270_v27  ;;  %5477 = vmatpush3.bf16.msra.mxu1 %v5988_v21 }
 0x6b9   : > { %v3879_v58 = vmul.f32 %v3847_v11, %v3751_v13  ;;  %v6376_v37 = vpop.eup %6375  ;;  %v3849_v60 = vadd.f32 1.0, %v6374_v23  ;;  %5478 = vmatprep.subr.bf16.mxu1 %v5989_v14  ;;  %v9197_v14 = vld [vmem:[#allocation7_spill] sm:$0xff] }
 0x6ba   : > { %v3880_v47 = vmul.f32 %v3848_v1, %v3752_v3  ;;  %v3850_v57 = vadd.f32 1.0, %v6376_v37  ;;  %4585 = vmatprep.mubr.bf16.mxu1 %v4322_v55 }
 0x6bb   : > { %v4273_v19 = vadd.f32 %v4241_v33, %v3879_v58  ;;  %v3881_v28 = vmul.f32 %v3849_v60, %v3753_v22 }
 0x6bc   : > { %v4274_v15 = vadd.f32 %v4242_v29, %v3880_v47  ;;  %v3882_v24 = vmul.f32 %v3850_v57, %v3754_v48  ;;  %5479 = vmatpush3.bf16.msra.mxu1 %v5990_v7 }
 0x6bd   : > { %v4275_v18 = vadd.f32 %v4243_v56, %v3881_v28  ;;  %5480 = vmatprep.subr.bf16.mxu1 %v5991_v0  ;;  %v9198_v0 = vld [vmem:[#allocation41_spill] sm:$0xff] }
 0x6be   : > { %v4276_v36 = vadd.f32 %v4244_v44, %v3882_v24 }
 0x6bf   : > { %4586 = vmatmul.mubr.bf16.gmra.mrb[144].mxu1 %v4321_v41  ;;  %v4323_v4 = vpack.c.bf16 %v4275_v18, %v4273_v19 }
 0x6c0   : > { %v4324_v40 = vpack.c.bf16 %v4276_v36, %v4274_v15  ;;  %5481 = vmatpush3.bf16.msra.mxu1 %v5992_v42 }
 0x6c2   : > { %4595 = vmatprep.mubr.bf16.mxu1 %v4324_v40 }
 0x6c7   : > { %4596 = vmatmul.mubr.bf16.gmra.mrb[148].mxu1 %v4323_v4 }
 0x761   : > { %v4527_v20 = vpop.f32.mrb[120].mxu1 }
 0x762   : > { %v4528_v53 = vadd.f32 %v4527_v20, %v8830_v39  ;;  %v4529_v59 = vpop.f32.mrb[121].mxu1 }
 0x763   : > { %v4530_v63 = vadd.f32 %v4529_v59, %v8836_v49  ;;  %v4531_v54 = vpop.f32.mrb[122].mxu1 }
 0x764   : > { %v4638_v50 = vmul.f32 0.70710677, %v4528_v53  ;;  %v4532_v10 = vadd.f32 %v4531_v54, %v8830_v39  ;;  %v4533_v34 = vpop.f32.mrb[123].mxu1  ;;  %v4606_v55 = vmul.f32 0.5, %v4528_v53 }
 0x765   : > { %v4639_v30 = vmul.f32 0.70710677, %v4530_v63  ;;  %v4534_v27 = vadd.f32 %v4533_v34, %v8836_v49  ;;  %v4607_v18 = vmul.f32 0.5, %v4530_v63 }
 0x766   : > { %6377 = verf.f32 %v4638_v50  ;;  %v4640_v38 = vmul.f32 0.70710677, %v4532_v10  ;;  %v4608_v57 = vmul.f32 0.5, %v4532_v10 }
 0x767   : > { %6379 = verf.f32 %v4639_v30  ;;  %v4641_v43 = vmul.f32 0.70710677, %v4534_v27  ;;  %v4609_v15 = vmul.f32 0.5, %v4534_v27 }
 0x768   : > { %6381 = verf.f32 %v4640_v38 }
 0x769   : > { %6383 = verf.f32 %v4641_v43  ;;  %v4537_v35 = vpop.f32.mrb[124].mxu1 }
 0x76a   : > { %v4538_v5 = vadd.f32 %v4537_v35, %v8830_v39  ;;  %v4539_v62 = vpop.f32.mrb[125].mxu1 }
 0x76b   : > { %v4540_v31 = vadd.f32 %v4539_v62, %v8836_v49  ;;  %v4541_v13 = vpop.f32.mrb[126].mxu1  ;;  %v9199_v62 = vld [vmem:[#allocation42_spill] sm:$0xff] }
 0x76c   : > { %v4642_v11 = vmul.f32 0.70710677, %v4538_v5  ;;  %v4542_v45 = vadd.f32 %v4541_v13, %v8830_v39  ;;  %v4543_v3 = vpop.f32.mrb[127].mxu1  ;;  %v4610_v20 = vmul.f32 0.5, %v4538_v5 }
 0x76d   : > { %v4643_v1 = vmul.f32 0.70710677, %v4540_v31  ;;  %v4544_v41 = vadd.f32 %v4543_v3, %v8836_v49  ;;  %v4611_v10 = vmul.f32 0.5, %v4540_v31 }
 0x76e   : > { %6385 = verf.f32 %v4642_v11  ;;  %v4644_v23 = vmul.f32 0.70710677, %v4542_v45  ;;  %v4612_v34 = vmul.f32 0.5, %v4542_v45 }
 0x76f   : > { %6387 = verf.f32 %v4643_v1  ;;  %v4645_v17 = vmul.f32 0.70710677, %v4544_v41  ;;  %v4613_v3 = vmul.f32 0.5, %v4544_v41 }
 0x770   : > { %v6378_v33 = vpop.eup %6377  ;;  %6389 = verf.f32 %v4644_v23 }
 0x771   : > { %v6380_v58 = vpop.eup %6379  ;;  %v4702_v37 = vadd.f32 1.0, %v6378_v33  ;;  %6391 = verf.f32 %v4645_v17 }
 0x772   : > { %v4547_v9 = vpop.f32.mrb[128].mxu1  ;;  %v6382_v29 = vpop.eup %6381  ;;  %v4703_v28 = vadd.f32 1.0, %v6380_v58  ;;  %v9200_v58 = vld [vmem:[#allocation6_spill] sm:$0xff] }
 0x773   : > { %v8847_v47 = vadd.f32 %v4547_v9, %v8830_v39  ;;  %v4549_v22 = vpop.f32.mrb[129].mxu1  ;;  %v6384_v60 = vpop.eup %6383  ;;  %v4734_v48 = vmul.f32 %v4702_v37, %v4606_v55  ;;  %v4704_v19 = vadd.f32 1.0, %v6382_v29 }
 0x774   : > { %v8850_v2 = vadd.f32 %v4549_v22, %v8836_v49  ;;  %v4551_v56 = vpop.f32.mrb[130].mxu1  ;;  %v4705_v32 = vadd.f32 1.0, %v6384_v60  ;;  %v4735_v6 = vmul.f32 %v4703_v28, %v4607_v18  ;;  %v9201_v28 = vld [vmem:[#allocation9_spill] sm:$0xff] }
 0x775   : > { %v4646_v44 = vmul.f32 0.70710677, %v8847_v47  ;;  %v4553_v24 = vpop.f32.mrb[131].mxu1  ;;  %v4736_v36 = vmul.f32 %v4704_v19, %v4608_v57  ;;  %v8855_v51 = vadd.f32 %v4551_v56, %v8830_v39  ;;  %v4766_v7 = vadd.f32 %v4734_v48, %v9197_v14  ;;  %v9204_v14 = vld [vmem:[#allocation10_spill] sm:$0xff] }
 0x776   : > { %v4647_v4 = vmul.f32 0.70710677, %v8850_v2  ;;  %v4737_v40 = vmul.f32 %v4705_v32, %v4609_v15  ;;  %v8858_v21 = vadd.f32 %v4553_v24, %v8836_v49  ;;  %v4767_v55 = vadd.f32 %v4735_v6, %v9200_v58  ;;  %v9202_v32 = vld [vmem:[#allocation11_spill] sm:$0xff] }
 0x777   : > { %6393 = verf.f32 %v4646_v44  ;;  %v4768_v42 = vadd.f32 %v4736_v36, %v9198_v0  ;;  %v4648_v53 = vmul.f32 0.70710677, %v8855_v51  ;;  %v4614_v6 = vmul.f32 0.5, %v8847_v47 }
 0x778   : > { %6395 = verf.f32 %v4647_v4  ;;  %v6386_v25 = vpop.eup %6385  ;;  %v4649_v59 = vmul.f32 0.70710677, %v8858_v21  ;;  %v4769_v13 = vadd.f32 %v4737_v40, %v9199_v62  ;;  %v9203_v4 = vld [vmem:[#allocation8_spill] sm:$0xff] }
 0x779   : > { %v6388_v63 = vpop.eup %6387  ;;  %v4830_v54 = vpack.c.bf16 %v4768_v42, %v4766_v7  ;;  %v4706_v50 = vadd.f32 1.0, %v6386_v25  ;;  %6397 = verf.f32 %v4648_v53 }
 0x77a   : > { %v4557_v30 = vpop.f32.mrb[132].mxu1  ;;  %v6390_v27 = vpop.eup %6389  ;;  %v4707_v38 = vadd.f32 1.0, %v6388_v63  ;;  %6399 = verf.f32 %v4649_v59  ;;  %v4831_v48 = vpack.c.bf16 %v4769_v13, %v4767_v55  ;;  %v4617_v13 = vmul.f32 0.5, %v8858_v21  ;;  %v9205_v21 = vld [vmem:[#allocation14_spill] sm:$0xff] }
 0x77b   : > { %v8865_v43 = vadd.f32 %v4557_v30, %v8830_v39  ;;  %v4559_v35 = vpop.f32.mrb[133].mxu1  ;;  %v6392_v5 = vpop.eup %6391  ;;  %v4708_v11 = vadd.f32 1.0, %v6390_v27  ;;  %v4738_v37 = vmul.f32 %v4706_v50, %v4610_v20  ;;  %v4615_v20 = vmul.f32 0.5, %v8850_v2 }
 0x77c   : > { %v8869_v1 = vadd.f32 %v4559_v35, %v8836_v49  ;;  %v4561_v23 = vpop.f32.mrb[134].mxu1  ;;  %v4739_v31 = vmul.f32 %v4707_v38, %v4611_v10  ;;  %v4709_v45 = vadd.f32 1.0, %v6392_v5  ;;  %4978 = vmatprep.mubr.bf16.mxu1 %v4831_v48  ;;  %v4616_v10 = vmul.f32 0.5, %v8855_v51 }
 0x77d   : > { %v4650_v17 = vmul.f32 0.70710677, %v8865_v43  ;;  %v4563_v33 = vpop.f32.mrb[135].mxu1  ;;  %v4740_v9 = vmul.f32 %v4708_v11, %v4612_v34  ;;  %v8875_v22 = vadd.f32 %v4561_v23, %v8830_v39  ;;  %4979 = vmatmul.mubr.bf16.vlgmr.msra.gmra.mrb[152].mxu1 %v4830_v54  ;;  %v4770_v40 = vadd.f32 %v4738_v37, %v9203_v4  ;;  %v9207_v4 = vld [vmem:[#allocation13_spill] sm:$0xff] }
 0x77e   : > { %v4651_v29 = vmul.f32 0.70710677, %v8869_v1  ;;  %v4741_v41 = vmul.f32 %v4709_v45, %v4613_v3  ;;  %v4564_v60 = vadd.f32 %v4563_v33, %v8836_v49  ;;  %v4771_v15 = vadd.f32 %v4739_v31, %v9201_v28 }
 0x77f   : > { %6401 = verf.f32 %v4650_v17  ;;  %v4652_v57 = vmul.f32 0.70710677, %v8875_v22  ;;  %v4772_v7 = vadd.f32 %v4740_v9, %v9204_v14  ;;  %v4618_v33 = vmul.f32 0.5, %v8865_v43 }
 0x780   : > { %6403 = verf.f32 %v4651_v29  ;;  %v4653_v56 = vmul.f32 0.70710677, %v4564_v60  ;;  %v4773_v44 = vadd.f32 %v4741_v41, %v9202_v32  ;;  %v4619_v9 = vmul.f32 0.5, %v8869_v1 }
 0x781   : > { %v6394_v19 = vpop.eup %6393  ;;  %6405 = verf.f32 %v4652_v57  ;;  %v4832_v63 = vpack.c.bf16 %v4772_v7, %v4770_v40  ;;  %v9206_v57 = vld [vmem:[#allocation15_spill] sm:$0xff]  ;;  %v4620_v28 = vmul.f32 0.5, %v8875_v22  ;;  %v4621_v43 = vmul.f32 0.5, %v4564_v60 }
 0x782   : > { %v6396_v24 = vpop.eup %6395  ;;  %v4710_v18 = vadd.f32 1.0, %v6394_v19  ;;  %v4567_v36 = vpop.f32.mrb[136].mxu1  ;;  %6407 = verf.f32 %v4653_v56  ;;  %v4833_v25 = vpack.c.bf16 %v4773_v44, %v4771_v15 }
 0x783   : > { %v8884_v0 = vadd.f32 %v4567_v36, %v8830_v39  ;;  %v4569_v42 = vpop.f32.mrb[137].mxu1  ;;  %v6398_v54 = vpop.eup %6397  ;;  %v4711_v50 = vadd.f32 1.0, %v6396_v24 }
 0x784   : > { %v8889_v53 = vadd.f32 %v4569_v42, %v8836_v49  ;;  %v4571_v59 = vpop.f32.mrb[138].mxu1  ;;  %4986 = vmatprep.mubr.bf16.mxu1 %v4833_v25  ;;  %v6400_v38 = vpop.eup %6399  ;;  %v4742_v35 = vmul.f32 %v4710_v18, %v4614_v6  ;;  %v4712_v47 = vadd.f32 1.0, %v6398_v54 }
 0x785   : > { %v4654_v34 = vmul.f32 0.70710677, %v8884_v0  ;;  %v4572_v30 = vadd.f32 %v4571_v59, %v8830_v39  ;;  %v4573_v27 = vpop.f32.mrb[139].mxu1  ;;  %v4713_v5 = vadd.f32 1.0, %v6400_v38  ;;  %v4743_v31 = vmul.f32 %v4711_v50, %v4615_v20  ;;  %4987 = vmatmul.mubr.bf16.gmra.mrb[156].mxu1 %v4832_v63 }
 0x786   : > { %v4655_v2 = vmul.f32 0.70710677, %v8889_v53  ;;  %v8896_v62 = vadd.f32 %v4573_v27, %v8836_v49  ;;  %v4744_v51 = vmul.f32 %v4712_v47, %v4616_v10  ;;  %v4774_v55 = vadd.f32 %v4742_v35, %v8316_v61 }
 0x787   : > { %6409 = verf.f32 %v4654_v34  ;;  %v4656_v11 = vmul.f32 0.70710677, %v4572_v30  ;;  %v4745_v45 = vmul.f32 %v4713_v5, %v4617_v13  ;;  %v4775_v40 = vadd.f32 %v4743_v31, %v9207_v4  ;;  %v9209_v5 = vld [vmem:[#allocation17_spill] sm:$0xff] }
 0x788   : > { %6411 = verf.f32 %v4655_v2  ;;  %v4657_v3 = vmul.f32 0.70710677, %v8896_v62  ;;  %v4776_v37 = vadd.f32 %v4744_v51, %v9205_v21  ;;  %v4622_v59 = vmul.f32 0.5, %v8884_v0  ;;  %v9208_v2 = vld [vmem:[#allocation12_spill] sm:$0xff] }
 0x789   : > { %v6402_v23 = vpop.eup %6401  ;;  %6413 = verf.f32 %v4656_v11  ;;  %v4777_v19 = vadd.f32 %v4745_v45, %v9206_v57  ;;  %v4623_v10 = vmul.f32 0.5, %v8889_v53  ;;  %v4624_v34 = vmul.f32 0.5, %v4572_v30  ;;  %v9210_v30 = vld [vmem:[#allocation19_spill] sm:$0xff] }
 0x78a   : > { %v6404_v17 = vpop.eup %6403  ;;  %6415 = verf.f32 %v4657_v3  ;;  %v4577_v58 = vpop.f32.mrb[140].mxu1  ;;  %v4834_v61 = vpack.c.bf16 %v4776_v37, %v4774_v55  ;;  %v4714_v24 = vadd.f32 1.0, %v6402_v23 }
 0x78b   : > { %v4715_v29 = vadd.f32 1.0, %v6404_v17  ;;  %v8905_v41 = vadd.f32 %v4577_v58, %v8830_v39  ;;  %v4579_v48 = vpop.f32.mrb[141].mxu1  ;;  %v6406_v56 = vpop.eup %6405  ;;  %v4835_v6 = vpack.c.bf16 %v4777_v19, %v4775_v40  ;;  %v4625_v17 = vmul.f32 0.5, %v8896_v62  ;;  %v9213_v40 = vld [vmem:[#allocation21_spill] sm:$0xff] }
 0x78c   : > { %v8910_v15 = vadd.f32 %v4579_v48, %v8836_v49  ;;  %v4581_v32 = vpop.f32.mrb[142].mxu1  ;;  %v6408_v44 = vpop.eup %6407  ;;  %v4716_v18 = vadd.f32 1.0, %v6406_v56  ;;  %v4746_v50 = vmul.f32 %v4714_v24, %v4618_v33  ;;  %v9211_v48 = vld [vmem:[#allocation18_spill] sm:$0xff] }
 0x78d   : > { %v4658_v1 = vmul.f32 0.70710677, %v8905_v41  ;;  %v4583_v36 = vpop.f32.mrb[143].mxu1  ;;  %v4747_v14 = vmul.f32 %v4715_v29, %v4619_v9  ;;  %v4717_v7 = vadd.f32 1.0, %v6408_v44  ;;  %v8916_v22 = vadd.f32 %v4581_v32, %v8830_v39  ;;  %4994 = vmatprep.mubr.bf16.mxu1 %v4835_v6 }
 0x78e   : > { %v4659_v42 = vmul.f32 0.70710677, %v8910_v15  ;;  %v4748_v60 = vmul.f32 %v4716_v18, %v4620_v28  ;;  %v8919_v25 = vadd.f32 %v4583_v36, %v8836_v49  ;;  %4995 = vmatmul.mubr.bf16.gmra.mrb[160].mxu1 %v4834_v61  ;;  %v4778_v57 = vadd.f32 %v4746_v50, %v9211_v48  ;;  %v9212_v36 = vld [vmem:[#allocation16_spill] sm:$0xff] }
 0x78f   : > { %6417 = verf.f32 %v4658_v1  ;;  %v4749_v20 = vmul.f32 %v4717_v7, %v4621_v43  ;;  %v4660_v63 = vmul.f32 0.70710677, %v8916_v22  ;;  %v4779_v13 = vadd.f32 %v4747_v14, %v9208_v2 }
 0x790   : > { %6419 = verf.f32 %v4659_v42  ;;  %v4661_v27 = vmul.f32 0.70710677, %v8919_v25  ;;  %v4780_v23 = vadd.f32 %v4748_v60, %v9210_v30  ;;  %v4626_v18 = vmul.f32 0.5, %v8905_v41 }
 0x791   : > { %v6410_v54 = vpop.eup %6409  ;;  %6421 = verf.f32 %v4660_v63  ;;  %v4781_v0 = vadd.f32 %v4749_v20, %v9209_v5 }
 0x792   : > { %v6412_v38 = vpop.eup %6411  ;;  %v4718_v35 = vadd.f32 1.0, %v6410_v54  ;;  %v4587_v47 = vpop.f32.mrb[144].mxu1  ;;  %6423 = verf.f32 %v4661_v27  ;;  %v4836_v61 = vpack.c.bf16 %v4780_v23, %v4778_v57 }
 0x793   : > { %v6414_v11 = vpop.eup %6413  ;;  %v4719_v51 = vadd.f32 1.0, %v6412_v38  ;;  %v8928_v3 = vadd.f32 %v4587_v47, %v8830_v39  ;;  %v4589_v53 = vpop.f32.mrb[145].mxu1  ;;  %v4837_v55 = vpack.c.bf16 %v4781_v0, %v4779_v13 }
 0x794   : > { %v6416_v31 = vpop.eup %6415  ;;  %v4720_v45 = vadd.f32 1.0, %v6414_v11  ;;  %v8933_v33 = vadd.f32 %v4589_v53, %v8836_v49  ;;  %v4591_v58 = vpop.f32.mrb[146].mxu1  ;;  %v4750_v19 = vmul.f32 %v4718_v35, %v4622_v59 }
 0x795   : > { %v4751_v21 = vmul.f32 %v4719_v51, %v4623_v10  ;;  %v4721_v37 = vadd.f32 1.0, %v6416_v31  ;;  %v4662_v9 = vmul.f32 0.70710677, %v8928_v3  ;;  %v4593_v29 = vpop.f32.mrb[147].mxu1  ;;  %v8939_v43 = vadd.f32 %v4591_v58, %v8830_v39  ;;  %5002 = vmatprep.mubr.bf16.mxu1 %v4837_v55 }
 0x796   : > { %v4752_v56 = vmul.f32 %v4720_v45, %v4624_v34  ;;  %v4663_v28 = vmul.f32 0.70710677, %v8933_v33  ;;  %v8942_v32 = vadd.f32 %v4593_v29, %v8836_v49  ;;  %5003 = vmatmul.mubr.bf16.gmra.mrb[164].mxu1 %v4836_v61  ;;  %v4782_v6 = vadd.f32 %v4750_v19, %v8413_v16 }
 0x797   : > { %v4753_v62 = vmul.f32 %v4721_v37, %v4625_v17  ;;  %6425 = verf.f32 %v4662_v9  ;;  %v4664_v44 = vmul.f32 0.70710677, %v8939_v43  ;;  %v4783_v4 = vadd.f32 %v4751_v21, %v9212_v36  ;;  %v9216_v36 = vld [vmem:[#allocation25_spill] sm:$0xff] }
 0x798   : > { %6427 = verf.f32 %v4663_v28  ;;  %v4665_v1 = vmul.f32 0.70710677, %v8942_v32  ;;  %v4784_v20 = vadd.f32 %v4752_v56, %v8392_v12  ;;  %v4627_v10 = vmul.f32 0.5, %v8910_v15 }
 0x799   : > { %v6418_v24 = vpop.eup %6417  ;;  %v4785_v14 = vadd.f32 %v4753_v62, %v9213_v40  ;;  %6429 = verf.f32 %v4664_v44  ;;  %v4628_v34 = vmul.f32 0.5, %v8916_v22  ;;  %v4629_v12 = vmul.f32 0.5, %v8919_v25 }
 0x79a   : > { %v6420_v7 = vpop.eup %6419  ;;  %v4722_v42 = vadd.f32 1.0, %v6418_v24  ;;  %v4597_v60 = vpop.f32.mrb[148].mxu1  ;;  %6431 = verf.f32 %v4665_v1  ;;  %v4838_v35 = vpack.c.bf16 %v4784_v20, %v4782_v6  ;;  %v4630_v9 = vmul.f32 0.5, %v8928_v3 }
 0x79b   : > { %v4723_v59 = vadd.f32 1.0, %v6420_v7  ;;  %v4598_v63 = vadd.f32 %v4597_v60, %v8830_v39  ;;  %v4599_v41 = vpop.f32.mrb[149].mxu1  ;;  %v4839_v54 = vpack.c.bf16 %v4785_v14, %v4783_v4  ;;  %v6422_v50 = vpop.eup %6421  ;;  %v4631_v57 = vmul.f32 0.5, %v8933_v33  ;;  %v9217_v14 = vld [vmem:[#allocation22_spill] sm:$0xff] }
 0x79c   : > { %v4600_v27 = vadd.f32 %v4599_v41, %v8836_v49  ;;  %v4601_v38 = vpop.f32.mrb[150].mxu1  ;;  %v6424_v47 = vpop.eup %6423  ;;  %v4754_v2 = vmul.f32 %v4722_v42, %v4626_v18  ;;  %v4724_v16 = vadd.f32 1.0, %v6422_v50  ;;  %v4633_v61 = vmul.f32 0.5, %v8942_v32  ;;  %v9215_v18 = vld [vmem:[#allocation27_spill] sm:$0xff]  ;;  %v9218_v42 = vld [vmem:[#allocation20_spill] sm:$0xff] }
 0x79d   : > { %v4666_v13 = vmul.f32 0.70710677, %v4598_v63  ;;  %v4603_v5 = vpop.f32.mrb[151].mxu1  ;;  %5010 = vmatprep.mubr.bf16.mxu1 %v4839_v54  ;;  %v4755_v0 = vmul.f32 %v4723_v59, %v4627_v10  ;;  %v4725_v11 = vadd.f32 1.0, %v6424_v47  ;;  %v4602_v53 = vadd.f32 %v4601_v38, %v8830_v39  ;;  %v9214_v39 = vld [vmem:[#allocation23_spill] sm:$0xff] }
 0x79e   : > { %v4667_v51 = vmul.f32 0.70710677, %v4600_v27  ;;  %v4756_v15 = vmul.f32 %v4724_v16, %v4628_v34  ;;  %v4604_v22 = vadd.f32 %v4603_v5, %v8836_v49  ;;  %v4786_v17 = vadd.f32 %v4754_v2, %v8445_v52  ;;  %5011 = vmatmul.mubr.bf16.gmra.mrb[168].mxu1 %v4838_v35  ;;  %v9220_v5 = vld [vmem:[#allocation29_spill] sm:$0xff] }
 0x79f   : > { %6433 = verf.f32 %v4666_v13  ;;  %v4757_v30 = vmul.f32 %v4725_v11, %v4629_v12  ;;  %v4668_v23 = vmul.f32 0.70710677, %v4602_v53  ;;  %v4787_v21 = vadd.f32 %v4755_v0, %v8428_v26  ;;  %v9219_v12 = vld [vmem:[#allocation31_spill] sm:$0xff]  ;;  %v9221_v0 = vld [vmem:[#allocation26_spill] sm:$0xff] }
 0x7a0   : > { %6435 = verf.f32 %v4667_v51  ;;  %v4669_v45 = vmul.f32 0.70710677, %v4604_v22  ;;  %v4788_v25 = vadd.f32 %v4756_v15, %v8440_v8  ;;  %v4632_v8 = vmul.f32 0.5, %v8939_v43 }
 0x7a1   : > { %v6426_v31 = vpop.eup %6425  ;;  %6437 = verf.f32 %v4668_v23  ;;  %v4789_v37 = vadd.f32 %v4757_v30, %v9214_v39  ;;  %v4634_v60 = vmul.f32 0.5, %v4598_v63  ;;  %v4635_v59 = vmul.f32 0.5, %v4600_v27  ;;  %v9222_v27 = vld [vmem:[#allocation24_spill] sm:$0xff] }
 0x7a2   : > { %v6428_v58 = vpop.eup %6427  ;;  %v4726_v55 = vadd.f32 1.0, %v6426_v31  ;;  %6439 = verf.f32 %v4669_v45  ;;  %v4840_v29 = vpack.c.bf16 %v4788_v25, %v4786_v17  ;;  %v4636_v10 = vmul.f32 0.5, %v4602_v53 }
 0x7a3   : > { %v4727_v49 = vadd.f32 1.0, %v6428_v58  ;;  %v6430_v48 = vpop.eup %6429  ;;  %v4841_v19 = vpack.c.bf16 %v4789_v37, %v4787_v21  ;;  %v4637_v35 = vmul.f32 0.5, %v4604_v22  ;;  %v9223_v22 = vld [vmem:[#allocation2_spill] sm:$0xff] }
 0x7a4   : > { %v6432_v52 = vpop.eup %6431  ;;  %v4758_v56 = vmul.f32 %v4726_v55, %v4630_v9  ;;  %v4728_v28 = vadd.f32 1.0, %v6430_v48  ;;  %v9224_v23 = vsub.s32 7, %v9223_v22 }
 0x7a5   : > { %v4759_v62 = vmul.f32 %v4727_v49, %v4631_v57  ;;  %v4729_v26 = vadd.f32 1.0, %v6432_v52  ;;  %5018 = vmatprep.mubr.bf16.mxu1 %v4841_v19 }
 0x7a6   : > { %v4760_v44 = vmul.f32 %v4728_v28, %v4632_v8  ;;  %v4790_v1 = vadd.f32 %v4758_v56, %v9215_v18  ;;  %5019 = vmatmul.mubr.bf16.gmra.mrb[172].mxu1 %v4840_v29  ;;  %v8977_v31 = vrot.slane %v8826_v46, %v9224_v23 }
 0x7a7   : > { %v4761_v24 = vmul.f32 %v4729_v26, %v4633_v61  ;;  %v4791_v7 = vadd.f32 %v4759_v62, %v9217_v14 }
 0x7a8   : > { %v4792_v4 = vadd.f32 %v4760_v44, %v9216_v36 }
 0x7a9   : > { %v6434_v3 = vpop.eup %6433  ;;  %v4793_v43 = vadd.f32 %v4761_v24, %v9218_v42 }
 0x7aa   : > { %v6436_v40 = vpop.eup %6435  ;;  %v4730_v33 = vadd.f32 1.0, %v6434_v3  ;;  %v4842_v20 = vpack.c.bf16 %v4792_v4, %v4790_v1 }
 0x7ab   : > { %v4731_v6 = vadd.f32 1.0, %v6436_v40  ;;  %v6438_v32 = vpop.eup %6437  ;;  %v4843_v41 = vpack.c.bf16 %v4793_v43, %v4791_v7 }
 0x7ac   : > { %v6440_v54 = vpop.eup %6439  ;;  %v4762_v50 = vmul.f32 %v4730_v33, %v4634_v60  ;;  %v4732_v34 = vadd.f32 1.0, %v6438_v32 }
 0x7ad   : > { %v4763_v38 = vmul.f32 %v4731_v6, %v4635_v59  ;;  %v4733_v47 = vadd.f32 1.0, %v6440_v54  ;;  %5026 = vmatprep.mubr.bf16.mxu1 %v4843_v41 }
 0x7ae   : > { %v4764_v2 = vmul.f32 %v4732_v34, %v4636_v10  ;;  %v4794_v13 = vadd.f32 %v4762_v50, %v9219_v12  ;;  %5027 = vmatmul.mubr.bf16.gmra.mrb[176].mxu1 %v4842_v20 }
 0x7af   : > { %v4765_v16 = vmul.f32 %v4733_v47, %v4637_v35  ;;  %v4795_v11 = vadd.f32 %v4763_v38, %v9221_v0 }
 0x7b0   : > { %v4796_v63 = vadd.f32 %v4764_v2, %v9220_v5 }
 0x7b1   : > { %v4797_v51 = vadd.f32 %v4765_v16, %v9222_v27 }
 0x7b2   : > { %v4844_v15 = vpack.c.bf16 %v4796_v63, %v4794_v13 }
 0x7b3   : > { %v4845_v30 = vpack.c.bf16 %v4797_v51, %v4795_v11 }
 0x7b5   : > { %5034 = vmatprep.mubr.bf16.mxu1 %v4845_v30 }
 0x7b6   : > { %5035 = vmatmul.mubr.bf16.gmra.mrb[180].mxu1 %v4844_v15 }
 0x850   : > { %v5482_v53 = vpop.f32.mrb[152].mxu1 }
 0x851   : > { %v5483_v45 = vpop.f32.mrb[153].mxu1 }
 0x852   : > { %v5484_v17 = vadd.f32 %v5483_v45, %v5482_v53  ;;  %v5485_v25 = vpop.f32.mrb[154].mxu1 }
 0x853   : > { %v5486_v58 = vpop.f32.mrb[155].mxu1 }
 0x854   : > { %v4981_v55 = vadd.f32 %v5484_v17, %v8977_v31  ;;  %v5487_v21 = vadd.f32 %v5486_v58, %v5485_v25 }
 0x856   : > { %5043 = vst [vmem:[%s8983_s18] sm:$0xff] %v4981_v55  ;;  %v4984_v46 = vadd.f32 %v5487_v21, %v8977_v31 }
 0x858   : > { %5044 = vst [vmem:[%s8983_s18 + $0x8] sm:$0xff] %v4984_v46  ;;  %v5488_v39 = vpop.f32.mrb[156].mxu1 }
 0x859   : > { %v5489_v37 = vpop.f32.mrb[157].mxu1 }
 0x85a   : > { %v5490_v9 = vadd.f32 %v5489_v37, %v5488_v39  ;;  %v5491_v49 = vpop.f32.mrb[158].mxu1 }
 0x85b   : > { %v5492_v29 = vpop.f32.mrb[159].mxu1 }
 0x85c   : > { %v4989_v48 = vadd.f32 %v5490_v9, %v8977_v31  ;;  %v5493_v57 = vadd.f32 %v5492_v29, %v5491_v49 }
 0x85e   : > { %5045 = vst [vmem:[%s8983_s18 + $0x10] sm:$0xff] %v4989_v48  ;;  %v4992_v19 = vadd.f32 %v5493_v57, %v8977_v31 }
 0x860   : > { %5046 = vst [vmem:[%s8983_s18 + $0x18] sm:$0xff] %v4992_v19 }
 0x861   : > { %v5494_v52 = vpop.f32.mrb[160].mxu1 }
 0x862   : > { %v5495_v56 = vpop.f32.mrb[161].mxu1 }
 0x863   : > { %v5496_v8 = vadd.f32 %v5495_v56, %v5494_v52  ;;  %v5497_v28 = vpop.f32.mrb[162].mxu1 }
 0x864   : > { %v5498_v62 = vpop.f32.mrb[163].mxu1 }
 0x865   : > { %v4997_v61 = vadd.f32 %v5496_v8, %v8977_v31  ;;  %v5499_v26 = vadd.f32 %v5498_v62, %v5497_v28 }
 0x867   : > { %5047 = vst [vmem:[%s8983_s18 + $0x20] sm:$0xff] %v4997_v61  ;;  %v5000_v44 = vadd.f32 %v5499_v26, %v8977_v31 }
 0x869   : > { %5048 = vst [vmem:[%s8983_s18 + $0x28] sm:$0xff] %v5000_v44  ;;  %v5500_v24 = vpop.f32.mrb[164].mxu1 }
 0x86a   : > { %v5501_v3 = vpop.f32.mrb[165].mxu1 }
 0x86b   : > { %v5502_v18 = vadd.f32 %v5501_v3, %v5500_v24  ;;  %v5503_v1 = vpop.f32.mrb[166].mxu1 }
 0x86c   : > { %v5504_v36 = vpop.f32.mrb[167].mxu1 }
 0x86d   : > { %v5005_v4 = vadd.f32 %v5502_v18, %v8977_v31  ;;  %v5505_v40 = vadd.f32 %v5504_v36, %v5503_v1 }
 0x86f   : > { %5049 = vst [vmem:[%s8983_s18 + $0x30] sm:$0xff] %v5005_v4  ;;  %v5008_v33 = vadd.f32 %v5505_v40, %v8977_v31 }
 0x871   : > { %5050 = vst [vmem:[%s8983_s18 + $0x38] sm:$0xff] %v5008_v33  ;;  %v5506_v14 = vpop.f32.mrb[168].mxu1 }
 0x872   : > { %v5507_v7 = vpop.f32.mrb[169].mxu1 }
 0x873   : > { %v5508_v42 = vadd.f32 %v5507_v7, %v5506_v14  ;;  %v5509_v43 = vpop.f32.mrb[170].mxu1 }
 0x874   : > { %v5510_v60 = vpop.f32.mrb[171].mxu1 }
 0x875   : > { %v5013_v6 = vadd.f32 %v5508_v42, %v8977_v31  ;;  %v5511_v20 = vadd.f32 %v5510_v60, %v5509_v43 }
 0x877   : > { %5051 = vst [vmem:[%s8983_s18 + $0x40] sm:$0xff] %v5013_v6  ;;  %v5016_v32 = vadd.f32 %v5511_v20, %v8977_v31 }
 0x879   : > { %5052 = vst [vmem:[%s8983_s18 + $0x48] sm:$0xff] %v5016_v32  ;;  %v5512_v59 = vpop.f32.mrb[172].mxu1 }
 0x87a   : > { %v5513_v41 = vpop.f32.mrb[173].mxu1 }
 0x87b   : > { %v5514_v54 = vadd.f32 %v5513_v41, %v5512_v59  ;;  %v5515_v50 = vpop.f32.mrb[174].mxu1 }
 0x87c   : > { %v5516_v10 = vpop.f32.mrb[175].mxu1 }
 0x87d   : > { %v5021_v34 = vadd.f32 %v5514_v54, %v8977_v31  ;;  %v5517_v38 = vadd.f32 %v5516_v10, %v5515_v50 }
 0x87f   : > { %5053 = vst [vmem:[%s8983_s18 + $0x50] sm:$0xff] %v5021_v34  ;;  %v5024_v35 = vadd.f32 %v5517_v38, %v8977_v31 }
 0x881   : > { %5054 = vst [vmem:[%s8983_s18 + $0x58] sm:$0xff] %v5024_v35  ;;  %v5518_v47 = vpop.f32.mrb[176].mxu1 }
 0x882   : > { %v5519_v2 = vpop.f32.mrb[177].mxu1 }
 0x883   : > { %v5520_v16 = vadd.f32 %v5519_v2, %v5518_v47  ;;  %v5521_v12 = vpop.f32.mrb[178].mxu1 }
 0x884   : > { %v5522_v13 = vpop.f32.mrb[179].mxu1 }
 0x885   : > { %v5029_v5 = vadd.f32 %v5520_v16, %v8977_v31  ;;  %v5523_v63 = vadd.f32 %v5522_v13, %v5521_v12 }
 0x887   : > { %5055 = vst [vmem:[%s8983_s18 + $0x60] sm:$0xff] %v5029_v5  ;;  %v5032_v0 = vadd.f32 %v5523_v63, %v8977_v31 }
 0x889   : > { %5056 = vst [vmem:[%s8983_s18 + $0x68] sm:$0xff] %v5032_v0  ;;  %v5524_v11 = vpop.f32.mrb[180].mxu1 }
 0x88a   : > { %v5525_v27 = vpop.f32.mrb[181].mxu1 }
 0x88b   : > { %v5526_v51 = vadd.f32 %v5525_v27, %v5524_v11  ;;  %v5527_v15 = vpop.f32.mrb[182].mxu1 }
 0x88c   : > { %v5528_v30 = vpop.f32.mrb[183].mxu1 }
 0x88d   : > { %v5037_v53 = vadd.f32 %v5526_v51, %v8977_v31  ;;  %v5529_v22 = vadd.f32 %v5528_v30, %v5527_v15 }
 0x88f   : > { %5057 = vst [vmem:[%s8983_s18 + $0x70] sm:$0xff] %v5037_v53  ;;  %v5040_v23 = vadd.f32 %v5529_v22, %v8977_v31 }
 0x891   : > { %5058 = vst [vmem:[%s8983_s18 + $0x78] sm:$0xff] %v5040_v23 }
 0x892 PF: > { %s16_s21 = sadd.s32 1, %s6452_s21  }
 0x893   : > { %p13_p4 = scmp.ge.s32.totalorder %s16_s21, 4  }
 0x895   :  { %15 = sbr.rel (!%p13_p4) target bundleno = 1 (0x1), region = 80 }

</bundles_post_ra>
